<compile_context>
chip_gen: v6e
topology: v6e:2x2x1
jax: 0.10.0
libtpu: 0.0.40
codegen_flags: <defaults>
</compile_context>

<pallas_src>
import functools
import math

import jax
import jax.numpy as jnp
from jax.experimental import pallas as pl
from jax.experimental.pallas import tpu as pltpu


def _rup(n, m):
    return ((n + m - 1) // m) * m


def _pad_to(w, shape):
    out = jnp.zeros(shape, jnp.float32)
    idx = tuple(slice(0, s) for s in w.shape)
    return out.at[idx].set(w)


def _band_matrix(taps, L):
    # taps: (3,) Conv1d taps (cross-correlation, k=3, padding=1).
    # Returns M (L, L) with M[j, l] = taps[j - l + 1] for |j - l| <= 1, so that
    # (v @ M)[l] = v[l-1]*taps[0] + v[l]*taps[1] + v[l+1]*taps[2]  (zero-padded).
    j = jnp.arange(L)[:, None]
    l = jnp.arange(L)[None, :]
    d = j - l
    m = jnp.zeros((L, L), jnp.float32)
    m = jnp.where(d == -1, taps[0], m)
    m = jnp.where(d == 0, taps[1], m)
    m = jnp.where(d == 1, taps[2], m)
    return m


# ----------------------------------------------------------------------------
# Kernel 1: conv0 + full AE + conv1, fused, row-tiled over nodes.
# ----------------------------------------------------------------------------
def _conv_ae_kernel(
    x_ref, eps_ref,
    a0_ref, b0_ref,
    w1_ref, b1_ref, w2_ref, b2_ref, w31_ref, b31_ref,
    wml_ref, bml_ref, w3_ref, b3_ref, w32_ref, b32_ref, w4_ref, b4_ref,
    a1_ref, bc1_ref,
    pro_ref, mu_ref, lv_ref, rec_ref,
    *, Z):
    f32 = jnp.float32

    def mm(a, b):
        return jnp.dot(a, b, preferred_element_type=f32)

    # conv0: Conv1d(C -> 1, k=3, pad=1) + squeeze(dim=1), folded into one matmul.
    pro = mm(x_ref[...], a0_ref[...]) + b0_ref[...]
    pro_ref[...] = pro

    # AE encoder: fc1 -> relu -> fc2 -> relu -> fc31 -> relu
    h = jnp.maximum(mm(pro, w1_ref[...]) + b1_ref[...], 0.0)
    h = jnp.maximum(mm(h, w2_ref[...]) + b2_ref[...], 0.0)
    h = jnp.maximum(mm(h, w31_ref[...]) + b31_ref[...], 0.0)

    # fc21 / fc22 merged into one (H, 2Z) matmul; the split is a free slice.
    ml = mm(h, wml_ref[...]) + bml_ref[...]
    mu = ml[:, 0:Z]
    lv = ml[:, Z:2 * Z]
    mu_ref[...] = mu
    lv_ref[...] = lv

    # reparametrize: z = eps * exp(0.5 * logvar) + mu  (padded lanes are zero)
    z = eps_ref[...] * jnp.exp(0.5 * lv) + mu

    # AE decoder: fc3 -> relu -> fc32 -> relu -> fc4 -> sigmoid
    d = jnp.maximum(mm(z, w3_ref[...]) + b3_ref[...], 0.0)
    d = jnp.maximum(mm(d, w32_ref[...]) + b32_ref[...], 0.0)
    y = mm(d, w4_ref[...]) + b4_ref[...]
    recon = 0.5 * (jnp.tanh(0.5 * y) + 1.0)   # numerically-stable sigmoid (EUP tanh)

    # conv1: Conv1d(1 -> C, k=3, pad=1) on recon.unsqueeze(1), folded into one matmul.
    rec_ref[...] = mm(recon, a1_ref[...]) + bc1_ref[...]


# ----------------------------------------------------------------------------
# Kernel 2: GNN stack (sigma = 0) + fc + softmax, fused; adj resident in VMEM.
# ----------------------------------------------------------------------------
def _gnn_predict_kernel(pro_ref, adj_ref, g1_ref, g3_ref, g4_ref, g5_ref,
                        fcw_ref, fcb_ref, out_ref):
    f32 = jnp.float32

    def mm(a, b):
        return jnp.dot(a, b, preferred_element_type=f32)

    adj = adj_ref[...]
    # GNNLayer: out = adj @ (x @ W); relu when active.  sigma = 0 in the PyTorch
    # forward, so (1 - sigma) * h + sigma * z is literally h.
    h = jnp.maximum(mm(adj, mm(pro_ref[...], g1_ref[...])), 0.0)   # gnn_1, active
    h = jnp.maximum(mm(adj, mm(h, g3_ref[...])), 0.0)              # gnn_3, active
    h = mm(adj, mm(h, g4_ref[...]))                                # gnn_4, active=False
    h = mm(adj, mm(h, g5_ref[...]))                                # gnn_5, active=False
    # Dropout is eval-mode identity; fc + softmax(dim=1).  Padded class lanes
    # carry a -1e30 bias so they drop out of the normalization exactly.
    logits = mm(h, fcw_ref[...]) + fcb_ref[...]
    logits = logits - jnp.max(logits, axis=-1, keepdims=True)
    e = jnp.exp(logits)
    out_ref[...] = e * pl.reciprocal(jnp.sum(e, axis=-1, keepdims=True), approx=True)


# ----------------------------------------------------------------------------
# Parameter initialization (deterministic, PyTorch-default-like, logical shapes)
# ----------------------------------------------------------------------------
def _init_linear(key, fan_in, fan_out):
    kw, kb = jax.random.split(key)
    bound = 1.0 / math.sqrt(fan_in)
    w = jax.random.uniform(kw, (fan_in, fan_out), jnp.float32, -bound, bound)
    b = jax.random.uniform(kb, (fan_out,), jnp.float32, -bound, bound)
    return w, b


def _init_gnn(key, fan_in, fan_out):
    limit = math.sqrt(6.0 / (fan_in + fan_out))
    return jax.random.uniform(key, (fan_in, fan_out), jnp.float32, -limit, limit)


def init_params(key, n_input, variable_num, n_z, n_clusters):
    ks = jax.random.split(key, 16)
    params = {}
    b0 = 1.0 / math.sqrt(variable_num * 3)
    params["conv0_w"] = jax.random.uniform(ks[0], (variable_num, 3), jnp.float32, -b0, b0)
    params["conv0_b"] = jax.random.uniform(ks[1], (1,), jnp.float32, -b0, b0)
    b1 = 1.0 / math.sqrt(1 * 3)
    params["conv1_w"] = jax.random.uniform(ks[2], (variable_num, 3), jnp.float32, -b1, b1)
    params["conv1_b"] = jax.random.uniform(ks[3], (variable_num,), jnp.float32, -b1, b1)
    # AE hidden/latent widths are hard-coded (500 / 100) in the PyTorch module.
    params["fc1"] = _init_linear(ks[4], n_input, 500)
    params["fc2"] = _init_linear(ks[5], 500, 500)
    params["fc31"] = _init_linear(ks[6], 500, 500)
    params["fc21"] = _init_linear(ks[7], 500, 100)
    params["fc22"] = _init_linear(ks[8], 500, 100)
    params["fc3"] = _init_linear(ks[9], 100, 500)
    params["fc32"] = _init_linear(ks[10], 500, 500)
    params["fc4"] = _init_linear(ks[11], 500, n_input)
    params["gnn1_w"] = _init_gnn(ks[12], n_input, n_z)
    params["gnn3_w"] = _init_gnn(ks[13], n_z, n_z)
    params["gnn4_w"] = _init_gnn(ks[14], n_z, n_z)
    params["gnn5_w"] = _init_gnn(ks[15], n_z, n_z)
    params["fc"] = _init_linear(jax.random.fold_in(key, 99), n_z, n_clusters)
    return params


# ----------------------------------------------------------------------------
# SDCN forward
# ----------------------------------------------------------------------------
def sdcn_forward(params, x, adj, eps):
    N, C, L = x.shape
    CL = C * L
    n_lat = params["fc21"][0].shape[1]        # AE latent width (100 in the module)
    n_z = params["gnn1_w"].shape[1]
    n_clusters = params["fc"][0].shape[1]
    H = _rup(params["fc2"][0].shape[1], 128)  # 500 -> 512
    Z = _rup(n_lat, 128)                      # 100 -> 128
    Zg = _rup(n_z, 128)
    Kp = _rup(n_clusters, 128)

    # ---- tiny one-time parameter padding / conv -> matmul folding ----
    a0 = jnp.concatenate([_band_matrix(params["conv0_w"][c], L) for c in range(C)], axis=0)
    b0 = jnp.full((1, L), params["conv0_b"][0], jnp.float32)
    a1 = jnp.concatenate([_band_matrix(params["conv1_w"][c], L) for c in range(C)], axis=1)
    bc1 = jnp.repeat(params["conv1_b"], L).reshape(1, CL)

    w1, b1 = params["fc1"]; w2, b2 = params["fc2"]; w31, b31 = params["fc31"]
    w21, b21 = params["fc21"]; w22, b22 = params["fc22"]
    w3, b3 = params["fc3"]; w32, b32 = params["fc32"]; w4, b4 = params["fc4"]

    w1p = _pad_to(w1, (L, H));   b1p = _pad_to(b1.reshape(1, -1), (1, H))
    w2p = _pad_to(w2, (H, H));   b2p = _pad_to(b2.reshape(1, -1), (1, H))
    w31p = _pad_to(w31, (H, H)); b31p = _pad_to(b31.reshape(1, -1), (1, H))
    wml = jnp.zeros((H, 2 * Z), jnp.float32)
    wml = wml.at[:w21.shape[0], :w21.shape[1]].set(w21)
    wml = wml.at[:w22.shape[0], Z:Z + w22.shape[1]].set(w22)
    bml = jnp.zeros((1, 2 * Z), jnp.float32)
    bml = bml.at[0, :b21.shape[0]].set(b21)
    bml = bml.at[0, Z:Z + b22.shape[0]].set(b22)
    w3p = _pad_to(w3, (Z, H));   b3p = _pad_to(b3.reshape(1, -1), (1, H))
    w32p = _pad_to(w32, (H, H)); b32p = _pad_to(b32.reshape(1, -1), (1, H))
    w4p = _pad_to(w4, (H, L));   b4p = b4.reshape(1, L)

    g1p = _pad_to(params["gnn1_w"], (L, Zg))
    g3p = _pad_to(params["gnn3_w"], (Zg, Zg))
    g4p = _pad_to(params["gnn4_w"], (Zg, Zg))
    g5p = _pad_to(params["gnn5_w"], (Zg, Zg))
    fw, fb = params["fc"]
    fcwp = _pad_to(fw, (Zg, Kp))
    fcbp = jnp.full((1, Kp), -1e30, jnp.float32).at[0, :n_clusters].set(fb)

    # ---- fused conv0 + AE + conv1 kernel, row-tiled over nodes ----
    TM = min(512, _rup(N, 8))
    NP = _rup(N, TM)
    xf = x.reshape(N, CL)
    if NP != N:
        xf = jnp.pad(xf, ((0, NP - N), (0, 0)))
    ep = jnp.zeros((NP, Z), jnp.float32).at[:N, :n_lat].set(eps)

    weight_args = (a0, b0, w1p, b1p, w2p, b2p, w31p, b31p, wml, bml,
                   w3p, b3p, w32p, b32p, w4p, b4p, a1, bc1)

    def _full(a):
        nd = a.ndim
        return pl.BlockSpec(a.shape, lambda i: (0,) * nd)

    in_specs = ([pl.BlockSpec((TM, CL), lambda i: (i, 0)),
                 pl.BlockSpec((TM, Z), lambda i: (i, 0))]
                + [_full(a) for a in weight_args])
    out_specs = (pl.BlockSpec((TM, L), lambda i: (i, 0)),
                 pl.BlockSpec((TM, Z), lambda i: (i, 0)),
                 pl.BlockSpec((TM, Z), lambda i: (i, 0)),
                 pl.BlockSpec((TM, CL), lambda i: (i, 0)))
    out_shape = (jax.ShapeDtypeStruct((NP, L), jnp.float32),
                 jax.ShapeDtypeStruct((NP, Z), jnp.float32),
                 jax.ShapeDtypeStruct((NP, Z), jnp.float32),
                 jax.ShapeDtypeStruct((NP, CL), jnp.float32))

    ae_flops = 2 * NP * (CL * L + L * H + 3 * H * H + H * 2 * Z + Z * H + H * L + L * CL)
    ae_bytes = 4 * (NP * (CL + Z) + sum(int(a.size) for a in weight_args)
                    + NP * (L + 2 * Z + CL))
    # TODO(synk): optionally cast matmul inputs to bf16 (f32 accumulate) for ~2x MXU
    # throughput on v6e; kept f32 here to match PyTorch numerics exactly.
    pro, mu_p, lv_p, rec = pl.pallas_call(
        functools.partial(_conv_ae_kernel, Z=Z),
        grid=(NP // TM,),
        in_specs=in_specs,
        out_specs=out_specs,
        out_shape=out_shape,
        compiler_params=pltpu.CompilerParams(dimension_semantics=("parallel",)),
        cost_estimate=pl.CostEstimate(flops=ae_flops, transcendentals=NP * (Z + L),
                                      bytes_accessed=ae_bytes),
    )(xf, ep, *weight_args)

    pro_x = pro[:N]                        # (N, L)
    mu = mu_p[:N, :n_lat]
    logvar = lv_p[:N, :n_lat]
    recon_conv = rec[:N].reshape(N, C, L)

    # ---- fused GNN stack + fc + softmax kernel (adj loaded into VMEM once) ----
    # TODO(synk): for large N, tile adj into (tm, N) row blocks with a grid so the
    # working set stays within v7x's 64 MiB VMEM; single-block is fine at demo sizes.
    vm = pltpu.MemorySpace.VMEM
    gnn_args = (pro_x, adj, g1p, g3p, g4p, g5p, fcwp, fcbp)
    gnn_flops = 2 * (N * L * Zg + 3 * N * Zg * Zg + 4 * N * N * Zg + N * Zg * Kp)
    gnn_bytes = 4 * (N * L + N * N + sum(int(a.size) for a in gnn_args[2:]) + N * Kp)
    predict_p = pl.pallas_call(
        _gnn_predict_kernel,
        in_specs=[pl.BlockSpec(memory_space=vm)] * len(gnn_args),
        out_specs=pl.BlockSpec(memory_space=vm),
        out_shape=jax.ShapeDtypeStruct((N, Kp), jnp.float32),
        cost_estimate=pl.CostEstimate(flops=gnn_flops, transcendentals=N * Kp,
                                      bytes_accessed=gnn_bytes),
    )(*gnn_args)
    predict = predict_p[:, :n_clusters]

    return recon_conv, predict, mu, logvar


# ----------------------------------------------------------------------------
if __name__ == "__main__":
    key = jax.random.PRNGKey(0)
    N = 8            # number of nodes
    C = 4            # variable_num
    L = 16           # n_input (sequence length after conv0 squeeze)
    n_z = 100        # matches the AE latent width hard-coded to 100 in the module
    n_clusters = 4

    k_param, k_x, k_adj, k_eps = jax.random.split(key, 4)
    params = init_params(k_param, n_input=L, variable_num=C, n_z=n_z, n_clusters=n_clusters)

    x = jax.random.normal(k_x, (N, C, L), jnp.float32)
    adj_raw = jax.random.uniform(k_adj, (N, N), jnp.float32)
    adj = adj_raw / jnp.sum(adj_raw, axis=1, keepdims=True)   # row-normalized adjacency
    eps = jax.random.normal(k_eps, (N, 100), jnp.float32)     # reparametrization noise

    fwd = jax.jit(sdcn_forward)
    outs = fwd(params, x, adj, eps)
    jax.block_until_ready(outs)

    recon_conv, predict, mu, logvar = outs
    assert recon_conv.shape == (N, C, L)
    assert predict.shape == (N, n_clusters)
    assert mu.shape == (N, 100) and logvar.shape == (N, 100)
    assert bool(jnp.all(jnp.isfinite(recon_conv)))
    assert bool(jnp.all(jnp.isfinite(predict)))
    # softmax rows should (approximately) sum to 1 over the real classes
    assert bool(jnp.all(jnp.abs(jnp.sum(predict, axis=1) - 1.0) < 1e-2))
    print("KERNEL_OK")
</pallas_src>

<mosaic_0001>
module attributes {stable_mosaic.version = 11 : i64} {
  func.func @_conv_ae_kernel(%arg0: i32, %arg1: memref<8x64xf32, #tpu.memory_space<vmem>>, %arg2: memref<8x128xf32, #tpu.memory_space<vmem>>, %arg3: memref<64x16xf32, #tpu.memory_space<vmem>>, %arg4: memref<1x16xf32, #tpu.memory_space<vmem>>, %arg5: memref<16x512xf32, #tpu.memory_space<vmem>>, %arg6: memref<1x512xf32, #tpu.memory_space<vmem>>, %arg7: memref<512x512xf32, #tpu.memory_space<vmem>>, %arg8: memref<1x512xf32, #tpu.memory_space<vmem>>, %arg9: memref<512x512xf32, #tpu.memory_space<vmem>>, %arg10: memref<1x512xf32, #tpu.memory_space<vmem>>, %arg11: memref<512x256xf32, #tpu.memory_space<vmem>>, %arg12: memref<1x256xf32, #tpu.memory_space<vmem>>, %arg13: memref<128x512xf32, #tpu.memory_space<vmem>>, %arg14: memref<1x512xf32, #tpu.memory_space<vmem>>, %arg15: memref<512x512xf32, #tpu.memory_space<vmem>>, %arg16: memref<1x512xf32, #tpu.memory_space<vmem>>, %arg17: memref<512x16xf32, #tpu.memory_space<vmem>>, %arg18: memref<1x16xf32, #tpu.memory_space<vmem>>, %arg19: memref<16x64xf32, #tpu.memory_space<vmem>>, %arg20: memref<1x64xf32, #tpu.memory_space<vmem>>, %arg21: memref<8x16xf32, #tpu.memory_space<vmem>>, %arg22: memref<8x128xf32, #tpu.memory_space<vmem>>, %arg23: memref<8x128xf32, #tpu.memory_space<vmem>>, %arg24: memref<8x64xf32, #tpu.memory_space<vmem>>) attributes {dimension_semantics = [#tpu.dimension_semantics<parallel>], iteration_bounds = array<i64: 1>, scalar_prefetch = 0 : i64, scratch_operands = 0 : i64, tpu.core_type = #tpu.core_type<tc>, window_params = [{transform_indices = @transform_0, window_bounds = array<i64: 8, 64>}, {transform_indices = @transform_1, window_bounds = array<i64: 8, 128>}, {pipeline_mode = #tpu.pipeline_mode<synchronous>, transform_indices = @transform_2, window_bounds = array<i64: 64, 16>}, {pipeline_mode = #tpu.pipeline_mode<synchronous>, transform_indices = @transform_3, window_bounds = array<i64: 1, 16>}, {pipeline_mode = #tpu.pipeline_mode<synchronous>, transform_indices = @transform_4, window_bounds = array<i64: 16, 512>}, {pipeline_mode = #tpu.pipeline_mode<synchronous>, transform_indices = @transform_5, window_bounds = array<i64: 1, 512>}, {pipeline_mode = #tpu.pipeline_mode<synchronous>, transform_indices = @transform_6, window_bounds = array<i64: 512, 512>}, {pipeline_mode = #tpu.pipeline_mode<synchronous>, transform_indices = @transform_7, window_bounds = array<i64: 1, 512>}, {pipeline_mode = #tpu.pipeline_mode<synchronous>, transform_indices = @transform_8, window_bounds = array<i64: 512, 512>}, {pipeline_mode = #tpu.pipeline_mode<synchronous>, transform_indices = @transform_9, window_bounds = array<i64: 1, 512>}, {pipeline_mode = #tpu.pipeline_mode<synchronous>, transform_indices = @transform_10, window_bounds = array<i64: 512, 256>}, {pipeline_mode = #tpu.pipeline_mode<synchronous>, transform_indices = @transform_11, window_bounds = array<i64: 1, 256>}, {pipeline_mode = #tpu.pipeline_mode<synchronous>, transform_indices = @transform_12, window_bounds = array<i64: 128, 512>}, {pipeline_mode = #tpu.pipeline_mode<synchronous>, transform_indices = @transform_13, window_bounds = array<i64: 1, 512>}, {pipeline_mode = #tpu.pipeline_mode<synchronous>, transform_indices = @transform_14, window_bounds = array<i64: 512, 512>}, {pipeline_mode = #tpu.pipeline_mode<synchronous>, transform_indices = @transform_15, window_bounds = array<i64: 1, 512>}, {pipeline_mode = #tpu.pipeline_mode<synchronous>, transform_indices = @transform_16, window_bounds = array<i64: 512, 16>}, {pipeline_mode = #tpu.pipeline_mode<synchronous>, transform_indices = @transform_17, window_bounds = array<i64: 1, 16>}, {pipeline_mode = #tpu.pipeline_mode<synchronous>, transform_indices = @transform_18, window_bounds = array<i64: 16, 64>}, {pipeline_mode = #tpu.pipeline_mode<synchronous>, transform_indices = @transform_19, window_bounds = array<i64: 1, 64>}, {transform_indices = @transform_20, window_bounds = array<i64: 8, 16>}, {transform_indices = @transform_21, window_bounds = array<i64: 8, 128>}, {transform_indices = @transform_22, window_bounds = array<i64: 8, 128>}, {transform_indices = @transform_23, window_bounds = array<i64: 8, 64>}]} {
    %c0 = arith.constant 0 : index
    %c0_0 = arith.constant 0 : index
    %0 = vector.load %arg1[%c0, %c0_0] : memref<8x64xf32, #tpu.memory_space<vmem>>, vector<8x64xf32>
    %c0_1 = arith.constant 0 : index
    %c0_2 = arith.constant 0 : index
    %1 = vector.load %arg3[%c0_1, %c0_2] : memref<64x16xf32, #tpu.memory_space<vmem>>, vector<64x16xf32>
    %cst = arith.constant dense<0.000000e+00> : vector<8x16xf32>
    %2 = tpu.matmul %0, %1, %cst {dimension_numbers = #tpu.dot_dimension_numbers<[1], [0], [0], [1], [0, 0, 1, 1], [], []>} : vector<8x64xf32>, vector<64x16xf32>, vector<8x16xf32> -> vector<8x16xf32>
    %c0_3 = arith.constant 0 : index
    %c0_4 = arith.constant 0 : index
    %3 = vector.load %arg4[%c0_3, %c0_4] : memref<1x16xf32, #tpu.memory_space<vmem>>, vector<1x16xf32>
    %4 = vector.broadcast %3 : vector<1x16xf32> to vector<8x16xf32>
    %5 = arith.addf %2, %4 : vector<8x16xf32>
    %c0_5 = arith.constant 0 : index
    %c0_6 = arith.constant 0 : index
    %6 = vector.load %arg21[%c0_5, %c0_6] : memref<8x16xf32, #tpu.memory_space<vmem>>, vector<8x16xf32>
    tpu.vector_store %arg21[%c0_5, %c0_6], %5 {strides = array<i32>} : memref<8x16xf32, #tpu.memory_space<vmem>>, vector<8x16xf32>,
    %c0_7 = arith.constant 0 : index
    %c0_8 = arith.constant 0 : index
    %7 = vector.load %arg5[%c0_7, %c0_8] : memref<16x512xf32, #tpu.memory_space<vmem>>, vector<16x512xf32>
    %cst_9 = arith.constant dense<0.000000e+00> : vector<8x512xf32>
    %8 = tpu.matmul %5, %7, %cst_9 {dimension_numbers = #tpu.dot_dimension_numbers<[1], [0], [0], [1], [0, 0, 1, 1], [], []>} : vector<8x16xf32>, vector<16x512xf32>, vector<8x512xf32> -> vector<8x512xf32>
    %c0_10 = arith.constant 0 : index
    %c0_11 = arith.constant 0 : index
    %9 = vector.load %arg6[%c0_10, %c0_11] : memref<1x512xf32, #tpu.memory_space<vmem>>, vector<1x512xf32>
    %10 = vector.broadcast %9 : vector<1x512xf32> to vector<8x512xf32>
    %11 = arith.addf %8, %10 : vector<8x512xf32>
    %cst_12 = arith.constant 0.000000e+00 : f32
    %12 = vector.broadcast %cst_12 : f32 to vector<8x512xf32>
    %13 = arith.maximumf %11, %12 : vector<8x512xf32>
    %c0_13 = arith.constant 0 : index
    %c0_14 = arith.constant 0 : index
    %14 = vector.load %arg7[%c0_13, %c0_14] : memref<512x512xf32, #tpu.memory_space<vmem>>, vector<512x512xf32>
    %cst_15 = arith.constant dense<0.000000e+00> : vector<8x512xf32>
    %15 = tpu.matmul %13, %14, %cst_15 {dimension_numbers = #tpu.dot_dimension_numbers<[1], [0], [0], [1], [0, 0, 1, 1], [], []>} : vector<8x512xf32>, vector<512x512xf32>, vector<8x512xf32> -> vector<8x512xf32>
    %c0_16 = arith.constant 0 : index
    %c0_17 = arith.constant 0 : index
    %16 = vector.load %arg8[%c0_16, %c0_17] : memref<1x512xf32, #tpu.memory_space<vmem>>, vector<1x512xf32>
    %17 = vector.broadcast %16 : vector<1x512xf32> to vector<8x512xf32>
    %18 = arith.addf %15, %17 : vector<8x512xf32>
    %cst_18 = arith.constant 0.000000e+00 : f32
    %19 = vector.broadcast %cst_18 : f32 to vector<8x512xf32>
    %20 = arith.maximumf %18, %19 : vector<8x512xf32>
    %c0_19 = arith.constant 0 : index
    %c0_20 = arith.constant 0 : index
    %21 = vector.load %arg9[%c0_19, %c0_20] : memref<512x512xf32, #tpu.memory_space<vmem>>, vector<512x512xf32>
    %cst_21 = arith.constant dense<0.000000e+00> : vector<8x512xf32>
    %22 = tpu.matmul %20, %21, %cst_21 {dimension_numbers = #tpu.dot_dimension_numbers<[1], [0], [0], [1], [0, 0, 1, 1], [], []>} : vector<8x512xf32>, vector<512x512xf32>, vector<8x512xf32> -> vector<8x512xf32>
    %c0_22 = arith.constant 0 : index
    %c0_23 = arith.constant 0 : index
    %23 = vector.load %arg10[%c0_22, %c0_23] : memref<1x512xf32, #tpu.memory_space<vmem>>, vector<1x512xf32>
    %24 = vector.broadcast %23 : vector<1x512xf32> to vector<8x512xf32>
    %25 = arith.addf %22, %24 : vector<8x512xf32>
    %cst_24 = arith.constant 0.000000e+00 : f32
    %26 = vector.broadcast %cst_24 : f32 to vector<8x512xf32>
    %27 = arith.maximumf %25, %26 : vector<8x512xf32>
    %c0_25 = arith.constant 0 : index
    %c0_26 = arith.constant 0 : index
    %28 = vector.load %arg11[%c0_25, %c0_26] : memref<512x256xf32, #tpu.memory_space<vmem>>, vector<512x256xf32>
    %cst_27 = arith.constant dense<0.000000e+00> : vector<8x256xf32>
    %29 = tpu.matmul %27, %28, %cst_27 {dimension_numbers = #tpu.dot_dimension_numbers<[1], [0], [0], [1], [0, 0, 1, 1], [], []>} : vector<8x512xf32>, vector<512x256xf32>, vector<8x256xf32> -> vector<8x256xf32>
    %c0_28 = arith.constant 0 : index
    %c0_29 = arith.constant 0 : index
    %30 = vector.load %arg12[%c0_28, %c0_29] : memref<1x256xf32, #tpu.memory_space<vmem>>, vector<1x256xf32>
    %31 = vector.broadcast %30 : vector<1x256xf32> to vector<8x256xf32>
    %32 = arith.addf %29, %31 : vector<8x256xf32>
    %33 = vector.extract_strided_slice %32 {offsets = [0, 0], sizes = [8, 128], strides = [1, 1]} : vector<8x256xf32> to vector<8x128xf32>
    %34 = vector.extract_strided_slice %32 {offsets = [0, 128], sizes = [8, 128], strides = [1, 1]} : vector<8x256xf32> to vector<8x128xf32>
    %c0_30 = arith.constant 0 : index
    %c0_31 = arith.constant 0 : index
    %35 = vector.load %arg22[%c0_30, %c0_31] : memref<8x128xf32, #tpu.memory_space<vmem>>, vector<8x128xf32>
    tpu.vector_store %arg22[%c0_30, %c0_31], %33 {strides = array<i32>} : memref<8x128xf32, #tpu.memory_space<vmem>>, vector<8x128xf32>,
    %c0_32 = arith.constant 0 : index
    %c0_33 = arith.constant 0 : index
    %36 = vector.load %arg23[%c0_32, %c0_33] : memref<8x128xf32, #tpu.memory_space<vmem>>, vector<8x128xf32>
    tpu.vector_store %arg23[%c0_32, %c0_33], %34 {strides = array<i32>} : memref<8x128xf32, #tpu.memory_space<vmem>>, vector<8x128xf32>,
    %c0_34 = arith.constant 0 : index
    %c0_35 = arith.constant 0 : index
    %37 = vector.load %arg2[%c0_34, %c0_35] : memref<8x128xf32, #tpu.memory_space<vmem>>, vector<8x128xf32>
    %cst_36 = arith.constant 5.000000e-01 : f32
    %38 = vector.broadcast %cst_36 : f32 to vector<8x128xf32>
    %39 = arith.mulf %38, %34 : vector<8x128xf32>
    %40 = math.exp %39 : vector<8x128xf32>
    %41 = arith.mulf %37, %40 : vector<8x128xf32>
    %42 = arith.addf %41, %33 : vector<8x128xf32>
    %c0_37 = arith.constant 0 : index
    %c0_38 = arith.constant 0 : index
    %43 = vector.load %arg13[%c0_37, %c0_38] : memref<128x512xf32, #tpu.memory_space<vmem>>, vector<128x512xf32>
    %cst_39 = arith.constant dense<0.000000e+00> : vector<8x512xf32>
    %44 = tpu.matmul %42, %43, %cst_39 {dimension_numbers = #tpu.dot_dimension_numbers<[1], [0], [0], [1], [0, 0, 1, 1], [], []>} : vector<8x128xf32>, vector<128x512xf32>, vector<8x512xf32> -> vector<8x512xf32>
    %c0_40 = arith.constant 0 : index
    %c0_41 = arith.constant 0 : index
    %45 = vector.load %arg14[%c0_40, %c0_41] : memref<1x512xf32, #tpu.memory_space<vmem>>, vector<1x512xf32>
    %46 = vector.broadcast %45 : vector<1x512xf32> to vector<8x512xf32>
    %47 = arith.addf %44, %46 : vector<8x512xf32>
    %cst_42 = arith.constant 0.000000e+00 : f32
    %48 = vector.broadcast %cst_42 : f32 to vector<8x512xf32>
    %49 = arith.maximumf %47, %48 : vector<8x512xf32>
    %c0_43 = arith.constant 0 : index
    %c0_44 = arith.constant 0 : index
    %50 = vector.load %arg15[%c0_43, %c0_44] : memref<512x512xf32, #tpu.memory_space<vmem>>, vector<512x512xf32>
    %cst_45 = arith.constant dense<0.000000e+00> : vector<8x512xf32>
    %51 = tpu.matmul %49, %50, %cst_45 {dimension_numbers = #tpu.dot_dimension_numbers<[1], [0], [0], [1], [0, 0, 1, 1], [], []>} : vector<8x512xf32>, vector<512x512xf32>, vector<8x512xf32> -> vector<8x512xf32>
    %c0_46 = arith.constant 0 : index
    %c0_47 = arith.constant 0 : index
    %52 = vector.load %arg16[%c0_46, %c0_47] : memref<1x512xf32, #tpu.memory_space<vmem>>, vector<1x512xf32>
    %53 = vector.broadcast %52 : vector<1x512xf32> to vector<8x512xf32>
    %54 = arith.addf %51, %53 : vector<8x512xf32>
    %cst_48 = arith.constant 0.000000e+00 : f32
    %55 = vector.broadcast %cst_48 : f32 to vector<8x512xf32>
    %56 = arith.maximumf %54, %55 : vector<8x512xf32>
    %c0_49 = arith.constant 0 : index
    %c0_50 = arith.constant 0 : index
    %57 = vector.load %arg17[%c0_49, %c0_50] : memref<512x16xf32, #tpu.memory_space<vmem>>, vector<512x16xf32>
    %cst_51 = arith.constant dense<0.000000e+00> : vector<8x16xf32>
    %58 = tpu.matmul %56, %57, %cst_51 {dimension_numbers = #tpu.dot_dimension_numbers<[1], [0], [0], [1], [0, 0, 1, 1], [], []>} : vector<8x512xf32>, vector<512x16xf32>, vector<8x16xf32> -> vector<8x16xf32>
    %c0_52 = arith.constant 0 : index
    %c0_53 = arith.constant 0 : index
    %59 = vector.load %arg18[%c0_52, %c0_53] : memref<1x16xf32, #tpu.memory_space<vmem>>, vector<1x16xf32>
    %60 = vector.broadcast %59 : vector<1x16xf32> to vector<8x16xf32>
    %61 = arith.addf %58, %60 : vector<8x16xf32>
    %cst_54 = arith.constant 5.000000e-01 : f32
    %62 = vector.broadcast %cst_54 : f32 to vector<8x16xf32>
    %63 = arith.mulf %62, %61 : vector<8x16xf32>
    %64 = math.tanh %63 : vector<8x16xf32>
    %cst_55 = arith.constant 1.000000e+00 : f32
    %65 = vector.broadcast %cst_55 : f32 to vector<8x16xf32>
    %66 = arith.addf %64, %65 : vector<8x16xf32>
    %cst_56 = arith.constant 5.000000e-01 : f32
    %67 = vector.broadcast %cst_56 : f32 to vector<8x16xf32>
    %68 = arith.mulf %67, %66 : vector<8x16xf32>
    %c0_57 = arith.constant 0 : index
    %c0_58 = arith.constant 0 : index
    %69 = vector.load %arg19[%c0_57, %c0_58] : memref<16x64xf32, #tpu.memory_space<vmem>>, vector<16x64xf32>
    %cst_59 = arith.constant dense<0.000000e+00> : vector<8x64xf32>
    %70 = tpu.matmul %68, %69, %cst_59 {dimension_numbers = #tpu.dot_dimension_numbers<[1], [0], [0], [1], [0, 0, 1, 1], [], []>} : vector<8x16xf32>, vector<16x64xf32>, vector<8x64xf32> -> vector<8x64xf32>
    %c0_60 = arith.constant 0 : index
    %c0_61 = arith.constant 0 : index
    %71 = vector.load %arg20[%c0_60, %c0_61] : memref<1x64xf32, #tpu.memory_space<vmem>>, vector<1x64xf32>
    %72 = vector.broadcast %71 : vector<1x64xf32> to vector<8x64xf32>
    %73 = arith.addf %70, %72 : vector<8x64xf32>
    %c0_62 = arith.constant 0 : index
    %c0_63 = arith.constant 0 : index
    %74 = vector.load %arg24[%c0_62, %c0_63] : memref<8x64xf32, #tpu.memory_space<vmem>>, vector<8x64xf32>
    tpu.vector_store %arg24[%c0_62, %c0_63], %73 {strides = array<i32>} : memref<8x64xf32, #tpu.memory_space<vmem>>, vector<8x64xf32>,
    return
  }
  func.func @transform_0(%arg0: i32) -> (i32, i32) {
    %c0_i32 = arith.constant 0 : i32
    %c0_i32_0 = arith.constant 0 : i32
    return %arg0, %c0_i32 : i32, i32
  }
  func.func @transform_1(%arg0: i32) -> (i32, i32) {
    %c0_i32 = arith.constant 0 : i32
    %c0_i32_0 = arith.constant 0 : i32
    return %arg0, %c0_i32 : i32, i32
  }
  func.func @transform_2(%arg0: i32) -> (i32, i32) {
    %c0_i32 = arith.constant 0 : i32
    %c0_i32_0 = arith.constant 0 : i32
    %c0_i32_1 = arith.constant 0 : i32
    return %c0_i32, %c0_i32_0 : i32, i32
  }
  func.func @transform_3(%arg0: i32) -> (i32, i32) {
    %c0_i32 = arith.constant 0 : i32
    %c0_i32_0 = arith.constant 0 : i32
    %c0_i32_1 = arith.constant 0 : i32
    return %c0_i32, %c0_i32_0 : i32, i32
  }
  func.func @transform_4(%arg0: i32) -> (i32, i32) {
    %c0_i32 = arith.constant 0 : i32
    %c0_i32_0 = arith.constant 0 : i32
    %c0_i32_1 = arith.constant 0 : i32
    return %c0_i32, %c0_i32_0 : i32, i32
  }
  func.func @transform_5(%arg0: i32) -> (i32, i32) {
    %c0_i32 = arith.constant 0 : i32
    %c0_i32_0 = arith.constant 0 : i32
    %c0_i32_1 = arith.constant 0 : i32
    return %c0_i32, %c0_i32_0 : i32, i32
  }
  func.func @transform_6(%arg0: i32) -> (i32, i32) {
    %c0_i32 = arith.constant 0 : i32
    %c0_i32_0 = arith.constant 0 : i32
    %c0_i32_1 = arith.constant 0 : i32
    return %c0_i32, %c0_i32_0 : i32, i32
  }
  func.func @transform_7(%arg0: i32) -> (i32, i32) {
    %c0_i32 = arith.constant 0 : i32
    %c0_i32_0 = arith.constant 0 : i32
    %c0_i32_1 = arith.constant 0 : i32
    return %c0_i32, %c0_i32_0 : i32, i32
  }
  func.func @transform_8(%arg0: i32) -> (i32, i32) {
    %c0_i32 = arith.constant 0 : i32
    %c0_i32_0 = arith.constant 0 : i32
    %c0_i32_1 = arith.constant 0 : i32
    return %c0_i32, %c0_i32_0 : i32, i32
  }
  func.func @transform_9(%arg0: i32) -> (i32, i32) {
    %c0_i32 = arith.constant 0 : i32
    %c0_i32_0 = arith.constant 0 : i32
    %c0_i32_1 = arith.constant 0 : i32
    return %c0_i32, %c0_i32_0 : i32, i32
  }
  func.func @transform_10(%arg0: i32) -> (i32, i32) {
    %c0_i32 = arith.constant 0 : i32
    %c0_i32_0 = arith.constant 0 : i32
    %c0_i32_1 = arith.constant 0 : i32
    return %c0_i32, %c0_i32_0 : i32, i32
  }
  func.func @transform_11(%arg0: i32) -> (i32, i32) {
    %c0_i32 = arith.constant 0 : i32
    %c0_i32_0 = arith.constant 0 : i32
    %c0_i32_1 = arith.constant 0 : i32
    return %c0_i32, %c0_i32_0 : i32, i32
  }
  func.func @transform_12(%arg0: i32) -> (i32, i32) {
    %c0_i32 = arith.constant 0 : i32
    %c0_i32_0 = arith.constant 0 : i32
    %c0_i32_1 = arith.constant 0 : i32
    return %c0_i32, %c0_i32_0 : i32, i32
  }
  func.func @transform_13(%arg0: i32) -> (i32, i32) {
    %c0_i32 = arith.constant 0 : i32
    %c0_i32_0 = arith.constant 0 : i32
    %c0_i32_1 = arith.constant 0 : i32
    return %c0_i32, %c0_i32_0 : i32, i32
  }
  func.func @transform_14(%arg0: i32) -> (i32, i32) {
    %c0_i32 = arith.constant 0 : i32
    %c0_i32_0 = arith.constant 0 : i32
    %c0_i32_1 = arith.constant 0 : i32
    return %c0_i32, %c0_i32_0 : i32, i32
  }
  func.func @transform_15(%arg0: i32) -> (i32, i32) {
    %c0_i32 = arith.constant 0 : i32
    %c0_i32_0 = arith.constant 0 : i32
    %c0_i32_1 = arith.constant 0 : i32
    return %c0_i32, %c0_i32_0 : i32, i32
  }
  func.func @transform_16(%arg0: i32) -> (i32, i32) {
    %c0_i32 = arith.constant 0 : i32
    %c0_i32_0 = arith.constant 0 : i32
    %c0_i32_1 = arith.constant 0 : i32
    return %c0_i32, %c0_i32_0 : i32, i32
  }
  func.func @transform_17(%arg0: i32) -> (i32, i32) {
    %c0_i32 = arith.constant 0 : i32
    %c0_i32_0 = arith.constant 0 : i32
    %c0_i32_1 = arith.constant 0 : i32
    return %c0_i32, %c0_i32_0 : i32, i32
  }
  func.func @transform_18(%arg0: i32) -> (i32, i32) {
    %c0_i32 = arith.constant 0 : i32
    %c0_i32_0 = arith.constant 0 : i32
    %c0_i32_1 = arith.constant 0 : i32
    return %c0_i32, %c0_i32_0 : i32, i32
  }
  func.func @transform_19(%arg0: i32) -> (i32, i32) {
    %c0_i32 = arith.constant 0 : i32
    %c0_i32_0 = arith.constant 0 : i32
    %c0_i32_1 = arith.constant 0 : i32
    return %c0_i32, %c0_i32_0 : i32, i32
  }
  func.func @transform_20(%arg0: i32) -> (i32, i32) {
    %c0_i32 = arith.constant 0 : i32
    %c0_i32_0 = arith.constant 0 : i32
    return %arg0, %c0_i32 : i32, i32
  }
  func.func @transform_21(%arg0: i32) -> (i32, i32) {
    %c0_i32 = arith.constant 0 : i32
    %c0_i32_0 = arith.constant 0 : i32
    return %arg0, %c0_i32 : i32, i32
  }
  func.func @transform_22(%arg0: i32) -> (i32, i32) {
    %c0_i32 = arith.constant 0 : i32
    %c0_i32_0 = arith.constant 0 : i32
    return %arg0, %c0_i32 : i32, i32
  }
  func.func @transform_23(%arg0: i32) -> (i32, i32) {
    %c0_i32 = arith.constant 0 : i32
    %c0_i32_0 = arith.constant 0 : i32
    return %arg0, %c0_i32 : i32, i32
  }
}

module attributes {stable_mosaic.version = 11 : i64} {
  func.func @_gnn_predict_kernel(%arg0: memref<8x16xf32, #tpu.memory_space<vmem>>, %arg1: memref<8x8xf32, #tpu.memory_space<vmem>>, %arg2: memref<16x128xf32, #tpu.memory_space<vmem>>, %arg3: memref<128x128xf32, #tpu.memory_space<vmem>>, %arg4: memref<128x128xf32, #tpu.memory_space<vmem>>, %arg5: memref<128x128xf32, #tpu.memory_space<vmem>>, %arg6: memref<128x128xf32, #tpu.memory_space<vmem>>, %arg7: memref<1x128xf32, #tpu.memory_space<vmem>>, %arg8: memref<8x128xf32, #tpu.memory_space<vmem>>) attributes {dimension_semantics = [], scalar_prefetch = 0 : i64, scratch_operands = 0 : i64, tpu.core_type = #tpu.core_type<tc>} {
    %c0 = arith.constant 0 : index
    %c0_0 = arith.constant 0 : index
    %0 = vector.load %arg1[%c0, %c0_0] : memref<8x8xf32, #tpu.memory_space<vmem>>, vector<8x8xf32>
    %c0_1 = arith.constant 0 : index
    %c0_2 = arith.constant 0 : index
    %1 = vector.load %arg0[%c0_1, %c0_2] : memref<8x16xf32, #tpu.memory_space<vmem>>, vector<8x16xf32>
    %c0_3 = arith.constant 0 : index
    %c0_4 = arith.constant 0 : index
    %2 = vector.load %arg2[%c0_3, %c0_4] : memref<16x128xf32, #tpu.memory_space<vmem>>, vector<16x128xf32>
    %cst = arith.constant dense<0.000000e+00> : vector<8x128xf32>
    %3 = tpu.matmul %1, %2, %cst {dimension_numbers = #tpu.dot_dimension_numbers<[1], [0], [0], [1], [0, 0, 1, 1], [], []>} : vector<8x16xf32>, vector<16x128xf32>, vector<8x128xf32> -> vector<8x128xf32>
    %cst_5 = arith.constant dense<0.000000e+00> : vector<8x128xf32>
    %4 = tpu.matmul %0, %3, %cst_5 {dimension_numbers = #tpu.dot_dimension_numbers<[1], [0], [0], [1], [0, 0, 1, 1], [], []>} : vector<8x8xf32>, vector<8x128xf32>, vector<8x128xf32> -> vector<8x128xf32>
    %cst_6 = arith.constant 0.000000e+00 : f32
    %5 = vector.broadcast %cst_6 : f32 to vector<8x128xf32>
    %6 = arith.maximumf %4, %5 : vector<8x128xf32>
    %c0_7 = arith.constant 0 : index
    %c0_8 = arith.constant 0 : index
    %7 = vector.load %arg3[%c0_7, %c0_8] : memref<128x128xf32, #tpu.memory_space<vmem>>, vector<128x128xf32>
    %cst_9 = arith.constant dense<0.000000e+00> : vector<8x128xf32>
    %8 = tpu.matmul %6, %7, %cst_9 {dimension_numbers = #tpu.dot_dimension_numbers<[1], [0], [0], [1], [0, 0, 1, 1], [], []>} : vector<8x128xf32>, vector<128x128xf32>, vector<8x128xf32> -> vector<8x128xf32>
    %cst_10 = arith.constant dense<0.000000e+00> : vector<8x128xf32>
    %9 = tpu.matmul %0, %8, %cst_10 {dimension_numbers = #tpu.dot_dimension_numbers<[1], [0], [0], [1], [0, 0, 1, 1], [], []>} : vector<8x8xf32>, vector<8x128xf32>, vector<8x128xf32> -> vector<8x128xf32>
    %cst_11 = arith.constant 0.000000e+00 : f32
    %10 = vector.broadcast %cst_11 : f32 to vector<8x128xf32>
    %11 = arith.maximumf %9, %10 : vector<8x128xf32>
    %c0_12 = arith.constant 0 : index
    %c0_13 = arith.constant 0 : index
    %12 = vector.load %arg4[%c0_12, %c0_13] : memref<128x128xf32, #tpu.memory_space<vmem>>, vector<128x128xf32>
    %cst_14 = arith.constant dense<0.000000e+00> : vector<8x128xf32>
    %13 = tpu.matmul %11, %12, %cst_14 {dimension_numbers = #tpu.dot_dimension_numbers<[1], [0], [0], [1], [0, 0, 1, 1], [], []>} : vector<8x128xf32>, vector<128x128xf32>, vector<8x128xf32> -> vector<8x128xf32>
    %cst_15 = arith.constant dense<0.000000e+00> : vector<8x128xf32>
    %14 = tpu.matmul %0, %13, %cst_15 {dimension_numbers = #tpu.dot_dimension_numbers<[1], [0], [0], [1], [0, 0, 1, 1], [], []>} : vector<8x8xf32>, vector<8x128xf32>, vector<8x128xf32> -> vector<8x128xf32>
    %c0_16 = arith.constant 0 : index
    %c0_17 = arith.constant 0 : index
    %15 = vector.load %arg5[%c0_16, %c0_17] : memref<128x128xf32, #tpu.memory_space<vmem>>, vector<128x128xf32>
    %cst_18 = arith.constant dense<0.000000e+00> : vector<8x128xf32>
    %16 = tpu.matmul %14, %15, %cst_18 {dimension_numbers = #tpu.dot_dimension_numbers<[1], [0], [0], [1], [0, 0, 1, 1], [], []>} : vector<8x128xf32>, vector<128x128xf32>, vector<8x128xf32> -> vector<8x128xf32>
    %cst_19 = arith.constant dense<0.000000e+00> : vector<8x128xf32>
    %17 = tpu.matmul %0, %16, %cst_19 {dimension_numbers = #tpu.dot_dimension_numbers<[1], [0], [0], [1], [0, 0, 1, 1], [], []>} : vector<8x8xf32>, vector<8x128xf32>, vector<8x128xf32> -> vector<8x128xf32>
    %c0_20 = arith.constant 0 : index
    %c0_21 = arith.constant 0 : index
    %18 = vector.load %arg6[%c0_20, %c0_21] : memref<128x128xf32, #tpu.memory_space<vmem>>, vector<128x128xf32>
    %cst_22 = arith.constant dense<0.000000e+00> : vector<8x128xf32>
    %19 = tpu.matmul %17, %18, %cst_22 {dimension_numbers = #tpu.dot_dimension_numbers<[1], [0], [0], [1], [0, 0, 1, 1], [], []>} : vector<8x128xf32>, vector<128x128xf32>, vector<8x128xf32> -> vector<8x128xf32>
    %c0_23 = arith.constant 0 : index
    %c0_24 = arith.constant 0 : index
    %20 = vector.load %arg7[%c0_23, %c0_24] : memref<1x128xf32, #tpu.memory_space<vmem>>, vector<1x128xf32>
    %21 = vector.broadcast %20 : vector<1x128xf32> to vector<8x128xf32>
    %22 = arith.addf %19, %21 : vector<8x128xf32>
    %cst_25 = arith.constant dense<0xFF800000> : vector<8xf32>
    %23 = vector.multi_reduction <maximumf>, %22, %cst_25 [1] : vector<8x128xf32> to vector<8xf32>
    %24 = vector.shape_cast %23 : vector<8xf32> to vector<8x1xf32>
    %25 = vector.broadcast %24 : vector<8x1xf32> to vector<8x128xf32>
    %26 = arith.subf %22, %25 : vector<8x128xf32>
    %27 = math.exp %26 : vector<8x128xf32>
    %cst_26 = arith.constant dense<0.000000e+00> : vector<8xf32>
    %28 = vector.multi_reduction <add>, %27, %cst_26 [1] : vector<8x128xf32> to vector<8xf32>
    %29 = vector.shape_cast %28 : vector<8xf32> to vector<8x1xf32>
    %30 = tpu.reciprocal %29 {approx = true} : vector<8x1xf32> -> vector<8x1xf32>
    %31 = vector.broadcast %30 : vector<8x1xf32> to vector<8x128xf32>
    %32 = arith.mulf %27, %31 : vector<8x128xf32>
    %c0_27 = arith.constant 0 : index
    %c0_28 = arith.constant 0 : index
    %33 = vector.load %arg8[%c0_27, %c0_28] : memref<8x128xf32, #tpu.memory_space<vmem>>, vector<8x128xf32>
    tpu.vector_store %arg8[%c0_27, %c0_28], %32 {strides = array<i32>} : memref<8x128xf32, #tpu.memory_space<vmem>>, vector<8x128xf32>,
    return
  }
}

</mosaic_0001>

<bundles_post_ra>
// kernel: sdcn_forward.3
= control target key start
LH: loop header
LB: loop body
LE: loop exit
PB: predicated region body
PF: predicated region fallthrough
CT: control target
= control target key end

     0   :  { %v1016_v0 = vmov 0.0   ;;  %vm1017_vm0 = vmmov 0   ;;  %vm33_vm1 = vcmask 130048   ;;  %vm107_vm2 = vcmask 64512   ;;  %s1371_s2 = inlined_call_operand.vmem [shape: f32[16,128], index: 2, kind: input, shape index: {}]   ;;  %s1372_s0 = inlined_call_operand.vmem [shape: f32[8,16], index: 0, kind: input, shape index: {}]   ;;  %s1373_s1 = inlined_call_operand.vmem [shape: f32[8,8], index: 1, kind: input, shape index: {}]   ;;  %s1374_s3 = inlined_call_operand.vmem [shape: f32[128,128], index: 3, kind: input, shape index: {}]   ;;  %s1375_s4 = inlined_call_operand.vmem [shape: f32[128,128], index: 4, kind: input, shape index: {}]   ;;  %s1376_s5 = inlined_call_operand.vmem [shape: f32[128,128], index: 5, kind: input, shape index: {}]   ;;  %s1377_s6 = inlined_call_operand.vmem [shape: f32[128,128], index: 6, kind: input, shape index: {}]   ;;  %s1378_s7 = inlined_call_operand.vmem [shape: f32[1,128], index: 7, kind: input, shape index: {}]   ;;  %s1379_s8 = inlined_call_operand.vmem [shape: f32[8,128], index: 8, kind: output, shape index: {}]  }
   0x1   :  { %843 = vmatprep.subr.mxu0 %v1016_v0  ;;  %v32_v1 = vld [vmem:[%s1371_s2 + $0x8] sm:$0xff]  ;;  %v31_v2 = vld [vmem:[%s1371_s2] sm:$0xff]  ;;  %847 = vmatprep.mubr.msk.f32.mxu0 %vm1017_vm0, %v1016_v0  ;;  %v197_v6 = vld [vmem:[%s1374_s3 + $0x78] sm:$0xff] }
   0x2   :  { %844 = vmatpush3.msra.mxu0 %v32_v1  ;;  %v30_v3 = vld [vmem:[%s1372_s0] sm:$0xff]  ;;  %850 = vmatprep.subr.mxu1 %v1016_v0  ;;  %v196_v8 = vld [vmem:[%s1374_s3 + $0x70] sm:$0xff]  ;;  %v195_v9 = vld [vmem:[%s1374_s3 + $0x68] sm:$0xff] }
   0x3   :  { %845 = vmatprep.subr.mxu0 %v1016_v0  ;;  %852 = vmatprep.mubr.msk.f32.mxu1 %vm1017_vm0, %v1016_v0  ;;  %v1085_v4 = vld [vmem:[%s1373_s1] sm:$0xff]  ;;  %v193_v11 = vld [vmem:[%s1374_s3 + $0x58] sm:$0xff]  ;;  %v192_v12 = vld [vmem:[%s1374_s3 + $0x50] sm:$0xff] }
   0x4   :  { %846 = vmatpush3.msra.mxu0 %v31_v2  ;;  %v194_v10 = vld [vmem:[%s1374_s3 + $0x60] sm:$0xff]  ;;  %v191_v13 = vld [vmem:[%s1374_s3 + $0x48] sm:$0xff]  ;;  %v189_v15 = vld [vmem:[%s1374_s3 + $0x38] sm:$0xff] }
   0x5   :  { %848 = vmatmul.mubr.msk.f32.vlgmr.msra.gmra.mxu0 %vm33_vm1, %v30_v3  ;;  %895 = vmatprep.subr.mxu0 %v1016_v0  ;;  %v190_v14 = vld [vmem:[%s1374_s3 + $0x40] sm:$0xff]  ;;  %v188_v16 = vld [vmem:[%s1374_s3 + $0x30] sm:$0xff]  ;;  %v187_v17 = vld [vmem:[%s1374_s3 + $0x28] sm:$0xff] }
   0x6   :  { %927 = vmatprep.mubr.msk.f32.mxu0 %vm1017_vm0, %v1016_v0  ;;  %v186_v18 = vld [vmem:[%s1374_s3 + $0x20] sm:$0xff]  ;;  %v185_v19 = vld [vmem:[%s1374_s3 + $0x18] sm:$0xff]  ;;  %v184_v20 = vld [vmem:[%s1374_s3 + $0x10] sm:$0xff] }
   0x7   :  { %v183_v21 = vld [vmem:[%s1374_s3 + $0x8] sm:$0xff]  ;;  %v182_v22 = vld [vmem:[%s1374_s3] sm:$0xff]  ;;  %v354_v26 = vld [vmem:[%s1375_s4 + $0x78] sm:$0xff] }
   0x8   :  { %v353_v27 = vld [vmem:[%s1375_s4 + $0x70] sm:$0xff]  ;;  %896 = vmatpush3.msra.mxu0 %v354_v26  ;;  %v352_v28 = vld [vmem:[%s1375_s4 + $0x68] sm:$0xff]  ;;  %v351_v29 = vld [vmem:[%s1375_s4 + $0x60] sm:$0xff] }
   0x9   :  { %897 = vmatprep.subr.mxu0 %v1016_v0  ;;  %v350_v30 = vld [vmem:[%s1375_s4 + $0x58] sm:$0xff]  ;;  %v349_v31 = vld [vmem:[%s1375_s4 + $0x50] sm:$0xff]  ;;  %v348_v32 = vld [vmem:[%s1375_s4 + $0x48] sm:$0xff] }
   0xa   :  { %898 = vmatpush3.msra.mxu0 %v353_v27  ;;  %v347_v33 = vld [vmem:[%s1375_s4 + $0x40] sm:$0xff]  ;;  %v346_v34 = vld [vmem:[%s1375_s4 + $0x38] sm:$0xff]  ;;  %v345_v35 = vld [vmem:[%s1375_s4 + $0x30] sm:$0xff] }
   0xb   :  { %899 = vmatprep.subr.mxu0 %v1016_v0  ;;  %v344_v36 = vld [vmem:[%s1375_s4 + $0x28] sm:$0xff]  ;;  %v343_v37 = vld [vmem:[%s1375_s4 + $0x20] sm:$0xff]  ;;  %v342_v38 = vld [vmem:[%s1375_s4 + $0x18] sm:$0xff] }
   0xc   :  { %900 = vmatpush3.msra.mxu0 %v352_v28  ;;  %v341_v39 = vld [vmem:[%s1375_s4 + $0x10] sm:$0xff]  ;;  %v340_v42 = vld [vmem:[%s1375_s4 + $0x8] sm:$0xff]  ;;  %v339_v43 = vld [vmem:[%s1375_s4] sm:$0xff] }
   0xd   :  { %901 = vmatprep.subr.mxu0 %v1016_v0  ;;  %v510_v48 = vld [vmem:[%s1376_s5 + $0x78] sm:$0xff]  ;;  %v509_v50 = vld [vmem:[%s1376_s5 + $0x70] sm:$0xff]  ;;  %v508_v51 = vld [vmem:[%s1376_s5 + $0x68] sm:$0xff] }
   0xe   :  { %902 = vmatpush3.msra.mxu0 %v351_v29  ;;  %v507_v52 = vld [vmem:[%s1376_s5 + $0x60] sm:$0xff]  ;;  %v506_v53 = vld [vmem:[%s1376_s5 + $0x58] sm:$0xff]  ;;  %v505_v54 = vld [vmem:[%s1376_s5 + $0x50] sm:$0xff] }
   0xf   :  { %903 = vmatprep.subr.mxu0 %v1016_v0  ;;  %v504_v55 = vld [vmem:[%s1376_s5 + $0x48] sm:$0xff]  ;;  %v503_v56 = vld [vmem:[%s1376_s5 + $0x40] sm:$0xff]  ;;  %v502_v57 = vld [vmem:[%s1376_s5 + $0x38] sm:$0xff] }
  0x10   :  { %904 = vmatpush3.msra.mxu0 %v350_v30  ;;  %v501_v58 = vld [vmem:[%s1376_s5 + $0x30] sm:$0xff]  ;;  %v500_v59 = vld [vmem:[%s1376_s5 + $0x28] sm:$0xff]  ;;  %v499_v60 = vld [vmem:[%s1376_s5 + $0x20] sm:$0xff] }
  0x11   :  { %905 = vmatprep.subr.mxu0 %v1016_v0  ;;  %v498_v61 = vld [vmem:[%s1376_s5 + $0x18] sm:$0xff]  ;;  %v497_v62 = vld [vmem:[%s1376_s5 + $0x10] sm:$0xff]  ;;  %v496_v63 = vld [vmem:[%s1376_s5 + $0x8] sm:$0xff] }
  0x12   :  { %906 = vmatpush3.msra.mxu0 %v349_v31  ;;  %v495_v1 = vld [vmem:[%s1376_s5] sm:$0xff] }
  0x13   :  { %907 = vmatprep.subr.mxu0 %v1016_v0 }
  0x14   :  { %908 = vmatpush3.msra.mxu0 %v348_v32 }
  0x15   :  { %909 = vmatprep.subr.mxu0 %v1016_v0 }
  0x16   :  { %910 = vmatpush3.msra.mxu0 %v347_v33 }
  0x17   :  { %911 = vmatprep.subr.mxu0 %v1016_v0 }
  0x18   :  { %912 = vmatpush3.msra.mxu0 %v346_v34 }
  0x19   :  { %913 = vmatprep.subr.mxu0 %v1016_v0 }
  0x1a   :  { %914 = vmatpush3.msra.mxu0 %v345_v35 }
  0x1b   :  { %915 = vmatprep.subr.mxu0 %v1016_v0 }
  0x1c   :  { %916 = vmatpush3.msra.mxu0 %v344_v36 }
  0x1d   :  { %917 = vmatprep.subr.mxu0 %v1016_v0 }
  0x1e   :  { %918 = vmatpush3.msra.mxu0 %v343_v37 }
  0x1f   :  { %919 = vmatprep.subr.mxu0 %v1016_v0 }
  0x20   :  { %920 = vmatpush3.msra.mxu0 %v342_v38 }
  0x21   :  { %921 = vmatprep.subr.mxu0 %v1016_v0 }
  0x22   :  { %922 = vmatpush3.msra.mxu0 %v341_v39 }
  0x23   :  { %923 = vmatprep.subr.mxu0 %v1016_v0 }
  0x24   :  { %924 = vmatpush3.msra.mxu0 %v340_v42 }
  0x25   :  { %925 = vmatprep.subr.mxu0 %v1016_v0 }
  0x26   :  { %926 = vmatpush3.msra.mxu0 %v339_v43 }
  0x27   :  { %970 = vmatprep.subr.mxu0 %v1016_v0 }
  0xc5   :  { %v103_v5 = vpop.f32.mrf.mxu0 }
  0xc6   :  { %851 = vmatpush3.msra.mxu1 %v103_v5 }
  0xc7   :  { %v849_v7 = vpop.f32.mrf.mxu0  ;;  %853 = vmatmul.mubr.msk.f32.vlgmr.msra.gmra.mxu1 %vm107_vm2, %v1085_v4  ;;  %855 = vmatprep.subr.mxu1 %v1016_v0 }
  0xc8   :  { %856 = vmatpush3.msra.mxu1 %v197_v6  ;;  %887 = vmatprep.mubr.msk.f32.mxu1 %vm1017_vm0, %v1016_v0  ;;  %v666_v6 = vld [vmem:[%s1377_s6 + $0x78] sm:$0xff] }
  0xc9   :  { %857 = vmatprep.subr.mxu1 %v1016_v0 }
  0xca   :  { %858 = vmatpush3.msra.mxu1 %v196_v8  ;;  %v665_v8 = vld [vmem:[%s1377_s6 + $0x70] sm:$0xff] }
  0xcb   :  { %859 = vmatprep.subr.mxu1 %v1016_v0 }
  0xcc   :  { %860 = vmatpush3.msra.mxu1 %v195_v9  ;;  %v664_v9 = vld [vmem:[%s1377_s6 + $0x68] sm:$0xff] }
  0xcd   :  { %861 = vmatprep.subr.mxu1 %v1016_v0 }
  0xce   :  { %862 = vmatpush3.msra.mxu1 %v194_v10  ;;  %v662_v10 = vld [vmem:[%s1377_s6 + $0x58] sm:$0xff] }
  0xcf   :  { %863 = vmatprep.subr.mxu1 %v1016_v0 }
  0xd0   :  { %864 = vmatpush3.msra.mxu1 %v193_v11  ;;  %v661_v11 = vld [vmem:[%s1377_s6 + $0x50] sm:$0xff] }
  0xd1   :  { %865 = vmatprep.subr.mxu1 %v1016_v0 }
  0xd2   :  { %866 = vmatpush3.msra.mxu1 %v192_v12  ;;  %v660_v12 = vld [vmem:[%s1377_s6 + $0x48] sm:$0xff] }
  0xd3   :  { %867 = vmatprep.subr.mxu1 %v1016_v0 }
  0xd4   :  { %868 = vmatpush3.msra.mxu1 %v191_v13  ;;  %v659_v13 = vld [vmem:[%s1377_s6 + $0x40] sm:$0xff] }
  0xd5   :  { %869 = vmatprep.subr.mxu1 %v1016_v0 }
  0xd6   :  { %870 = vmatpush3.msra.mxu1 %v190_v14  ;;  %v658_v14 = vld [vmem:[%s1377_s6 + $0x38] sm:$0xff] }
  0xd7   :  { %871 = vmatprep.subr.mxu1 %v1016_v0 }
  0xd8   :  { %872 = vmatpush3.msra.mxu1 %v189_v15  ;;  %v657_v15 = vld [vmem:[%s1377_s6 + $0x30] sm:$0xff] }
  0xd9   :  { %873 = vmatprep.subr.mxu1 %v1016_v0 }
  0xda   :  { %874 = vmatpush3.msra.mxu1 %v188_v16  ;;  %v656_v16 = vld [vmem:[%s1377_s6 + $0x28] sm:$0xff] }
  0xdb   :  { %875 = vmatprep.subr.mxu1 %v1016_v0 }
  0xdc   :  { %876 = vmatpush3.msra.mxu1 %v187_v17  ;;  %v655_v17 = vld [vmem:[%s1377_s6 + $0x20] sm:$0xff] }
  0xdd   :  { %877 = vmatprep.subr.mxu1 %v1016_v0 }
  0xde   :  { %878 = vmatpush3.msra.mxu1 %v186_v18  ;;  %v654_v18 = vld [vmem:[%s1377_s6 + $0x18] sm:$0xff] }
  0xdf   :  { %879 = vmatprep.subr.mxu1 %v1016_v0 }
  0xe0   :  { %880 = vmatpush3.msra.mxu1 %v185_v19  ;;  %v653_v19 = vld [vmem:[%s1377_s6 + $0x10] sm:$0xff] }
  0xe1   :  { %881 = vmatprep.subr.mxu1 %v1016_v0 }
  0xe2   :  { %882 = vmatpush3.msra.mxu1 %v184_v20  ;;  %v652_v20 = vld [vmem:[%s1377_s6 + $0x8] sm:$0xff] }
  0xe3   :  { %883 = vmatprep.subr.mxu1 %v1016_v0 }
  0xe4   :  { %884 = vmatpush3.msra.mxu1 %v183_v21  ;;  %v651_v21 = vld [vmem:[%s1377_s6] sm:$0xff] }
  0xe5   :  { %885 = vmatprep.subr.mxu1 %v1016_v0 }
  0xe6   :  { %886 = vmatpush3.msra.mxu1 %v182_v22 }
  0xe7   :  { %890 = vmatprep.subr.mxu1 %v1016_v0 }
 0x187   :  { %v177_v23 = vpop.f32.mrf.mxu1 }
 0x188   :  { %v181_v24 = vmax.f32 %v177_v23, 0.0 }
 0x189   :  { %v854_v25 = vpop.f32.mrf.mxu1 }
 0x18a   :  { %888 = vmatmul.mubr.f32.vlgmr.msra.gmra.mxu1 %v181_v24  ;;  %v763_v24 = vld [vmem:[%s1378_s7] ss:$0 sm:$0xff] }
 0x18b   :  { %892 = vmatprep.mubr.msk.f32.mxu1 %vm1017_vm0, %v1016_v0 }
 0x24a   :  { %v264_v40 = vpop.f32.mrf.mxu1 }
 0x24b   :  { %891 = vmatpush3.msra.mxu1 %v264_v40 }
 0x24c   :  { %v889_v41 = vpop.f32.mrf.mxu1  ;;  %893 = vmatmul.mubr.msk.f32.vlgmr.msra.gmra.mxu1 %vm107_vm2, %v1085_v4  ;;  %930 = vmatprep.subr.mxu1 %v1016_v0 }
 0x24d   :  { %932 = vmatprep.mubr.msk.f32.mxu1 %vm1017_vm0, %v1016_v0 }
 0x30c   :  { %v334_v44 = vpop.f32.mrf.mxu1 }
 0x30d   :  { %v338_v45 = vmax.f32 %v334_v44, 0.0 }
 0x30e   :  { %v894_v46 = vpop.f32.mrf.mxu1 }
 0x30f   :  { %928 = vmatmul.mubr.f32.vlgmr.msra.gmra.mxu0 %v338_v45 }
 0x310   :  { %972 = vmatprep.mubr.msk.f32.mxu0 %vm1017_vm0, %v1016_v0 }
 0x3cf   :  { %v421_v47 = vpop.f32.mrf.mxu0 }
 0x3d0   :  { %931 = vmatpush3.msra.mxu1 %v421_v47 }
 0x3d1   :  { %v929_v49 = vpop.f32.mrf.mxu0  ;;  %933 = vmatmul.mubr.msk.f32.vlgmr.msra.gmra.mxu1 %vm107_vm2, %v1085_v4  ;;  %935 = vmatprep.subr.mxu1 %v1016_v0 }
 0x3d2   :  { %936 = vmatpush3.msra.mxu1 %v510_v48  ;;  %967 = vmatprep.mubr.msk.f32.mxu1 %vm1017_vm0, %v1016_v0 }
 0x3d3   :  { %937 = vmatprep.subr.mxu1 %v1016_v0 }
 0x3d4   :  { %938 = vmatpush3.msra.mxu1 %v509_v50 }
 0x3d5   :  { %939 = vmatprep.subr.mxu1 %v1016_v0 }
 0x3d6   :  { %940 = vmatpush3.msra.mxu1 %v508_v51 }
 0x3d7   :  { %941 = vmatprep.subr.mxu1 %v1016_v0 }
 0x3d8   :  { %942 = vmatpush3.msra.mxu1 %v507_v52 }
 0x3d9   :  { %943 = vmatprep.subr.mxu1 %v1016_v0 }
 0x3da   :  { %944 = vmatpush3.msra.mxu1 %v506_v53 }
 0x3db   :  { %945 = vmatprep.subr.mxu1 %v1016_v0 }
 0x3dc   :  { %946 = vmatpush3.msra.mxu1 %v505_v54 }
 0x3dd   :  { %947 = vmatprep.subr.mxu1 %v1016_v0 }
 0x3de   :  { %948 = vmatpush3.msra.mxu1 %v504_v55 }
 0x3df   :  { %949 = vmatprep.subr.mxu1 %v1016_v0 }
 0x3e0   :  { %950 = vmatpush3.msra.mxu1 %v503_v56 }
 0x3e1   :  { %951 = vmatprep.subr.mxu1 %v1016_v0 }
 0x3e2   :  { %952 = vmatpush3.msra.mxu1 %v502_v57 }
 0x3e3   :  { %953 = vmatprep.subr.mxu1 %v1016_v0 }
 0x3e4   :  { %954 = vmatpush3.msra.mxu1 %v501_v58 }
 0x3e5   :  { %955 = vmatprep.subr.mxu1 %v1016_v0 }
 0x3e6   :  { %956 = vmatpush3.msra.mxu1 %v500_v59 }
 0x3e7   :  { %957 = vmatprep.subr.mxu1 %v1016_v0 }
 0x3e8   :  { %958 = vmatpush3.msra.mxu1 %v499_v60 }
 0x3e9   :  { %959 = vmatprep.subr.mxu1 %v1016_v0 }
 0x3ea   :  { %960 = vmatpush3.msra.mxu1 %v498_v61 }
 0x3eb   :  { %961 = vmatprep.subr.mxu1 %v1016_v0 }
 0x3ec   :  { %962 = vmatpush3.msra.mxu1 %v497_v62 }
 0x3ed   :  { %963 = vmatprep.subr.mxu1 %v1016_v0 }
 0x3ee   :  { %964 = vmatpush3.msra.mxu1 %v496_v63 }
 0x3ef   :  { %965 = vmatprep.subr.mxu1 %v1016_v0 }
 0x3f0   :  { %966 = vmatpush3.msra.mxu1 %v495_v1 }
 0x491   :  { %v491_v2 = vpop.f32.mrf.mxu1 }
 0x492   :  { %968 = vmatmul.mubr.f32.vlgmr.msra.gmra.mxu1 %v491_v2 }
 0x493   :  { %v934_v3 = vpop.f32.mrf.mxu1 }
 0x552   :  { %v577_v5 = vpop.f32.mrf.mxu1 }
 0x553   :  { %971 = vmatpush3.msra.mxu0 %v577_v5 }
 0x554   :  { %v969_v7 = vpop.f32.mrf.mxu1  ;;  %973 = vmatmul.mubr.msk.f32.vlgmr.msra.gmra.mxu0 %vm107_vm2, %v1085_v4  ;;  %975 = vmatprep.subr.mxu0 %v1016_v0  ;;  %v663_v4 = vld [vmem:[%s1377_s6 + $0x60] sm:$0xff] }
 0x555   :  { %976 = vmatpush3.msra.mxu0 %v666_v6  ;;  %1007 = vmatprep.mubr.msk.f32.mxu0 %vm1017_vm0, %v1016_v0 }
 0x556   :  { %977 = vmatprep.subr.mxu0 %v1016_v0 }
 0x557   :  { %978 = vmatpush3.msra.mxu0 %v665_v8 }
 0x558   :  { %979 = vmatprep.subr.mxu0 %v1016_v0 }
 0x559   :  { %980 = vmatpush3.msra.mxu0 %v664_v9 }
 0x55a   :  { %981 = vmatprep.subr.mxu0 %v1016_v0 }
 0x55b   :  { %982 = vmatpush3.msra.mxu0 %v663_v4 }
 0x55c   :  { %983 = vmatprep.subr.mxu0 %v1016_v0 }
 0x55d   :  { %984 = vmatpush3.msra.mxu0 %v662_v10 }
 0x55e   :  { %985 = vmatprep.subr.mxu0 %v1016_v0 }
 0x55f   :  { %986 = vmatpush3.msra.mxu0 %v661_v11 }
 0x560   :  { %987 = vmatprep.subr.mxu0 %v1016_v0 }
 0x561   :  { %988 = vmatpush3.msra.mxu0 %v660_v12 }
 0x562   :  { %989 = vmatprep.subr.mxu0 %v1016_v0 }
 0x563   :  { %990 = vmatpush3.msra.mxu0 %v659_v13 }
 0x564   :  { %991 = vmatprep.subr.mxu0 %v1016_v0 }
 0x565   :  { %992 = vmatpush3.msra.mxu0 %v658_v14 }
 0x566   :  { %993 = vmatprep.subr.mxu0 %v1016_v0 }
 0x567   :  { %994 = vmatpush3.msra.mxu0 %v657_v15 }
 0x568   :  { %995 = vmatprep.subr.mxu0 %v1016_v0 }
 0x569   :  { %996 = vmatpush3.msra.mxu0 %v656_v16 }
 0x56a   :  { %997 = vmatprep.subr.mxu0 %v1016_v0 }
 0x56b   :  { %998 = vmatpush3.msra.mxu0 %v655_v17 }
 0x56c   :  { %999 = vmatprep.subr.mxu0 %v1016_v0 }
 0x56d   :  { %1000 = vmatpush3.msra.mxu0 %v654_v18 }
 0x56e   :  { %1001 = vmatprep.subr.mxu0 %v1016_v0 }
 0x56f   :  { %1002 = vmatpush3.msra.mxu0 %v653_v19 }
 0x570   :  { %1003 = vmatprep.subr.mxu0 %v1016_v0 }
 0x571   :  { %1004 = vmatpush3.msra.mxu0 %v652_v20 }
 0x572   :  { %1005 = vmatprep.subr.mxu0 %v1016_v0 }
 0x573   :  { %1006 = vmatpush3.msra.mxu0 %v651_v21 }
 0x614   :  { %v647_v22 = vpop.f32.mrf.mxu0 }
 0x615   :  { %1008 = vmatmul.mubr.f32.vlgmr.msra.gmra.mxu0 %v647_v22 }
 0x616   :  { %v974_v23 = vpop.f32.mrf.mxu0 }
 0x6d5   :  { %v740_v25 = vpop.f32.mrf.mxu0 }
 0x6d6   :  { %v741_v26 = vadd.f32 %v763_v24, %v740_v25 }
 0x6d7   :  { %v1009_v27 = vpop.f32.mrf.mxu0 }
 0x6d8   :  { %744 = vmax.xlane.f32.xlu0 %v741_v26 }
 0x761   :  { %v745_v28 = vpop.xlane.xlu0 %744 }
 0x762   :  { %v746_v29 = vsub.f32 %v741_v26, %v745_v28 }
 0x764   :  { %v747_v30 = vmul.f32 1.442695, %v746_v29 }
 0x766   :  { %1012 = vpow2.f32 %v747_v30 }
 0x773   :  { %v1013_v0 = vpop.eup %1012 }
 0x774   :  { %749 = vadd.xlane.f32.xlu0 %v1013_v0 }
 0x7fd   :  { %v750_v31 = vpop.xlane.xlu0 %749 }
 0x7fe   :  { %1014 = vrcp.f32 %v750_v31 }
 0x80b   :  { %v1015_v32 = vpop.eup %1014 }
 0x80c   :  { %v752_v33 = vmul.f32 %v1015_v32, %v1013_v0 }
 0x80e   :  { %753 = vst [vmem:[%s1379_s8] sm:$0xff] %v752_v33 }

// kernel: sdcn_forward.2
= control target key start
LH: loop header
LB: loop body
LE: loop exit
PB: predicated region body
PF: predicated region fallthrough
CT: control target
= control target key end

     0   :  { %s6460_s0 = inlined_call_operand.vmem [shape: f32[8,64], index: 0, kind: input, shape index: {}]   ;;  %s6461_s1 = inlined_call_operand.vmem [shape: f32[8,128], index: 1, kind: input, shape index: {}]   ;;  %s6462_s2 = inlined_call_operand.vmem [shape: f32[64,16], index: 2, kind: input, shape index: {}]   ;;  %s6463_s3 = inlined_call_operand.vmem [shape: f32[1,16], index: 3, kind: input, shape index: {}]   ;;  %s6464_s4 = inlined_call_operand.vmem [shape: f32[16,512], index: 4, kind: input, shape index: {}]   ;;  %s6465_s5 = inlined_call_operand.vmem [shape: f32[1,512], index: 5, kind: input, shape index: {}]   ;;  %s6466_s6 = inlined_call_operand.vmem [shape: f32[512,512], index: 6, kind: input, shape index: {}]   ;;  %s6467_s7 = inlined_call_operand.vmem [shape: f32[1,512], index: 7, kind: input, shape index: {}]   ;;  %s6468_s8 = inlined_call_operand.vmem [shape: f32[512,512], index: 8, kind: input, shape index: {}]   ;;  %s6469_s9 = inlined_call_operand.vmem [shape: f32[1,512], index: 9, kind: input, shape index: {}]   ;;  %s6470_s10 = inlined_call_operand.vmem [shape: f32[512,256], index: 10, kind: input, shape index: {}]   ;;  %s6471_s11 = inlined_call_operand.vmem [shape: f32[1,256], index: 11, kind: input, shape index: {}]   ;;  %s6472_s12 = inlined_call_operand.vmem [shape: f32[128,512], index: 12, kind: input, shape index: {}]   ;;  %s6473_s13 = inlined_call_operand.vmem [shape: f32[1,512], index: 13, kind: input, shape index: {}]   ;;  %s6474_s14 = inlined_call_operand.vmem [shape: f32[512,512], index: 14, kind: input, shape index: {}]   ;;  %s6475_s15 = inlined_call_operand.vmem [shape: f32[1,512], index: 15, kind: input, shape index: {}]   ;;  %s6476_s16 = inlined_call_operand.vmem [shape: f32[512,16], index: 16, kind: input, shape index: {}]   ;;  %s6477_s17 = inlined_call_operand.vmem [shape: f32[1,16], index: 17, kind: input, shape index: {}]   ;;  %s6478_s18 = inlined_call_operand.vmem [shape: f32[16,64], index: 18, kind: input, shape index: {}]   ;;  %s6479_s19 = inlined_call_operand.vmem [shape: f32[1,64], index: 19, kind: input, shape index: {}]   ;;  %s6480_s20 = inlined_call_operand.vmem [shape: f32[8,16], index: 20, kind: output, shape index: {0}]   ;;  %s6481_s21 = inlined_call_operand.hbm [shape: f32[8,128], index: 21, kind: output, shape index: {1}]   ;;  %s6482_s22 = inlined_call_operand.hbm [shape: f32[8,128], index: 22, kind: output, shape index: {2}]   ;;  %s6483_s23 = inlined_call_operand.vmem [shape: f32[8,64], index: 23, kind: output, shape index: {3}]  }
   0x1   :  { %6487 = sst [smem:[#allocation8_spill]] %s6460_s0 }
   0x2   :  { %6488 = sst [smem:[#allocation9_spill]] %s6461_s1 }
   0x3   :  { %6489 = sst [smem:[#allocation10_spill]] %s6462_s2 }
   0x4   :  { %6490 = sst [smem:[#allocation11_spill]] %s6463_s3 }
   0x5   :  { %6491 = sst [smem:[#allocation12_spill]] %s6464_s4 }
   0x6   :  { %6492 = sst [smem:[#allocation13_spill]] %s6465_s5 }
   0x7   :  { %6493 = sst [smem:[#allocation14_spill]] %s6466_s6 }
   0x8   :  { %6494 = sst [smem:[#allocation15_spill]] %s6467_s7 }
   0x9   :  { %29 = vsyncpa [#allocation3], 0  ;;  %s6495_s24 = sld [smem:[#allocation10_spill]]  ;;  %v3063_v1 = vmov 0.0   ;;  %vm3064_vm0 = vmmov 0  }
   0xa   :  { %2985 = vmatprep.subr.mxu0 %v3063_v1  ;;  %3001 = vmatprep.mubr.msk.f32.mxu0 %vm3064_vm0, %v3063_v1  ;;  %s6496_s27 = sld [smem:[#allocation12_spill]] }
   0xb   :  { %260 = vmatprep.mubr.f32.mxu1 %v3063_v1 }
   0xf   :  { %v79_v0 = vld [vmem:[%s6495_s24 + $0x38] sm:$0xff]  ;;  %v78_v2 = vld [vmem:[%s6495_s24 + $0x30] sm:$0xff]  ;;  %v77_v3 = vld [vmem:[%s6495_s24 + $0x28] sm:$0xff] }
  0x10   :  { %2986 = vmatpush3.msra.mxu0 %v79_v0  ;;  %v168_v4 = vld [vmem:[%s6496_s27 + $0x28] sm:$0xff]  ;;  %v167_v5 = vld [vmem:[%s6496_s27 + $0x20] sm:$0xff] }
  0x11   :  { %2987 = vmatprep.subr.mxu0 %v3063_v1  ;;  %224 = vmatprep.subr.mxu1 %v168_v4 }
  0x12   :  { %2988 = vmatpush3.msra.mxu0 %v78_v2 }
  0x13   :  { %30 = vsyncpa [#allocation5], 0  ;;  %2989 = vmatprep.subr.mxu0 %v3063_v1  ;;  %v76_v6 = vld [vmem:[%s6495_s24 + $0x20] sm:$0xff]  ;;  %225 = vmatpush1.msra.mxu1 %v167_v5  ;;  %v75_v7 = vld [vmem:[%s6495_s24 + $0x18] sm:$0xff]  ;;  %s6497_s28 = sld [smem:[#allocation8_spill]]  ;;  %vm87_vm1 = vcmask 523264  }
  0x14   :  { %2990 = vmatpush3.msra.mxu0 %v77_v3  ;;  %v74_v8 = vld [vmem:[%s6495_s24 + $0x10] sm:$0xff]  ;;  %v73_v9 = vld [vmem:[%s6495_s24 + $0x8] sm:$0xff]  ;;  %v72_v10 = vld [vmem:[%s6495_s24] sm:$0xff]  ;;  %s6498_s1 = sld [smem:[#allocation14_spill]]  ;;  %vm161_vm2 = vcmask 130048   ;;  %s3066_s4 = smov [#allocation4]  }
  0x15   :  { %2991 = vmatprep.subr.mxu0 %v3063_v1  ;;  %v164_v12 = vld [vmem:[%s6496_s27 + $0x8] sm:$0xff]  ;;  %v163_v13 = vld [vmem:[%s6496_s27] sm:$0xff]  ;;  %v170_v14 = vld [vmem:[%s6496_s27 + $0x38] sm:$0xff]  ;;  %s6499_s6 = sld [smem:[#allocation11_spill]] }
  0x16   :  { %2992 = vmatpush3.msra.mxu0 %v76_v6  ;;  %226 = vmatprep.subr.mxu1 %v164_v12  ;;  %s6501_s3 = sld [smem:[#allocation15_spill]] }
  0x17   :  { %2993 = vmatprep.subr.mxu0 %v3063_v1  ;;  %227 = vmatpush1.msra.mxu1 %v163_v13 }
  0x18   :  { %2994 = vmatpush3.msra.mxu0 %v75_v7  ;;  %295 = vmatprep.subr.mxu1 %v170_v14 }
  0x19   :  { %2995 = vmatprep.subr.mxu0 %v3063_v1  ;;  %v71_v11 = vld [vmem:[%s6497_s28] sm:$0xff] }
  0x1a   :  { %2996 = vmatpush3.msra.mxu0 %v74_v8  ;;  %v531_v15 = vld [vmem:[%s6498_s1 + $0x5e8] sm:$0xff]  ;;  %v530_v16 = vld [vmem:[%s6498_s1 + $0x5e0] sm:$0xff]  ;;  %v169_v8 = vld [vmem:[%s6496_s27 + $0x30] sm:$0xff] }
  0x1b   :  { %2997 = vmatprep.subr.mxu0 %v3063_v1  ;;  %v527_v17 = vld [vmem:[%s6498_s1 + $0x5c8] sm:$0xff]  ;;  %v526_v18 = vld [vmem:[%s6498_s1 + $0x5c0] sm:$0xff] }
  0x1c   :  { %2998 = vmatpush3.msra.mxu0 %v73_v9  ;;  %v523_v19 = vld [vmem:[%s6498_s1 + $0x5a8] sm:$0xff]  ;;  %v522_v20 = vld [vmem:[%s6498_s1 + $0x5a0] sm:$0xff] }
  0x1d   :  { %2999 = vmatprep.subr.mxu0 %v3063_v1  ;;  %v519_v21 = vld [vmem:[%s6498_s1 + $0x588] sm:$0xff]  ;;  %v518_v22 = vld [vmem:[%s6498_s1 + $0x580] sm:$0xff] }
  0x1e   :  { %3000 = vmatpush3.msra.mxu0 %v72_v10  ;;  %v515_v23 = vld [vmem:[%s6498_s1 + $0x568] sm:$0xff]  ;;  %v514_v24 = vld [vmem:[%s6498_s1 + $0x560] sm:$0xff]  ;;  %v166_v10 = vld [vmem:[%s6496_s27 + $0x18] sm:$0xff] }
  0x1f   :  { %3002 = vmatmul.mubr.msk.f32.vlgmr.msra.gmra.mxu0 %vm87_vm1, %v71_v11  ;;  %691 = vmatprep.subr.mxu0 %v531_v15  ;;  %v511_v25 = vld [vmem:[%s6498_s1 + $0x548] sm:$0xff]  ;;  %v510_v26 = vld [vmem:[%s6498_s1 + $0x540] sm:$0xff]  ;;  %v165_v11 = vld [vmem:[%s6496_s27 + $0x10] sm:$0xff]  ;;  %s6500_s27 = sld [smem:[#allocation13_spill]] }
  0x20   :  { %692 = vmatpush1.msra.mxu0 %v530_v16  ;;  %v507_v27 = vld [vmem:[%s6498_s1 + $0x528] sm:$0xff]  ;;  %v506_v28 = vld [vmem:[%s6498_s1 + $0x520] sm:$0xff] }
  0x21   :  { %693 = vmatprep.subr.mxu0 %v527_v17  ;;  %v503_v29 = vld [vmem:[%s6498_s1 + $0x508] sm:$0xff]  ;;  %v502_v30 = vld [vmem:[%s6498_s1 + $0x500] sm:$0xff] }
  0x22   :  { %694 = vmatpush1.msra.mxu0 %v526_v18  ;;  %v499_v31 = vld [vmem:[%s6498_s1 + $0x4e8] sm:$0xff]  ;;  %v498_v32 = vld [vmem:[%s6498_s1 + $0x4e0] sm:$0xff] }
  0x23   :  { %695 = vmatprep.subr.mxu0 %v523_v19  ;;  %v495_v33 = vld [vmem:[%s6498_s1 + $0x4c8] sm:$0xff]  ;;  %v494_v34 = vld [vmem:[%s6498_s1 + $0x4c0] sm:$0xff] }
  0x24   :  { %696 = vmatpush1.msra.mxu0 %v522_v20  ;;  %v491_v35 = vld [vmem:[%s6498_s1 + $0x4a8] sm:$0xff]  ;;  %v490_v36 = vld [vmem:[%s6498_s1 + $0x4a0] sm:$0xff] }
  0x25   :  { %697 = vmatprep.subr.mxu0 %v519_v21  ;;  %v487_v37 = vld [vmem:[%s6498_s1 + $0x488] sm:$0xff]  ;;  %v486_v38 = vld [vmem:[%s6498_s1 + $0x480] sm:$0xff] }
  0x26   :  { %698 = vmatpush1.msra.mxu0 %v518_v22  ;;  %v483_v39 = vld [vmem:[%s6498_s1 + $0x468] sm:$0xff]  ;;  %v482_v40 = vld [vmem:[%s6498_s1 + $0x460] sm:$0xff] }
  0x27   :  { %699 = vmatprep.subr.mxu0 %v515_v23  ;;  %v479_v41 = vld [vmem:[%s6498_s1 + $0x448] sm:$0xff]  ;;  %v478_v42 = vld [vmem:[%s6498_s1 + $0x440] sm:$0xff] }
  0x28   :  { %700 = vmatpush1.msra.mxu0 %v514_v24  ;;  %v475_v43 = vld [vmem:[%s6498_s1 + $0x428] sm:$0xff]  ;;  %v474_v44 = vld [vmem:[%s6498_s1 + $0x420] sm:$0xff] }
  0x29   :  { %701 = vmatprep.subr.mxu0 %v511_v25  ;;  %v471_v45 = vld [vmem:[%s6498_s1 + $0x408] sm:$0xff]  ;;  %v470_v46 = vld [vmem:[%s6498_s1 + $0x400] sm:$0xff] }
  0x2a   :  { %702 = vmatpush1.msra.mxu0 %v510_v26  ;;  %v595_v47 = vld [vmem:[%s6498_s1 + $0x7e8] sm:$0xff]  ;;  %v594_v48 = vld [vmem:[%s6498_s1 + $0x7e0] sm:$0xff] }
  0x2b   :  { %703 = vmatprep.subr.mxu0 %v507_v27  ;;  %v591_v49 = vld [vmem:[%s6498_s1 + $0x7c8] sm:$0xff]  ;;  %v590_v50 = vld [vmem:[%s6498_s1 + $0x7c0] sm:$0xff] }
  0x2c   :  { %704 = vmatpush1.msra.mxu0 %v506_v28  ;;  %v587_v51 = vld [vmem:[%s6498_s1 + $0x7a8] sm:$0xff]  ;;  %v586_v52 = vld [vmem:[%s6498_s1 + $0x7a0] sm:$0xff] }
  0x2d   :  { %705 = vmatprep.subr.mxu0 %v503_v29  ;;  %v583_v53 = vld [vmem:[%s6498_s1 + $0x788] sm:$0xff]  ;;  %v582_v54 = vld [vmem:[%s6498_s1 + $0x780] sm:$0xff] }
  0x2e   :  { %706 = vmatpush1.msra.mxu0 %v502_v30  ;;  %v579_v55 = vld [vmem:[%s6498_s1 + $0x768] sm:$0xff]  ;;  %v578_v56 = vld [vmem:[%s6498_s1 + $0x760] sm:$0xff] }
  0x2f   :  { %707 = vmatprep.subr.mxu0 %v499_v31  ;;  %v575_v57 = vld [vmem:[%s6498_s1 + $0x748] sm:$0xff]  ;;  %v574_v58 = vld [vmem:[%s6498_s1 + $0x740] sm:$0xff] }
  0x30   :  { %708 = vmatpush1.msra.mxu0 %v498_v32  ;;  %v571_v59 = vld [vmem:[%s6498_s1 + $0x728] sm:$0xff]  ;;  %v570_v60 = vld [vmem:[%s6498_s1 + $0x720] sm:$0xff] }
  0x31   :  { %709 = vmatprep.subr.mxu0 %v495_v33  ;;  %v567_v61 = vld [vmem:[%s6498_s1 + $0x708] sm:$0xff]  ;;  %v566_v62 = vld [vmem:[%s6498_s1 + $0x700] sm:$0xff] }
  0x32   :  { %710 = vmatpush1.msra.mxu0 %v494_v34  ;;  %v563_v63 = vld [vmem:[%s6498_s1 + $0x6e8] sm:$0xff]  ;;  %v562_v0 = vld [vmem:[%s6498_s1 + $0x6e0] sm:$0xff] }
  0x33   :  { %711 = vmatprep.subr.mxu0 %v491_v35  ;;  %v559_v2 = vld [vmem:[%s6498_s1 + $0x6c8] sm:$0xff]  ;;  %v558_v3 = vld [vmem:[%s6498_s1 + $0x6c0] sm:$0xff] }
  0x34   :  { %712 = vmatpush1.msra.mxu0 %v490_v36  ;;  %v555_v4 = vld [vmem:[%s6498_s1 + $0x6a8] sm:$0xff]  ;;  %v2896_v5 = vld [vmem:[%s6499_s6] ss:$0 sm:$0xff] }
  0x35   :  { %713 = vmatprep.subr.mxu0 %v487_v37  ;;  %v403_v12 = vld [vmem:[%s6498_s1 + $0x1e8] sm:$0xff]  ;;  %v402_v13 = vld [vmem:[%s6498_s1 + $0x1e0] sm:$0xff] }
  0x36   :  { %714 = vmatpush1.msra.mxu0 %v486_v38  ;;  %v399_v14 = vld [vmem:[%s6498_s1 + $0x1c8] sm:$0xff]  ;;  %v398_v15 = vld [vmem:[%s6498_s1 + $0x1c0] sm:$0xff] }
  0x37   :  { %715 = vmatprep.subr.mxu0 %v483_v39  ;;  %v395_v16 = vld [vmem:[%s6498_s1 + $0x1a8] sm:$0xff]  ;;  %v394_v17 = vld [vmem:[%s6498_s1 + $0x1a0] sm:$0xff] }
  0x38   :  { %716 = vmatpush1.msra.mxu0 %v482_v40  ;;  %v391_v18 = vld [vmem:[%s6498_s1 + $0x188] sm:$0xff]  ;;  %v390_v19 = vld [vmem:[%s6498_s1 + $0x180] sm:$0xff] }
  0x39   :  { %717 = vmatprep.subr.mxu0 %v479_v41  ;;  %v387_v20 = vld [vmem:[%s6498_s1 + $0x168] sm:$0xff]  ;;  %v386_v21 = vld [vmem:[%s6498_s1 + $0x160] sm:$0xff] }
  0x3a   :  { %718 = vmatpush1.msra.mxu0 %v478_v42  ;;  %v383_v22 = vld [vmem:[%s6498_s1 + $0x148] sm:$0xff]  ;;  %v382_v23 = vld [vmem:[%s6498_s1 + $0x140] sm:$0xff] }
  0x3b   :  { %719 = vmatprep.subr.mxu0 %v475_v43  ;;  %v379_v24 = vld [vmem:[%s6498_s1 + $0x128] sm:$0xff]  ;;  %v378_v25 = vld [vmem:[%s6498_s1 + $0x120] sm:$0xff] }
  0x3c   :  { %720 = vmatpush1.msra.mxu0 %v474_v44  ;;  %v375_v26 = vld [vmem:[%s6498_s1 + $0x108] sm:$0xff]  ;;  %v374_v27 = vld [vmem:[%s6498_s1 + $0x100] sm:$0xff] }
  0x3d   :  { %721 = vmatprep.subr.mxu0 %v471_v45  ;;  %v371_v28 = vld [vmem:[%s6498_s1 + $0xe8] sm:$0xff]  ;;  %v370_v29 = vld [vmem:[%s6498_s1 + $0xe0] sm:$0xff] }
  0x3e   :  { %722 = vmatpush1.msra.mxu0 %v470_v46  ;;  %v367_v30 = vld [vmem:[%s6498_s1 + $0xc8] sm:$0xff]  ;;  %v366_v31 = vld [vmem:[%s6498_s1 + $0xc0] sm:$0xff] }
  0x3f   :  { %723 = vmatprep.subr.mxu0 %v595_v47  ;;  %v363_v32 = vld [vmem:[%s6498_s1 + $0xa8] sm:$0xff]  ;;  %v362_v33 = vld [vmem:[%s6498_s1 + $0xa0] sm:$0xff] }
  0x40   :  { %724 = vmatpush2.msra.mxu0 %v594_v48  ;;  %v359_v34 = vld [vmem:[%s6498_s1 + $0x88] sm:$0xff]  ;;  %v358_v35 = vld [vmem:[%s6498_s1 + $0x80] sm:$0xff] }
  0x41   :  { %725 = vmatprep.subr.mxu0 %v591_v49  ;;  %v355_v36 = vld [vmem:[%s6498_s1 + $0x68] sm:$0xff]  ;;  %v354_v37 = vld [vmem:[%s6498_s1 + $0x60] sm:$0xff] }
  0x42   :  { %726 = vmatpush2.msra.mxu0 %v590_v50  ;;  %v351_v38 = vld [vmem:[%s6498_s1 + $0x48] sm:$0xff]  ;;  %v350_v39 = vld [vmem:[%s6498_s1 + $0x40] sm:$0xff] }
  0x43   :  { %727 = vmatprep.subr.mxu0 %v587_v51  ;;  %v347_v40 = vld [vmem:[%s6498_s1 + $0x28] sm:$0xff]  ;;  %v346_v41 = vld [vmem:[%s6498_s1 + $0x20] sm:$0xff] }
  0x44   :  { %728 = vmatpush2.msra.mxu0 %v586_v52  ;;  %v343_v42 = vld [vmem:[%s6498_s1 + $0x8] sm:$0xff]  ;;  %v342_v43 = vld [vmem:[%s6498_s1] sm:$0xff] }
  0x45   :  { %729 = vmatprep.subr.mxu0 %v583_v53  ;;  %v467_v44 = vld [vmem:[%s6498_s1 + $0x3e8] sm:$0xff]  ;;  %v466_v45 = vld [vmem:[%s6498_s1 + $0x3e0] sm:$0xff] }
  0x46   :  { %730 = vmatpush2.msra.mxu0 %v582_v54  ;;  %v463_v46 = vld [vmem:[%s6498_s1 + $0x3c8] sm:$0xff]  ;;  %v462_v47 = vld [vmem:[%s6498_s1 + $0x3c0] sm:$0xff] }
  0x47   :  { %731 = vmatprep.subr.mxu0 %v579_v55  ;;  %v459_v48 = vld [vmem:[%s6498_s1 + $0x3a8] sm:$0xff]  ;;  %v458_v49 = vld [vmem:[%s6498_s1 + $0x3a0] sm:$0xff] }
  0x48   :  { %732 = vmatpush2.msra.mxu0 %v578_v56  ;;  %v455_v50 = vld [vmem:[%s6498_s1 + $0x388] sm:$0xff]  ;;  %v454_v51 = vld [vmem:[%s6498_s1 + $0x380] sm:$0xff] }
  0x49   :  { %733 = vmatprep.subr.mxu0 %v575_v57  ;;  %v451_v52 = vld [vmem:[%s6498_s1 + $0x368] sm:$0xff]  ;;  %v450_v53 = vld [vmem:[%s6498_s1 + $0x360] sm:$0xff] }
  0x4a   :  { %734 = vmatpush2.msra.mxu0 %v574_v58  ;;  %v447_v54 = vld [vmem:[%s6498_s1 + $0x348] sm:$0xff]  ;;  %v446_v55 = vld [vmem:[%s6498_s1 + $0x340] sm:$0xff] }
  0x4b   :  { %735 = vmatprep.subr.mxu0 %v571_v59  ;;  %v443_v56 = vld [vmem:[%s6498_s1 + $0x328] sm:$0xff]  ;;  %v442_v57 = vld [vmem:[%s6498_s1 + $0x320] sm:$0xff] }
  0x4c   :  { %736 = vmatpush2.msra.mxu0 %v570_v60  ;;  %v439_v58 = vld [vmem:[%s6498_s1 + $0x308] sm:$0xff]  ;;  %v438_v59 = vld [vmem:[%s6498_s1 + $0x300] sm:$0xff] }
  0x4d   :  { %737 = vmatprep.subr.mxu0 %v567_v61  ;;  %v435_v60 = vld [vmem:[%s6498_s1 + $0x2e8] sm:$0xff]  ;;  %v434_v61 = vld [vmem:[%s6498_s1 + $0x2e0] sm:$0xff] }
  0x4e   :  { %738 = vmatpush2.msra.mxu0 %v566_v62  ;;  %v431_v62 = vld [vmem:[%s6498_s1 + $0x2c8] sm:$0xff] }
  0x4f   :  { %739 = vmatprep.subr.mxu0 %v563_v63  ;;  %v430_v63 = vld [vmem:[%s6498_s1 + $0x2c0] sm:$0xff] }
  0x50   :  { %740 = vmatpush2.msra.mxu0 %v562_v0  ;;  %v427_v0 = vld [vmem:[%s6498_s1 + $0x2a8] sm:$0xff] }
  0x51   :  { %741 = vmatprep.subr.mxu0 %v559_v2  ;;  %v426_v2 = vld [vmem:[%s6498_s1 + $0x2a0] sm:$0xff] }
  0x52   :  { %742 = vmatpush2.msra.mxu0 %v558_v3  ;;  %v423_v3 = vld [vmem:[%s6498_s1 + $0x288] sm:$0xff] }
  0x53   :  { %743 = vmatprep.subr.mxu0 %v555_v4  ;;  %v422_v4 = vld [vmem:[%s6498_s1 + $0x280] sm:$0xff] }
  0xdf   :  { %v157_v6 = vpop.f32.mrf.mxu0 }
  0xe0   :  { %v158_v7 = vadd.f32 %v2896_v5, %v157_v6  ;;  %v419_v5 = vld [vmem:[%s6498_s1 + $0x268] sm:$0xff]  ;;  %v418_v6 = vld [vmem:[%s6498_s1 + $0x260] sm:$0xff] }
  0xe1   :  { %v3003_v9 = vpop.f32.mrf.mxu0 }
  0xe2   :  { %162 = vst.msk [vmem:[%s6480_s20] sm:$0xff] %vm161_vm2, %v158_v7  ;;  %2898 = vmatmul.mubr.msk.f32.vlgmr.msra.gmra.mxu1 %vm161_vm2, %v158_v7  ;;  %v551_v9 = vld [vmem:[%s6498_s1 + $0x688] sm:$0xff] }
  0xe3   :  { %296 = vmatpush1.msra.mxu1 %v169_v8  ;;  %331 = vmatprep.mubr.f32.mxu1 %v3063_v1  ;;  %v415_v8 = vld [vmem:[%s6498_s1 + $0x248] sm:$0xff] }
  0xe4   :  { %297 = vmatprep.subr.mxu1 %v166_v10  ;;  %v414_v10 = vld [vmem:[%s6498_s1 + $0x240] sm:$0xff] }
  0xe5   :  { %298 = vmatpush1.msra.mxu1 %v165_v11  ;;  %v550_v11 = vld [vmem:[%s6498_s1 + $0x680] sm:$0xff] }
  0xe6   :  { %2899 = vmatmul.mubr.msk.f32.vlgmr.msra.gmra.mxu1 %vm161_vm2, %v158_v7  ;;  %620 = vmatprep.subr.mxu1 %v403_v12  ;;  %v554_v7 = vld [vmem:[%s6498_s1 + $0x6a0] sm:$0xff]  ;;  %v411_v12 = vld [vmem:[%s6498_s1 + $0x228] sm:$0xff] }
  0xe7   :  { %621 = vmatpush1.msra.mxu1 %v402_v13  ;;  %744 = vmatpush2.msra.mxu0 %v554_v7  ;;  %v547_v13 = vld [vmem:[%s6498_s1 + $0x668] sm:$0xff]  ;;  %v516_v7 = vld [vmem:[%s6498_s1 + $0x570] sm:$0xff] }
  0xe8   :  { %622 = vmatprep.subr.mxu1 %v399_v14  ;;  %745 = vmatprep.subr.mxu0 %v551_v9  ;;  %v410_v14 = vld [vmem:[%s6498_s1 + $0x220] sm:$0xff]  ;;  %v513_v9 = vld [vmem:[%s6498_s1 + $0x558] sm:$0xff] }
  0xe9   :  { %623 = vmatpush1.msra.mxu1 %v398_v15  ;;  %746 = vmatpush2.msra.mxu0 %v550_v11  ;;  %v546_v15 = vld [vmem:[%s6498_s1 + $0x660] sm:$0xff]  ;;  %v512_v11 = vld [vmem:[%s6498_s1 + $0x550] sm:$0xff] }
  0xea   :  { %624 = vmatprep.subr.mxu1 %v395_v16  ;;  %747 = vmatprep.subr.mxu0 %v547_v13  ;;  %v407_v16 = vld [vmem:[%s6498_s1 + $0x208] sm:$0xff]  ;;  %v509_v13 = vld [vmem:[%s6498_s1 + $0x538] sm:$0xff] }
  0xeb   :  { %625 = vmatpush1.msra.mxu1 %v394_v17  ;;  %748 = vmatpush2.msra.mxu0 %v546_v15  ;;  %v543_v17 = vld [vmem:[%s6498_s1 + $0x648] sm:$0xff]  ;;  %v508_v15 = vld [vmem:[%s6498_s1 + $0x530] sm:$0xff] }
  0xec   :  { %626 = vmatprep.subr.mxu1 %v391_v18  ;;  %749 = vmatprep.subr.mxu0 %v543_v17  ;;  %v406_v18 = vld [vmem:[%s6498_s1 + $0x200] sm:$0xff]  ;;  %v505_v17 = vld [vmem:[%s6498_s1 + $0x518] sm:$0xff] }
  0xed   :  { %627 = vmatpush1.msra.mxu1 %v390_v19  ;;  %v542_v19 = vld [vmem:[%s6498_s1 + $0x640] sm:$0xff] }
  0xee   :  { %628 = vmatprep.subr.mxu1 %v387_v20  ;;  %750 = vmatpush2.msra.mxu0 %v542_v19  ;;  %v539_v20 = vld [vmem:[%s6498_s1 + $0x628] sm:$0xff]  ;;  %v504_v19 = vld [vmem:[%s6498_s1 + $0x510] sm:$0xff] }
  0xef   :  { %629 = vmatpush1.msra.mxu1 %v386_v21  ;;  %v405_v21 = vld [vmem:[%s6498_s1 + $0x1f8] sm:$0xff]  ;;  %751 = vmatprep.subr.mxu0 %v539_v20 }
  0xf0   :  { %630 = vmatprep.subr.mxu1 %v383_v22  ;;  %v538_v22 = vld [vmem:[%s6498_s1 + $0x620] sm:$0xff]  ;;  %v365_v20 = vld [vmem:[%s6498_s1 + $0xb8] sm:$0xff] }
  0xf1   :  { %631 = vmatpush1.msra.mxu1 %v382_v23  ;;  %752 = vmatpush2.msra.mxu0 %v538_v22  ;;  %v535_v23 = vld [vmem:[%s6498_s1 + $0x608] sm:$0xff]  ;;  %v364_v22 = vld [vmem:[%s6498_s1 + $0xb0] sm:$0xff] }
  0xf2   :  { %632 = vmatprep.subr.mxu1 %v379_v24  ;;  %753 = vmatprep.subr.mxu0 %v535_v23  ;;  %v534_v24 = vld [vmem:[%s6498_s1 + $0x600] sm:$0xff]  ;;  %v500_v23 = vld [vmem:[%s6498_s1 + $0x4f0] sm:$0xff] }
  0xf3   :  { %633 = vmatpush1.msra.mxu1 %v378_v25  ;;  %754 = vmatpush2.msra.mxu0 %v534_v24  ;;  %v533_v25 = vld [vmem:[%s6498_s1 + $0x5f8] sm:$0xff] }
  0xf4   :  { %634 = vmatprep.subr.mxu1 %v375_v26  ;;  %833 = vmatprep.subr.mxu0 %v533_v25  ;;  %v173_v26 = vlaneseq  ;;  %v361_v24 = vld [vmem:[%s6498_s1 + $0x98] sm:$0xff] }
  0xf5   :  { %635 = vmatpush1.msra.mxu1 %v374_v27  ;;  %v497_v25 = vld [vmem:[%s6498_s1 + $0x4d8] sm:$0xff] }
  0xf6   :  { %636 = vmatprep.subr.mxu1 %v371_v28  ;;  %v174_v27 = vshrl.u32 %v173_v26, 7  ;;  %v360_v26 = vld [vmem:[%s6498_s1 + $0x90] sm:$0xff] }
  0xf7   :  { %637 = vmatpush1.msra.mxu1 %v370_v29  ;;  %v171_v29 = vld [vmem:[%s6500_s27] sm:$0xf] }
  0xf8   :  { %638 = vmatprep.subr.mxu1 %v367_v30  ;;  %v3650_v28 = vsub.s32 0, %v174_v27  ;;  %v3655_v30 = vsub.s32 1, %v174_v27 }
  0xf9   :  { %639 = vmatpush1.msra.mxu1 %v366_v31 }
  0xfa   :  { %640 = vmatprep.subr.mxu1 %v363_v32  ;;  %v176_v31 = vrot.slane %v171_v29, %v3650_v28  ;;  %v3658_v32 = vsub.s32 2, %v174_v27 }
  0xfb   :  { %641 = vmatpush1.msra.mxu1 %v362_v33  ;;  %v180_v33 = vrot.slane %v171_v29, %v3655_v30 }
  0xfc   :  { %642 = vmatprep.subr.mxu1 %v359_v34  ;;  %v3661_v34 = vsub.s32 3, %v174_v27  ;;  %v496_v27 = vld [vmem:[%s6498_s1 + $0x4d0] sm:$0xff] }
  0xfd   :  { %643 = vmatpush1.msra.mxu1 %v358_v35 }
  0xfe   :  { %644 = vmatprep.subr.mxu1 %v355_v36 }
  0xff   :  { %645 = vmatpush1.msra.mxu1 %v354_v37 }
 0x100   :  { %646 = vmatprep.subr.mxu1 %v351_v38  ;;  %v184_v38 = vrot.slane %v171_v29, %v3658_v32 }
 0x101   :  { %647 = vmatpush1.msra.mxu1 %v350_v39 }
 0x102   :  { %648 = vmatprep.subr.mxu1 %v347_v40  ;;  %v188_v40 = vrot.slane %v171_v29, %v3661_v34  ;;  %v357_v29 = vld [vmem:[%s6498_s1 + $0x78] sm:$0xff] }
 0x103   :  { %649 = vmatpush1.msra.mxu1 %v346_v41 }
 0x104   :  { %650 = vmatprep.subr.mxu1 %v343_v42 }
 0x105   :  { %651 = vmatpush1.msra.mxu1 %v342_v43 }
 0x106   :  { %652 = vmatprep.subr.mxu1 %v467_v44 }
 0x107   :  { %653 = vmatpush2.msra.mxu1 %v466_v45 }
 0x108   :  { %654 = vmatprep.subr.mxu1 %v463_v46  ;;  %v404_v46 = vld [vmem:[%s6498_s1 + $0x1f0] sm:$0xff] }
 0x109   :  { %655 = vmatpush2.msra.mxu1 %v462_v47 }
 0x10a   :  { %656 = vmatprep.subr.mxu1 %v459_v48  ;;  %v401_v48 = vld [vmem:[%s6498_s1 + $0x1d8] sm:$0xff] }
 0x10b   :  { %657 = vmatpush2.msra.mxu1 %v458_v49  ;;  %v400_v49 = vld [vmem:[%s6498_s1 + $0x1d0] sm:$0xff] }
 0x10c   :  { %658 = vmatprep.subr.mxu1 %v455_v50 }
 0x10d   :  { %659 = vmatpush2.msra.mxu1 %v454_v51  ;;  %v397_v51 = vld [vmem:[%s6498_s1 + $0x1b8] sm:$0xff] }
 0x10e   :  { %660 = vmatprep.subr.mxu1 %v451_v52 }
 0x10f   :  { %661 = vmatpush2.msra.mxu1 %v450_v53  ;;  %v396_v53 = vld [vmem:[%s6498_s1 + $0x1b0] sm:$0xff] }
 0x110   :  { %662 = vmatprep.subr.mxu1 %v447_v54  ;;  %v532_v54 = vld [vmem:[%s6498_s1 + $0x5f0] sm:$0xff] }
 0x111   :  { %663 = vmatpush2.msra.mxu1 %v446_v55  ;;  %v393_v55 = vld [vmem:[%s6498_s1 + $0x198] sm:$0xff] }
 0x112   :  { %664 = vmatprep.subr.mxu1 %v443_v56  ;;  %v529_v56 = vld [vmem:[%s6498_s1 + $0x5d8] sm:$0xff] }
 0x113   :  { %665 = vmatpush2.msra.mxu1 %v442_v57  ;;  %v392_v57 = vld [vmem:[%s6498_s1 + $0x190] sm:$0xff] }
 0x114   :  { %666 = vmatprep.subr.mxu1 %v439_v58  ;;  %v528_v58 = vld [vmem:[%s6498_s1 + $0x5d0] sm:$0xff] }
 0x115   :  { %667 = vmatpush2.msra.mxu1 %v438_v59  ;;  %v389_v59 = vld [vmem:[%s6498_s1 + $0x178] sm:$0xff] }
 0x116   :  { %668 = vmatprep.subr.mxu1 %v435_v60  ;;  %v525_v60 = vld [vmem:[%s6498_s1 + $0x5b8] sm:$0xff] }
 0x117   :  { %669 = vmatpush2.msra.mxu1 %v434_v61  ;;  %v388_v61 = vld [vmem:[%s6498_s1 + $0x170] sm:$0xff] }
 0x118   :  { %670 = vmatprep.subr.mxu1 %v431_v62  ;;  %v524_v62 = vld [vmem:[%s6498_s1 + $0x5b0] sm:$0xff] }
 0x119   :  { %671 = vmatpush2.msra.mxu1 %v430_v63  ;;  %v385_v63 = vld [vmem:[%s6498_s1 + $0x158] sm:$0xff] }
 0x11a   :  { %672 = vmatprep.subr.mxu1 %v427_v0  ;;  %v521_v0 = vld [vmem:[%s6498_s1 + $0x598] sm:$0xff] }
 0x11b   :  { %673 = vmatpush2.msra.mxu1 %v426_v2  ;;  %v384_v2 = vld [vmem:[%s6498_s1 + $0x150] sm:$0xff] }
 0x11c   :  { %674 = vmatprep.subr.mxu1 %v423_v3  ;;  %v520_v3 = vld [vmem:[%s6498_s1 + $0x590] sm:$0xff] }
 0x11d   :  { %675 = vmatpush2.msra.mxu1 %v422_v4  ;;  %v381_v4 = vld [vmem:[%s6498_s1 + $0x138] sm:$0xff] }
 0x11e   :  { %676 = vmatprep.subr.mxu1 %v419_v5  ;;  %v517_v5 = vld [vmem:[%s6498_s1 + $0x578] sm:$0xff] }
 0x11f   :  { %677 = vmatpush2.msra.mxu1 %v418_v6  ;;  %v380_v6 = vld [vmem:[%s6498_s1 + $0x130] sm:$0xff] }
 0x120   :  { %678 = vmatprep.subr.mxu1 %v415_v8  ;;  %v377_v8 = vld [vmem:[%s6498_s1 + $0x118] sm:$0xff] }
 0x121   :  { %679 = vmatpush2.msra.mxu1 %v414_v10  ;;  %v376_v10 = vld [vmem:[%s6498_s1 + $0x110] sm:$0xff] }
 0x122   :  { %680 = vmatprep.subr.mxu1 %v411_v12  ;;  %v373_v12 = vld [vmem:[%s6498_s1 + $0xf8] sm:$0xff] }
 0x123   :  { %681 = vmatpush2.msra.mxu1 %v410_v14  ;;  %v372_v14 = vld [vmem:[%s6498_s1 + $0xf0] sm:$0xff] }
 0x124   :  { %682 = vmatprep.subr.mxu1 %v407_v16  ;;  %v369_v16 = vld [vmem:[%s6498_s1 + $0xd8] sm:$0xff] }
 0x125   :  { %683 = vmatpush2.msra.mxu1 %v406_v18  ;;  %v368_v18 = vld [vmem:[%s6498_s1 + $0xd0] sm:$0xff] }
 0x126   :  { %762 = vmatprep.subr.mxu1 %v405_v21  ;;  %v501_v21 = vld [vmem:[%s6498_s1 + $0x4f8] sm:$0xff] }
 0x1a2   :  { %v262_v35 = vpop.f32.mrf.mxu1 }
 0x1a3   :  { %v3663_v36 = vadd.f32 %v262_v35, %v176_v31  ;;  %v493_v31 = vld [vmem:[%s6498_s1 + $0x4b8] sm:$0xff]  ;;  %v492_v35 = vld [vmem:[%s6498_s1 + $0x4b0] sm:$0xff] }
 0x1a4   :  { %v264_v37 = vpop.f32.mrf.mxu1 }
 0x1a5   :  { %v265_v39 = vadd.f32 %v264_v37, %v180_v33  ;;  %v338_v43 = vmax.f32 %v3663_v36, 0.0  ;;  %v356_v33 = vld [vmem:[%s6498_s1 + $0x70] sm:$0xff]  ;;  %v353_v37 = vld [vmem:[%s6498_s1 + $0x58] sm:$0xff]  ;;  %v961_v36 = vld [vmem:[%s6468_s8 + $0x1a8] sm:$0xff] }
 0x1a6   :  { %v333_v41 = vpop.f32.mrf.mxu1 }
 0x1a7   :  { %v339_v42 = vmax.f32 %v265_v39, 0.0  ;;  %v3668_v44 = vadd.f32 %v333_v41, %v184_v38  ;;  %v489_v38 = vld [vmem:[%s6498_s1 + $0x498] sm:$0xff]  ;;  %v352_v39 = vld [vmem:[%s6498_s1 + $0x50] sm:$0xff] }
 0x1a8   :  { %v335_v45 = vpop.f32.mrf.mxu1  ;;  %v349_v41 = vld [vmem:[%s6498_s1 + $0x38] sm:$0xff] }
 0x1a9   :  { %v336_v47 = vadd.f32 %v335_v45, %v188_v40  ;;  %684 = vmatprep.mubr.f32.mxu1 %v339_v42  ;;  %v340_v52 = vmax.f32 %v3668_v44, 0.0  ;;  %v488_v40 = vld [vmem:[%s6498_s1 + $0x490] sm:$0xff]  ;;  %v949_v44 = vld [vmem:[%s6468_s8 + $0x148] sm:$0xff] }
 0x1aa   :  { %685 = vmatmul.mubr.f32.vlgmr.msra.gmra.mxu1 %v338_v43  ;;  %v348_v45 = vld [vmem:[%s6498_s1 + $0x30] sm:$0xff] }
 0x1ab   :  { %v341_v50 = vmax.f32 %v336_v47, 0.0  ;;  %763 = vmatpush1.msra.mxu1 %v404_v46  ;;  %826 = vmatprep.mubr.f32.mxu1 %v339_v42  ;;  %v485_v42 = vld [vmem:[%s6498_s1 + $0x478] sm:$0xff]  ;;  %v484_v46 = vld [vmem:[%s6498_s1 + $0x470] sm:$0xff] }
 0x1ac   :  { %764 = vmatprep.subr.mxu1 %v401_v48  ;;  %v345_v47 = vld [vmem:[%s6498_s1 + $0x18] sm:$0xff] }
 0x1ad   :  { %765 = vmatpush1.msra.mxu1 %v400_v49  ;;  %755 = vmatprep.mubr.f32.mxu0 %v341_v50  ;;  %v481_v48 = vld [vmem:[%s6498_s1 + $0x458] sm:$0xff]  ;;  %v344_v49 = vld [vmem:[%s6498_s1 + $0x10] sm:$0xff] }
 0x1ae   :  { %766 = vmatprep.subr.mxu1 %v397_v51  ;;  %756 = vmatmul.mubr.f32.vlgmr.msra.gmra.mxu0 %v340_v52  ;;  %v469_v51 = vld [vmem:[%s6498_s1 + $0x3f8] sm:$0xff] }
 0x1af   :  { %767 = vmatpush1.msra.mxu1 %v396_v53  ;;  %834 = vmatpush1.msra.mxu0 %v532_v54  ;;  %v477_v53 = vld [vmem:[%s6498_s1 + $0x438] sm:$0xff]  ;;  %v468_v54 = vld [vmem:[%s6498_s1 + $0x3f0] sm:$0xff] }
 0x1b0   :  { %768 = vmatprep.subr.mxu1 %v393_v55  ;;  %835 = vmatprep.subr.mxu0 %v529_v56  ;;  %v476_v55 = vld [vmem:[%s6498_s1 + $0x430] sm:$0xff]  ;;  %v465_v56 = vld [vmem:[%s6498_s1 + $0x3d8] sm:$0xff] }
 0x1b1   :  { %897 = vmatprep.mubr.f32.mxu0 %v341_v50  ;;  %769 = vmatpush1.msra.mxu1 %v392_v57  ;;  %v480_v50 = vld [vmem:[%s6498_s1 + $0x450] sm:$0xff]  ;;  %v473_v57 = vld [vmem:[%s6498_s1 + $0x418] sm:$0xff] }
 0x1b2   :  { %836 = vmatpush1.msra.mxu0 %v528_v58  ;;  %770 = vmatprep.subr.mxu1 %v389_v59  ;;  %v464_v58 = vld [vmem:[%s6498_s1 + $0x3d0] sm:$0xff] }
 0x1b3   :  { %837 = vmatprep.subr.mxu0 %v525_v60  ;;  %771 = vmatpush1.msra.mxu1 %v388_v61  ;;  %v472_v59 = vld [vmem:[%s6498_s1 + $0x410] sm:$0xff]  ;;  %v461_v60 = vld [vmem:[%s6498_s1 + $0x3b8] sm:$0xff] }
 0x1b4   :  { %838 = vmatpush1.msra.mxu0 %v524_v62  ;;  %772 = vmatprep.subr.mxu1 %v385_v63  ;;  %v597_v61 = vld [vmem:[%s6498_s1 + $0x7f8] sm:$0xff]  ;;  %v460_v62 = vld [vmem:[%s6498_s1 + $0x3b0] sm:$0xff] }
 0x1b5   :  { %839 = vmatprep.subr.mxu0 %v521_v0  ;;  %773 = vmatpush1.msra.mxu1 %v384_v2  ;;  %v596_v63 = vld [vmem:[%s6498_s1 + $0x7f0] sm:$0xff]  ;;  %v457_v0 = vld [vmem:[%s6498_s1 + $0x398] sm:$0xff] }
 0x1b6   :  { %840 = vmatpush1.msra.mxu0 %v520_v3  ;;  %774 = vmatprep.subr.mxu1 %v381_v4  ;;  %v593_v2 = vld [vmem:[%s6498_s1 + $0x7d8] sm:$0xff]  ;;  %v456_v3 = vld [vmem:[%s6498_s1 + $0x390] sm:$0xff] }
 0x1b7   :  { %841 = vmatprep.subr.mxu0 %v517_v5  ;;  %775 = vmatpush1.msra.mxu1 %v380_v6  ;;  %v592_v4 = vld [vmem:[%s6498_s1 + $0x7d0] sm:$0xff]  ;;  %v453_v5 = vld [vmem:[%s6498_s1 + $0x378] sm:$0xff] }
 0x1b8   :  { %842 = vmatpush1.msra.mxu0 %v516_v7  ;;  %776 = vmatprep.subr.mxu1 %v377_v8  ;;  %v589_v6 = vld [vmem:[%s6498_s1 + $0x7b8] sm:$0xff]  ;;  %v452_v7 = vld [vmem:[%s6498_s1 + $0x370] sm:$0xff] }
 0x1b9   :  { %843 = vmatprep.subr.mxu0 %v513_v9  ;;  %777 = vmatpush1.msra.mxu1 %v376_v10  ;;  %v588_v8 = vld [vmem:[%s6498_s1 + $0x7b0] sm:$0xff]  ;;  %v449_v9 = vld [vmem:[%s6498_s1 + $0x358] sm:$0xff] }
 0x1ba   :  { %844 = vmatpush1.msra.mxu0 %v512_v11  ;;  %778 = vmatprep.subr.mxu1 %v373_v12  ;;  %v585_v10 = vld [vmem:[%s6498_s1 + $0x798] sm:$0xff]  ;;  %v448_v11 = vld [vmem:[%s6498_s1 + $0x350] sm:$0xff] }
 0x1bb   :  { %845 = vmatprep.subr.mxu0 %v509_v13  ;;  %779 = vmatpush1.msra.mxu1 %v372_v14  ;;  %v584_v12 = vld [vmem:[%s6498_s1 + $0x790] sm:$0xff]  ;;  %v445_v13 = vld [vmem:[%s6498_s1 + $0x338] sm:$0xff] }
 0x1bc   :  { %846 = vmatpush1.msra.mxu0 %v508_v15  ;;  %780 = vmatprep.subr.mxu1 %v369_v16  ;;  %v581_v14 = vld [vmem:[%s6498_s1 + $0x778] sm:$0xff]  ;;  %v444_v15 = vld [vmem:[%s6498_s1 + $0x330] sm:$0xff] }
 0x1bd   :  { %847 = vmatprep.subr.mxu0 %v505_v17  ;;  %781 = vmatpush1.msra.mxu1 %v368_v18  ;;  %v580_v16 = vld [vmem:[%s6498_s1 + $0x770] sm:$0xff]  ;;  %v441_v17 = vld [vmem:[%s6498_s1 + $0x318] sm:$0xff] }
 0x1be   :  { %848 = vmatpush1.msra.mxu0 %v504_v19  ;;  %782 = vmatprep.subr.mxu1 %v365_v20  ;;  %v577_v18 = vld [vmem:[%s6498_s1 + $0x758] sm:$0xff]  ;;  %v440_v19 = vld [vmem:[%s6498_s1 + $0x310] sm:$0xff] }
 0x1bf   :  { %849 = vmatprep.subr.mxu0 %v501_v21  ;;  %783 = vmatpush1.msra.mxu1 %v364_v22  ;;  %v576_v20 = vld [vmem:[%s6498_s1 + $0x750] sm:$0xff]  ;;  %v437_v21 = vld [vmem:[%s6498_s1 + $0x2f8] sm:$0xff] }
 0x1c0   :  { %850 = vmatpush1.msra.mxu0 %v500_v23  ;;  %784 = vmatprep.subr.mxu1 %v361_v24  ;;  %v573_v22 = vld [vmem:[%s6498_s1 + $0x738] sm:$0xff]  ;;  %v436_v23 = vld [vmem:[%s6498_s1 + $0x2f0] sm:$0xff] }
 0x1c1   :  { %851 = vmatprep.subr.mxu0 %v497_v25  ;;  %785 = vmatpush1.msra.mxu1 %v360_v26  ;;  %v572_v24 = vld [vmem:[%s6498_s1 + $0x730] sm:$0xff]  ;;  %v433_v25 = vld [vmem:[%s6498_s1 + $0x2d8] sm:$0xff] }
 0x1c2   :  { %852 = vmatpush1.msra.mxu0 %v496_v27  ;;  %786 = vmatprep.subr.mxu1 %v357_v29  ;;  %v569_v26 = vld [vmem:[%s6498_s1 + $0x718] sm:$0xff]  ;;  %v432_v27 = vld [vmem:[%s6498_s1 + $0x2d0] sm:$0xff] }
 0x1c3   :  { %853 = vmatprep.subr.mxu0 %v493_v31  ;;  %787 = vmatpush1.msra.mxu1 %v356_v33  ;;  %v568_v29 = vld [vmem:[%s6498_s1 + $0x710] sm:$0xff]  ;;  %v429_v31 = vld [vmem:[%s6498_s1 + $0x2b8] sm:$0xff] }
 0x1c4   :  { %854 = vmatpush1.msra.mxu0 %v492_v35  ;;  %788 = vmatprep.subr.mxu1 %v353_v37  ;;  %v565_v33 = vld [vmem:[%s6498_s1 + $0x6f8] sm:$0xff]  ;;  %v428_v35 = vld [vmem:[%s6498_s1 + $0x2b0] sm:$0xff] }
 0x1c5   :  { %855 = vmatprep.subr.mxu0 %v489_v38  ;;  %789 = vmatpush1.msra.mxu1 %v352_v39  ;;  %v564_v37 = vld [vmem:[%s6498_s1 + $0x6f0] sm:$0xff]  ;;  %v425_v38 = vld [vmem:[%s6498_s1 + $0x298] sm:$0xff] }
 0x1c6   :  { %856 = vmatpush1.msra.mxu0 %v488_v40  ;;  %790 = vmatprep.subr.mxu1 %v349_v41  ;;  %v561_v39 = vld [vmem:[%s6498_s1 + $0x6d8] sm:$0xff]  ;;  %v424_v40 = vld [vmem:[%s6498_s1 + $0x290] sm:$0xff] }
 0x1c7   :  { %857 = vmatprep.subr.mxu0 %v485_v42  ;;  %791 = vmatpush1.msra.mxu1 %v348_v45  ;;  %v560_v41 = vld [vmem:[%s6498_s1 + $0x6d0] sm:$0xff]  ;;  %v421_v42 = vld [vmem:[%s6498_s1 + $0x278] sm:$0xff] }
 0x1c8   :  { %858 = vmatpush1.msra.mxu0 %v484_v46  ;;  %792 = vmatprep.subr.mxu1 %v345_v47  ;;  %v557_v45 = vld [vmem:[%s6498_s1 + $0x6b8] sm:$0xff]  ;;  %v420_v46 = vld [vmem:[%s6498_s1 + $0x270] sm:$0xff] }
 0x1c9   :  { %859 = vmatprep.subr.mxu0 %v481_v48  ;;  %793 = vmatpush1.msra.mxu1 %v344_v49  ;;  %v556_v47 = vld [vmem:[%s6498_s1 + $0x6b0] sm:$0xff]  ;;  %v417_v48 = vld [vmem:[%s6498_s1 + $0x258] sm:$0xff] }
 0x1ca   :  { %860 = vmatpush1.msra.mxu0 %v480_v50  ;;  %794 = vmatprep.subr.mxu1 %v469_v51  ;;  %v553_v49 = vld [vmem:[%s6498_s1 + $0x698] sm:$0xff]  ;;  %v416_v50 = vld [vmem:[%s6498_s1 + $0x250] sm:$0xff] }
 0x1cb   :  { %861 = vmatprep.subr.mxu0 %v477_v53  ;;  %795 = vmatpush2.msra.mxu1 %v468_v54  ;;  %v552_v51 = vld [vmem:[%s6498_s1 + $0x690] sm:$0xff]  ;;  %v413_v53 = vld [vmem:[%s6498_s1 + $0x238] sm:$0xff] }
 0x1cc   :  { %862 = vmatpush1.msra.mxu0 %v476_v55  ;;  %796 = vmatprep.subr.mxu1 %v465_v56  ;;  %v549_v54 = vld [vmem:[%s6498_s1 + $0x678] sm:$0xff]  ;;  %v412_v55 = vld [vmem:[%s6498_s1 + $0x230] sm:$0xff] }
 0x1cd   :  { %863 = vmatprep.subr.mxu0 %v473_v57  ;;  %797 = vmatpush2.msra.mxu1 %v464_v58  ;;  %v548_v56 = vld [vmem:[%s6498_s1 + $0x670] sm:$0xff]  ;;  %v409_v57 = vld [vmem:[%s6498_s1 + $0x218] sm:$0xff] }
 0x1ce   :  { %864 = vmatpush1.msra.mxu0 %v472_v59  ;;  %798 = vmatprep.subr.mxu1 %v461_v60  ;;  %v545_v58 = vld [vmem:[%s6498_s1 + $0x658] sm:$0xff]  ;;  %v408_v59 = vld [vmem:[%s6498_s1 + $0x210] sm:$0xff] }
 0x1cf   :  { %865 = vmatprep.subr.mxu0 %v597_v61  ;;  %799 = vmatpush2.msra.mxu1 %v460_v62  ;;  %v544_v60 = vld [vmem:[%s6498_s1 + $0x650] sm:$0xff]  ;;  %v541_v61 = vld [vmem:[%s6498_s1 + $0x638] sm:$0xff]  ;;  %v969_v62 = vld [vmem:[%s6468_s8 + $0x1e8] sm:$0xff] }
 0x1d0   :  { %866 = vmatpush2.msra.mxu0 %v596_v63  ;;  %800 = vmatprep.subr.mxu1 %v457_v0  ;;  %v540_v63 = vld [vmem:[%s6498_s1 + $0x630] sm:$0xff]  ;;  %v968_v0 = vld [vmem:[%s6468_s8 + $0x1e0] sm:$0xff] }
 0x1d1   :  { %867 = vmatprep.subr.mxu0 %v593_v2  ;;  %801 = vmatpush2.msra.mxu1 %v456_v3  ;;  %v537_v2 = vld [vmem:[%s6498_s1 + $0x618] sm:$0xff]  ;;  %v965_v3 = vld [vmem:[%s6468_s8 + $0x1c8] sm:$0xff] }
 0x1d2   :  { %868 = vmatpush2.msra.mxu0 %v592_v4  ;;  %802 = vmatprep.subr.mxu1 %v453_v5  ;;  %v536_v4 = vld [vmem:[%s6498_s1 + $0x610] sm:$0xff]  ;;  %v964_v5 = vld [vmem:[%s6468_s8 + $0x1c0] sm:$0xff] }
 0x1d3   :  { %869 = vmatprep.subr.mxu0 %v589_v6  ;;  %803 = vmatpush2.msra.mxu1 %v452_v7  ;;  %v957_v6 = vld [vmem:[%s6468_s8 + $0x188] sm:$0xff]  ;;  %v956_v7 = vld [vmem:[%s6468_s8 + $0x180] sm:$0xff] }
 0x1d4   :  { %870 = vmatpush2.msra.mxu0 %v588_v8  ;;  %804 = vmatprep.subr.mxu1 %v449_v9  ;;  %v953_v8 = vld [vmem:[%s6468_s8 + $0x168] sm:$0xff]  ;;  %v952_v9 = vld [vmem:[%s6468_s8 + $0x160] sm:$0xff] }
 0x1d5   :  { %871 = vmatprep.subr.mxu0 %v585_v10  ;;  %805 = vmatpush2.msra.mxu1 %v448_v11  ;;  %v945_v10 = vld [vmem:[%s6468_s8 + $0x128] sm:$0xff] }
 0x1d6   :  { %872 = vmatpush2.msra.mxu0 %v584_v12  ;;  %806 = vmatprep.subr.mxu1 %v445_v13  ;;  %v1097_v11 = vld [vmem:[%s6468_s8 + $0x5e8] sm:$0xff]  ;;  %v944_v12 = vld [vmem:[%s6468_s8 + $0x120] sm:$0xff] }
 0x1d7   :  { %873 = vmatprep.subr.mxu0 %v581_v14  ;;  %807 = vmatpush2.msra.mxu1 %v444_v15  ;;  %v1096_v13 = vld [vmem:[%s6468_s8 + $0x5e0] sm:$0xff]  ;;  %v941_v14 = vld [vmem:[%s6468_s8 + $0x108] sm:$0xff] }
 0x1d8   :  { %874 = vmatpush2.msra.mxu0 %v580_v16  ;;  %808 = vmatprep.subr.mxu1 %v441_v17  ;;  %v1093_v15 = vld [vmem:[%s6468_s8 + $0x5c8] sm:$0xff]  ;;  %v940_v16 = vld [vmem:[%s6468_s8 + $0x100] sm:$0xff] }
 0x1d9   :  { %875 = vmatprep.subr.mxu0 %v577_v18  ;;  %809 = vmatpush2.msra.mxu1 %v440_v19  ;;  %v1092_v17 = vld [vmem:[%s6468_s8 + $0x5c0] sm:$0xff]  ;;  %v937_v18 = vld [vmem:[%s6468_s8 + $0xe8] sm:$0xff] }
 0x1da   :  { %876 = vmatpush2.msra.mxu0 %v576_v20  ;;  %810 = vmatprep.subr.mxu1 %v437_v21  ;;  %v1089_v19 = vld [vmem:[%s6468_s8 + $0x5a8] sm:$0xff]  ;;  %v936_v20 = vld [vmem:[%s6468_s8 + $0xe0] sm:$0xff] }
 0x1db   :  { %877 = vmatprep.subr.mxu0 %v573_v22  ;;  %811 = vmatpush2.msra.mxu1 %v436_v23  ;;  %v1088_v21 = vld [vmem:[%s6468_s8 + $0x5a0] sm:$0xff]  ;;  %v933_v22 = vld [vmem:[%s6468_s8 + $0xc8] sm:$0xff] }
 0x1dc   :  { %878 = vmatpush2.msra.mxu0 %v572_v24  ;;  %812 = vmatprep.subr.mxu1 %v433_v25  ;;  %v1085_v23 = vld [vmem:[%s6468_s8 + $0x588] sm:$0xff]  ;;  %v932_v24 = vld [vmem:[%s6468_s8 + $0xc0] sm:$0xff] }
 0x1dd   :  { %879 = vmatprep.subr.mxu0 %v569_v26  ;;  %813 = vmatpush2.msra.mxu1 %v432_v27  ;;  %v1084_v25 = vld [vmem:[%s6468_s8 + $0x580] sm:$0xff]  ;;  %v929_v26 = vld [vmem:[%s6468_s8 + $0xa8] sm:$0xff] }
 0x1de   :  { %880 = vmatpush2.msra.mxu0 %v568_v29  ;;  %814 = vmatprep.subr.mxu1 %v429_v31  ;;  %v1081_v27 = vld [vmem:[%s6468_s8 + $0x568] sm:$0xff]  ;;  %v928_v29 = vld [vmem:[%s6468_s8 + $0xa0] sm:$0xff] }
 0x1df   :  { %881 = vmatprep.subr.mxu0 %v565_v33  ;;  %815 = vmatpush2.msra.mxu1 %v428_v35  ;;  %v1080_v31 = vld [vmem:[%s6468_s8 + $0x560] sm:$0xff]  ;;  %v925_v33 = vld [vmem:[%s6468_s8 + $0x88] sm:$0xff] }
 0x1e0   :  { %882 = vmatpush2.msra.mxu0 %v564_v37  ;;  %816 = vmatprep.subr.mxu1 %v425_v38  ;;  %v1077_v35 = vld [vmem:[%s6468_s8 + $0x548] sm:$0xff]  ;;  %v924_v37 = vld [vmem:[%s6468_s8 + $0x80] sm:$0xff] }
 0x1e1   :  { %883 = vmatprep.subr.mxu0 %v561_v39  ;;  %817 = vmatpush2.msra.mxu1 %v424_v40  ;;  %v1076_v38 = vld [vmem:[%s6468_s8 + $0x540] sm:$0xff]  ;;  %v921_v39 = vld [vmem:[%s6468_s8 + $0x68] sm:$0xff] }
 0x1e2   :  { %884 = vmatpush2.msra.mxu0 %v560_v41  ;;  %818 = vmatprep.subr.mxu1 %v421_v42  ;;  %v1073_v40 = vld [vmem:[%s6468_s8 + $0x528] sm:$0xff]  ;;  %v920_v41 = vld [vmem:[%s6468_s8 + $0x60] sm:$0xff] }
 0x1e3   :  { %885 = vmatprep.subr.mxu0 %v557_v45  ;;  %819 = vmatpush2.msra.mxu1 %v420_v46  ;;  %v1072_v42 = vld [vmem:[%s6468_s8 + $0x520] sm:$0xff]  ;;  %v917_v45 = vld [vmem:[%s6468_s8 + $0x48] sm:$0xff] }
 0x1e4   :  { %886 = vmatpush2.msra.mxu0 %v556_v47  ;;  %820 = vmatprep.subr.mxu1 %v417_v48  ;;  %v1069_v46 = vld [vmem:[%s6468_s8 + $0x508] sm:$0xff]  ;;  %v916_v47 = vld [vmem:[%s6468_s8 + $0x40] sm:$0xff] }
 0x1e5   :  { %887 = vmatprep.subr.mxu0 %v553_v49  ;;  %821 = vmatpush2.msra.mxu1 %v416_v50  ;;  %v1068_v48 = vld [vmem:[%s6468_s8 + $0x500] sm:$0xff]  ;;  %v913_v49 = vld [vmem:[%s6468_s8 + $0x28] sm:$0xff] }
 0x1e6   :  { %888 = vmatpush2.msra.mxu0 %v552_v51  ;;  %822 = vmatprep.subr.mxu1 %v413_v53  ;;  %v1065_v50 = vld [vmem:[%s6468_s8 + $0x4e8] sm:$0xff]  ;;  %v912_v51 = vld [vmem:[%s6468_s8 + $0x20] sm:$0xff] }
 0x1e7   :  { %889 = vmatprep.subr.mxu0 %v549_v54  ;;  %823 = vmatpush2.msra.mxu1 %v412_v55  ;;  %v1064_v53 = vld [vmem:[%s6468_s8 + $0x4e0] sm:$0xff]  ;;  %v909_v54 = vld [vmem:[%s6468_s8 + $0x8] sm:$0xff] }
 0x1e8   :  { %890 = vmatpush2.msra.mxu0 %v548_v56  ;;  %824 = vmatprep.subr.mxu1 %v409_v57  ;;  %v1061_v55 = vld [vmem:[%s6468_s8 + $0x4c8] sm:$0xff]  ;;  %v908_v56 = vld [vmem:[%s6468_s8] sm:$0xff] }
 0x1e9   :  { %891 = vmatprep.subr.mxu0 %v545_v58  ;;  %825 = vmatpush2.msra.mxu1 %v408_v59  ;;  %v1060_v57 = vld [vmem:[%s6468_s8 + $0x4c0] sm:$0xff]  ;;  %v1033_v58 = vld [vmem:[%s6468_s8 + $0x3e8] sm:$0xff] }
 0x1ea   :  { %892 = vmatpush2.msra.mxu0 %v544_v60  ;;  %827 = vmatmul.mubr.f32.vlgmr.msra.gmra.mxu1 %v338_v43  ;;  %v960_v43 = vld [vmem:[%s6468_s8 + $0x1a0] sm:$0xff]  ;;  %v1057_v59 = vld [vmem:[%s6468_s8 + $0x4a8] sm:$0xff] }
 0x1eb   :  { %893 = vmatprep.subr.mxu0 %v541_v61  ;;  %1186 = vmatprep.subr.mxu1 %v969_v62  ;;  %v1032_v60 = vld [vmem:[%s6468_s8 + $0x3e0] sm:$0xff]  ;;  %v1029_v62 = vld [vmem:[%s6468_s8 + $0x3c8] sm:$0xff] }
 0x1ec   :  { %894 = vmatpush2.msra.mxu0 %v540_v63  ;;  %1187 = vmatpush1.msra.mxu1 %v968_v0  ;;  %v1056_v61 = vld [vmem:[%s6468_s8 + $0x4a0] sm:$0xff]  ;;  %v1053_v63 = vld [vmem:[%s6468_s8 + $0x488] sm:$0xff] }
 0x1ed   :  { %895 = vmatprep.subr.mxu0 %v537_v2  ;;  %1188 = vmatprep.subr.mxu1 %v965_v3  ;;  %v1028_v0 = vld [vmem:[%s6468_s8 + $0x3c0] sm:$0xff]  ;;  %v1025_v3 = vld [vmem:[%s6468_s8 + $0x3a8] sm:$0xff] }
 0x1ee   :  { %896 = vmatpush2.msra.mxu0 %v536_v4  ;;  %1189 = vmatpush1.msra.mxu1 %v964_v5  ;;  %v1052_v2 = vld [vmem:[%s6468_s8 + $0x480] sm:$0xff]  ;;  %v1049_v4 = vld [vmem:[%s6468_s8 + $0x468] sm:$0xff] }
 0x1ef   :  { %898 = vmatmul.mubr.f32.vlgmr.msra.gmra.mxu0 %v340_v52  ;;  %1190 = vmatprep.subr.mxu1 %v961_v36  ;;  %v948_v52 = vld [vmem:[%s6468_s8 + $0x140] sm:$0xff] }
 0x1f0   :  { %1191 = vmatpush1.msra.mxu1 %v960_v43  ;;  %1257 = vmatprep.subr.mxu0 %v1097_v11  ;;  %v1024_v5 = vld [vmem:[%s6468_s8 + $0x3a0] sm:$0xff]  ;;  %v1021_v43 = vld [vmem:[%s6468_s8 + $0x388] sm:$0xff] }
 0x1f1   :  { %1192 = vmatprep.subr.mxu1 %v957_v6  ;;  %1258 = vmatpush1.msra.mxu0 %v1096_v13  ;;  %v1048_v36 = vld [vmem:[%s6468_s8 + $0x460] sm:$0xff]  ;;  %v1045_v6 = vld [vmem:[%s6468_s8 + $0x448] sm:$0xff] }
 0x1f2   :  { %1193 = vmatpush1.msra.mxu1 %v956_v7  ;;  %1259 = vmatprep.subr.mxu0 %v1093_v15  ;;  %v1020_v7 = vld [vmem:[%s6468_s8 + $0x380] sm:$0xff]  ;;  %v1013_v11 = vld [vmem:[%s6468_s8 + $0x348] sm:$0xff] }
 0x1f3   :  { %1194 = vmatprep.subr.mxu1 %v953_v8  ;;  %1260 = vmatpush1.msra.mxu0 %v1092_v17  ;;  %v1044_v8 = vld [vmem:[%s6468_s8 + $0x440] sm:$0xff]  ;;  %v1009_v15 = vld [vmem:[%s6468_s8 + $0x328] sm:$0xff] }
 0x1f4   :  { %1195 = vmatpush1.msra.mxu1 %v952_v9  ;;  %1261 = vmatprep.subr.mxu0 %v1089_v19  ;;  %v1017_v9 = vld [vmem:[%s6468_s8 + $0x368] sm:$0xff]  ;;  %v1012_v13 = vld [vmem:[%s6468_s8 + $0x340] sm:$0xff] }
 0x1f5   :  { %1196 = vmatprep.subr.mxu1 %v949_v44  ;;  %1262 = vmatpush1.msra.mxu0 %v1088_v21  ;;  %v1041_v44 = vld [vmem:[%s6468_s8 + $0x428] sm:$0xff]  ;;  %v1008_v17 = vld [vmem:[%s6468_s8 + $0x320] sm:$0xff] }
 0x1f6   :  { %1197 = vmatpush1.msra.mxu1 %v948_v52  ;;  %1263 = vmatprep.subr.mxu0 %v1085_v23  ;;  %v1016_v52 = vld [vmem:[%s6468_s8 + $0x360] sm:$0xff]  ;;  %v1005_v19 = vld [vmem:[%s6468_s8 + $0x308] sm:$0xff] }
 0x1f7   :  { %1198 = vmatprep.subr.mxu1 %v945_v10  ;;  %1264 = vmatpush1.msra.mxu0 %v1084_v25  ;;  %v1040_v10 = vld [vmem:[%s6468_s8 + $0x420] sm:$0xff]  ;;  %v1001_v23 = vld [vmem:[%s6468_s8 + $0x2e8] sm:$0xff] }
 0x1f8   :  { %1199 = vmatpush1.msra.mxu1 %v944_v12  ;;  %1265 = vmatprep.subr.mxu0 %v1081_v27  ;;  %v1037_v12 = vld [vmem:[%s6468_s8 + $0x408] sm:$0xff]  ;;  %v1004_v21 = vld [vmem:[%s6468_s8 + $0x300] sm:$0xff] }
 0x1f9   :  { %1200 = vmatprep.subr.mxu1 %v941_v14  ;;  %1266 = vmatpush1.msra.mxu0 %v1080_v31  ;;  %v1036_v14 = vld [vmem:[%s6468_s8 + $0x400] sm:$0xff]  ;;  %v997_v27 = vld [vmem:[%s6468_s8 + $0x2c8] sm:$0xff] }
 0x1fa   :  { %1201 = vmatpush1.msra.mxu1 %v940_v16  ;;  %1267 = vmatprep.subr.mxu0 %v1077_v35  ;;  %v1161_v16 = vld [vmem:[%s6468_s8 + $0x7e8] sm:$0xff]  ;;  %v1000_v25 = vld [vmem:[%s6468_s8 + $0x2e0] sm:$0xff] }
 0x1fb   :  { %1202 = vmatprep.subr.mxu1 %v937_v18  ;;  %1268 = vmatpush1.msra.mxu0 %v1076_v38  ;;  %v1160_v18 = vld [vmem:[%s6468_s8 + $0x7e0] sm:$0xff]  ;;  %v993_v35 = vld [vmem:[%s6468_s8 + $0x2a8] sm:$0xff] }
 0x1fc   :  { %1203 = vmatpush1.msra.mxu1 %v936_v20  ;;  %1269 = vmatprep.subr.mxu0 %v1073_v40  ;;  %v1157_v20 = vld [vmem:[%s6468_s8 + $0x7c8] sm:$0xff]  ;;  %v996_v31 = vld [vmem:[%s6468_s8 + $0x2c0] sm:$0xff] }
 0x1fd   :  { %1204 = vmatprep.subr.mxu1 %v933_v22  ;;  %1270 = vmatpush1.msra.mxu0 %v1072_v42  ;;  %v1156_v22 = vld [vmem:[%s6468_s8 + $0x7c0] sm:$0xff]  ;;  %v989_v40 = vld [vmem:[%s6468_s8 + $0x288] sm:$0xff] }
 0x1fe   :  { %1205 = vmatpush1.msra.mxu1 %v932_v24  ;;  %1271 = vmatprep.subr.mxu0 %v1069_v46  ;;  %v1153_v24 = vld [vmem:[%s6468_s8 + $0x7a8] sm:$0xff]  ;;  %v992_v38 = vld [vmem:[%s6468_s8 + $0x2a0] sm:$0xff] }
 0x1ff   :  { %1206 = vmatprep.subr.mxu1 %v929_v26  ;;  %1272 = vmatpush1.msra.mxu0 %v1068_v48  ;;  %v1152_v26 = vld [vmem:[%s6468_s8 + $0x7a0] sm:$0xff]  ;;  %v985_v46 = vld [vmem:[%s6468_s8 + $0x268] sm:$0xff] }
 0x200   :  { %1207 = vmatpush1.msra.mxu1 %v928_v29  ;;  %1273 = vmatprep.subr.mxu0 %v1065_v50  ;;  %v1149_v29 = vld [vmem:[%s6468_s8 + $0x788] sm:$0xff]  ;;  %v988_v42 = vld [vmem:[%s6468_s8 + $0x280] sm:$0xff] }
 0x201   :  { %1208 = vmatprep.subr.mxu1 %v925_v33  ;;  %1274 = vmatpush1.msra.mxu0 %v1064_v53  ;;  %v1148_v33 = vld [vmem:[%s6468_s8 + $0x780] sm:$0xff]  ;;  %v981_v50 = vld [vmem:[%s6468_s8 + $0x248] sm:$0xff] }
 0x202   :  { %1209 = vmatpush1.msra.mxu1 %v924_v37  ;;  %1275 = vmatprep.subr.mxu0 %v1061_v55  ;;  %v1145_v37 = vld [vmem:[%s6468_s8 + $0x768] sm:$0xff]  ;;  %v984_v48 = vld [vmem:[%s6468_s8 + $0x260] sm:$0xff] }
 0x203   :  { %1210 = vmatprep.subr.mxu1 %v921_v39  ;;  %1276 = vmatpush1.msra.mxu0 %v1060_v57  ;;  %v1144_v39 = vld [vmem:[%s6468_s8 + $0x760] sm:$0xff]  ;;  %v977_v55 = vld [vmem:[%s6468_s8 + $0x228] sm:$0xff] }
 0x204   :  { %1211 = vmatpush1.msra.mxu1 %v920_v41  ;;  %1277 = vmatprep.subr.mxu0 %v1057_v59  ;;  %v1141_v41 = vld [vmem:[%s6468_s8 + $0x748] sm:$0xff]  ;;  %v980_v53 = vld [vmem:[%s6468_s8 + $0x240] sm:$0xff] }
 0x205   :  { %1212 = vmatprep.subr.mxu1 %v917_v45  ;;  %1278 = vmatpush1.msra.mxu0 %v1056_v61  ;;  %v1140_v45 = vld [vmem:[%s6468_s8 + $0x740] sm:$0xff]  ;;  %v973_v59 = vld [vmem:[%s6468_s8 + $0x208] sm:$0xff] }
 0x206   :  { %1213 = vmatpush1.msra.mxu1 %v916_v47  ;;  %1279 = vmatprep.subr.mxu0 %v1053_v63  ;;  %v1137_v47 = vld [vmem:[%s6468_s8 + $0x728] sm:$0xff]  ;;  %v976_v57 = vld [vmem:[%s6468_s8 + $0x220] sm:$0xff]  ;;  %v971_v63 = vld [vmem:[%s6468_s8 + $0x1f8] sm:$0xff] }
 0x207   :  { %1214 = vmatprep.subr.mxu1 %v913_v49  ;;  %1280 = vmatpush1.msra.mxu0 %v1052_v2  ;;  %v1136_v49 = vld [vmem:[%s6468_s8 + $0x720] sm:$0xff] }
 0x208   :  { %1215 = vmatpush1.msra.mxu1 %v912_v51  ;;  %1281 = vmatprep.subr.mxu0 %v1049_v4  ;;  %v1133_v51 = vld [vmem:[%s6468_s8 + $0x708] sm:$0xff]  ;;  %v972_v61 = vld [vmem:[%s6468_s8 + $0x200] sm:$0xff] }
 0x209   :  { %1216 = vmatprep.subr.mxu1 %v909_v54  ;;  %1282 = vmatpush1.msra.mxu0 %v1048_v36  ;;  %v1132_v54 = vld [vmem:[%s6468_s8 + $0x700] sm:$0xff] }
 0x20a   :  { %1217 = vmatpush1.msra.mxu1 %v908_v56  ;;  %1283 = vmatprep.subr.mxu0 %v1045_v6  ;;  %v1129_v56 = vld [vmem:[%s6468_s8 + $0x6e8] sm:$0xff]  ;;  %v1120_v2 = vld [vmem:[%s6468_s8 + $0x6a0] sm:$0xff] }
 0x20b   :  { %1218 = vmatprep.subr.mxu1 %v1033_v58  ;;  %1284 = vmatpush1.msra.mxu0 %v1044_v8  ;;  %v1128_v58 = vld [vmem:[%s6468_s8 + $0x6e0] sm:$0xff] }
 0x20c   :  { %1219 = vmatpush2.msra.mxu1 %v1032_v60  ;;  %1285 = vmatprep.subr.mxu0 %v1041_v44  ;;  %v1125_v60 = vld [vmem:[%s6468_s8 + $0x6c8] sm:$0xff]  ;;  %v1116_v4 = vld [vmem:[%s6468_s8 + $0x680] sm:$0xff] }
 0x20d   :  { %1220 = vmatprep.subr.mxu1 %v1029_v62  ;;  %1286 = vmatpush1.msra.mxu0 %v1040_v10  ;;  %v1124_v62 = vld [vmem:[%s6468_s8 + $0x6c0] sm:$0xff] }
 0x20e   :  { %1221 = vmatpush2.msra.mxu1 %v1028_v0  ;;  %1287 = vmatprep.subr.mxu0 %v1037_v12  ;;  %v1121_v0 = vld [vmem:[%s6468_s8 + $0x6a8] sm:$0xff]  ;;  %v1112_v36 = vld [vmem:[%s6468_s8 + $0x660] sm:$0xff] }
 0x20f   :  { %1222 = vmatprep.subr.mxu1 %v1025_v3  ;;  %1288 = vmatpush1.msra.mxu0 %v1036_v14  ;;  %v1117_v3 = vld [vmem:[%s6468_s8 + $0x688] sm:$0xff]  ;;  %v1108_v6 = vld [vmem:[%s6468_s8 + $0x640] sm:$0xff] }
 0x210   :  { %1223 = vmatpush2.msra.mxu1 %v1024_v5  ;;  %1289 = vmatprep.subr.mxu0 %v1161_v16  ;;  %v1113_v5 = vld [vmem:[%s6468_s8 + $0x668] sm:$0xff]  ;;  %v1104_v8 = vld [vmem:[%s6468_s8 + $0x620] sm:$0xff] }
 0x211   :  { %1224 = vmatprep.subr.mxu1 %v1021_v43  ;;  %1290 = vmatpush2.msra.mxu0 %v1160_v18  ;;  %v1109_v43 = vld [vmem:[%s6468_s8 + $0x648] sm:$0xff]  ;;  %v1100_v44 = vld [vmem:[%s6468_s8 + $0x600] sm:$0xff] }
 0x212   :  { %1225 = vmatpush2.msra.mxu1 %v1020_v7  ;;  %1291 = vmatprep.subr.mxu0 %v1157_v20  ;;  %v1105_v7 = vld [vmem:[%s6468_s8 + $0x628] sm:$0xff]  ;;  %v4450_v10 = vld [vmem:[%s6501_s3] sm:$0xf] }
 0x213   :  { %1226 = vmatprep.subr.mxu1 %v1017_v9  ;;  %1292 = vmatpush2.msra.mxu0 %v1156_v22  ;;  %v1101_v9 = vld [vmem:[%s6468_s8 + $0x608] sm:$0xff] }
 0x214   :  { %1227 = vmatpush2.msra.mxu1 %v1016_v52  ;;  %1293 = vmatprep.subr.mxu0 %v1153_v24  ;;  %v1099_v52 = vld [vmem:[%s6468_s8 + $0x5f8] sm:$0xff] }
 0x215   :  { %1228 = vmatprep.subr.mxu1 %v1013_v11  ;;  %1294 = vmatpush2.msra.mxu0 %v1152_v26  ;;  %v603_v11 = vrot.slane %v4450_v10, %v3650_v28  ;;  %v967_v24 = vld [vmem:[%s6468_s8 + $0x1d8] sm:$0xff] }
 0x216   :  { %1229 = vmatpush2.msra.mxu1 %v1012_v13  ;;  %1295 = vmatprep.subr.mxu0 %v1149_v29  ;;  %v607_v13 = vrot.slane %v4450_v10, %v3655_v30  ;;  %v963_v26 = vld [vmem:[%s6468_s8 + $0x1b8] sm:$0xff] }
 0x217   :  { %1230 = vmatprep.subr.mxu1 %v1009_v15  ;;  %1296 = vmatpush2.msra.mxu0 %v1148_v33  ;;  %v959_v29 = vld [vmem:[%s6468_s8 + $0x198] sm:$0xff] }
 0x218   :  { %1231 = vmatpush2.msra.mxu1 %v1008_v17  ;;  %1297 = vmatprep.subr.mxu0 %v1145_v37  ;;  %v955_v33 = vld [vmem:[%s6468_s8 + $0x178] sm:$0xff] }
 0x219   :  { %1232 = vmatprep.subr.mxu1 %v1005_v19  ;;  %1298 = vmatpush2.msra.mxu0 %v1144_v39  ;;  %v951_v37 = vld [vmem:[%s6468_s8 + $0x158] sm:$0xff] }
 0x21a   :  { %1233 = vmatpush2.msra.mxu1 %v1004_v21  ;;  %1299 = vmatprep.subr.mxu0 %v1141_v41  ;;  %v947_v39 = vld [vmem:[%s6468_s8 + $0x138] sm:$0xff] }
 0x21b   :  { %1234 = vmatprep.subr.mxu1 %v1001_v23  ;;  %1300 = vmatpush2.msra.mxu0 %v1140_v45  ;;  %v970_v23 = vld [vmem:[%s6468_s8 + $0x1f0] sm:$0xff]  ;;  %v943_v41 = vld [vmem:[%s6468_s8 + $0x118] sm:$0xff] }
 0x21c   :  { %1235 = vmatpush2.msra.mxu1 %v1000_v25  ;;  %1301 = vmatprep.subr.mxu0 %v1137_v47  ;;  %v966_v25 = vld [vmem:[%s6468_s8 + $0x1d0] sm:$0xff]  ;;  %v939_v45 = vld [vmem:[%s6468_s8 + $0xf8] sm:$0xff] }
 0x21d   :  { %1236 = vmatprep.subr.mxu1 %v997_v27  ;;  %1302 = vmatpush2.msra.mxu0 %v1136_v49  ;;  %v962_v27 = vld [vmem:[%s6468_s8 + $0x1b0] sm:$0xff]  ;;  %v935_v47 = vld [vmem:[%s6468_s8 + $0xd8] sm:$0xff] }
 0x21e   :  { %1237 = vmatpush2.msra.mxu1 %v996_v31  ;;  %1303 = vmatprep.subr.mxu0 %v1133_v51  ;;  %v958_v31 = vld [vmem:[%s6468_s8 + $0x190] sm:$0xff]  ;;  %v931_v49 = vld [vmem:[%s6468_s8 + $0xb8] sm:$0xff] }
 0x21f   :  { %1238 = vmatprep.subr.mxu1 %v993_v35  ;;  %1304 = vmatpush2.msra.mxu0 %v1132_v54  ;;  %v954_v35 = vld [vmem:[%s6468_s8 + $0x170] sm:$0xff]  ;;  %v927_v51 = vld [vmem:[%s6468_s8 + $0x98] sm:$0xff] }
 0x220   :  { %1239 = vmatpush2.msra.mxu1 %v992_v38  ;;  %1305 = vmatprep.subr.mxu0 %v1129_v56  ;;  %v950_v38 = vld [vmem:[%s6468_s8 + $0x150] sm:$0xff]  ;;  %v923_v54 = vld [vmem:[%s6468_s8 + $0x78] sm:$0xff] }
 0x221   :  { %1240 = vmatprep.subr.mxu1 %v989_v40  ;;  %1306 = vmatpush2.msra.mxu0 %v1128_v58  ;;  %v946_v40 = vld [vmem:[%s6468_s8 + $0x130] sm:$0xff]  ;;  %v919_v56 = vld [vmem:[%s6468_s8 + $0x58] sm:$0xff] }
 0x222   :  { %1241 = vmatpush2.msra.mxu1 %v988_v42  ;;  %1307 = vmatprep.subr.mxu0 %v1125_v60  ;;  %v942_v42 = vld [vmem:[%s6468_s8 + $0x110] sm:$0xff]  ;;  %v915_v58 = vld [vmem:[%s6468_s8 + $0x38] sm:$0xff] }
 0x223   :  { %1242 = vmatprep.subr.mxu1 %v985_v46  ;;  %1308 = vmatpush2.msra.mxu0 %v1124_v62  ;;  %v938_v46 = vld [vmem:[%s6468_s8 + $0xf0] sm:$0xff]  ;;  %v911_v60 = vld [vmem:[%s6468_s8 + $0x18] sm:$0xff] }
 0x224   :  { %1243 = vmatpush2.msra.mxu1 %v984_v48  ;;  %1309 = vmatprep.subr.mxu0 %v1121_v0  ;;  %v934_v48 = vld [vmem:[%s6468_s8 + $0xd0] sm:$0xff]  ;;  %v1035_v62 = vld [vmem:[%s6468_s8 + $0x3f8] sm:$0xff] }
 0x225   :  { %1244 = vmatprep.subr.mxu1 %v981_v50  ;;  %1310 = vmatpush2.msra.mxu0 %v1120_v2  ;;  %v930_v50 = vld [vmem:[%s6468_s8 + $0xb0] sm:$0xff]  ;;  %v1031_v0 = vld [vmem:[%s6468_s8 + $0x3d8] sm:$0xff] }
 0x226   :  { %1245 = vmatpush2.msra.mxu1 %v980_v53  ;;  %1311 = vmatprep.subr.mxu0 %v1117_v3  ;;  %v926_v53 = vld [vmem:[%s6468_s8 + $0x90] sm:$0xff]  ;;  %v1027_v3 = vld [vmem:[%s6468_s8 + $0x3b8] sm:$0xff] }
 0x227   :  { %1246 = vmatprep.subr.mxu1 %v977_v55  ;;  %1312 = vmatpush2.msra.mxu0 %v1116_v4  ;;  %v922_v55 = vld [vmem:[%s6468_s8 + $0x70] sm:$0xff] }
 0x228   :  { %1247 = vmatpush2.msra.mxu1 %v976_v57  ;;  %1313 = vmatprep.subr.mxu0 %v1113_v5  ;;  %v918_v57 = vld [vmem:[%s6468_s8 + $0x50] sm:$0xff]  ;;  %v1023_v5 = vld [vmem:[%s6468_s8 + $0x398] sm:$0xff] }
 0x229   :  { %1248 = vmatprep.subr.mxu1 %v973_v59  ;;  %1314 = vmatpush2.msra.mxu0 %v1112_v36  ;;  %v914_v59 = vld [vmem:[%s6468_s8 + $0x30] sm:$0xff] }
 0x22a   :  { %1249 = vmatpush2.msra.mxu1 %v972_v61  ;;  %1315 = vmatprep.subr.mxu0 %v1109_v43  ;;  %v910_v61 = vld [vmem:[%s6468_s8 + $0x10] sm:$0xff]  ;;  %v1019_v43 = vld [vmem:[%s6468_s8 + $0x378] sm:$0xff] }
 0x22b   :  { %1328 = vmatprep.subr.mxu1 %v971_v63  ;;  %1316 = vmatpush2.msra.mxu0 %v1108_v6  ;;  %v1034_v63 = vld [vmem:[%s6468_s8 + $0x3f0] sm:$0xff] }
 0x22c   :  { %1317 = vmatprep.subr.mxu0 %v1105_v7  ;;  %v1030_v2 = vld [vmem:[%s6468_s8 + $0x3d0] sm:$0xff]  ;;  %v1015_v7 = vld [vmem:[%s6468_s8 + $0x358] sm:$0xff] }
 0x22d   :  { %1318 = vmatpush2.msra.mxu0 %v1104_v8  ;;  %v1026_v4 = vld [vmem:[%s6468_s8 + $0x3b0] sm:$0xff] }
 0x22e   :  { %1319 = vmatprep.subr.mxu0 %v1101_v9  ;;  %v1022_v36 = vld [vmem:[%s6468_s8 + $0x390] sm:$0xff]  ;;  %v1011_v9 = vld [vmem:[%s6468_s8 + $0x338] sm:$0xff] }
 0x22f   :  { %1320 = vmatpush2.msra.mxu0 %v1100_v44  ;;  %v1018_v6 = vld [vmem:[%s6468_s8 + $0x370] sm:$0xff] }
 0x230   :  { %1399 = vmatprep.subr.mxu0 %v1099_v52  ;;  %v1014_v8 = vld [vmem:[%s6468_s8 + $0x350] sm:$0xff]  ;;  %v1007_v52 = vld [vmem:[%s6468_s8 + $0x318] sm:$0xff] }
 0x231   :  { %v1010_v44 = vld [vmem:[%s6468_s8 + $0x330] sm:$0xff] }
 0x26a   :  { %v686_v12 = vpop.f32.mrf.mxu1 }
 0x26b   :  { %v687_v15 = vadd.f32 %v686_v12, %v603_v11  ;;  %v1006_v11 = vld [vmem:[%s6468_s8 + $0x310] sm:$0xff]  ;;  %v1003_v12 = vld [vmem:[%s6468_s8 + $0x2f8] sm:$0xff] }
 0x26c   :  { %v688_v14 = vpop.f32.mrf.mxu1 }
 0x26d   :  { %v689_v17 = vadd.f32 %v688_v14, %v607_v13  ;;  %v1002_v13 = vld [vmem:[%s6468_s8 + $0x2f0] sm:$0xff]  ;;  %v999_v14 = vld [vmem:[%s6468_s8 + $0x2d8] sm:$0xff] }
 0x26e   :  { %v757_v16 = vpop.f32.mrf.mxu0 }
 0x26f   :  { %v4456_v18 = vadd.f32 %v757_v16, %v687_v15  ;;  %v998_v15 = vld [vmem:[%s6468_s8 + $0x2d0] sm:$0xff]  ;;  %v995_v16 = vld [vmem:[%s6468_s8 + $0x2b8] sm:$0xff] }
 0x270   :  { %v759_v19 = vpop.f32.mrf.mxu0 }
 0x271   :  { %v760_v20 = vadd.f32 %v759_v19, %v689_v17  ;;  %v904_v22 = vmax.f32 %v4456_v18, 0.0  ;;  %v994_v17 = vld [vmem:[%s6468_s8 + $0x2b0] sm:$0xff]  ;;  %v991_v19 = vld [vmem:[%s6468_s8 + $0x298] sm:$0xff] }
 0x272   :  { %v1090_v18 = vld [vmem:[%s6468_s8 + $0x5b0] sm:$0xff] }
 0x273   :  { %v905_v21 = vmax.f32 %v760_v20, 0.0 }
 0x275   :  { %1250 = vmatprep.mubr.f32.mxu1 %v905_v21 }
 0x276   :  { %1251 = vmatmul.mubr.f32.vlgmr.msra.gmra.mxu1 %v904_v22 }
 0x277   :  { %1329 = vmatpush1.msra.mxu1 %v970_v23  ;;  %1392 = vmatprep.mubr.f32.mxu1 %v905_v21  ;;  %v990_v21 = vld [vmem:[%s6468_s8 + $0x290] sm:$0xff]  ;;  %v611_v23 = vrot.slane %v4450_v10, %v3658_v32 }
 0x278   :  { %1330 = vmatprep.subr.mxu1 %v967_v24  ;;  %v987_v24 = vld [vmem:[%s6468_s8 + $0x278] sm:$0xff] }
 0x279   :  { %1331 = vmatpush1.msra.mxu1 %v966_v25  ;;  %v615_v25 = vrot.slane %v4450_v10, %v3661_v34  ;;  %v979_v10 = vld [vmem:[%s6468_s8 + $0x238] sm:$0xff] }
 0x27a   :  { %1332 = vmatprep.subr.mxu1 %v963_v26  ;;  %v986_v26 = vld [vmem:[%s6468_s8 + $0x270] sm:$0xff] }
 0x27b   :  { %1333 = vmatpush1.msra.mxu1 %v962_v27 }
 0x27c   :  { %1334 = vmatprep.subr.mxu1 %v959_v29  ;;  %v983_v29 = vld [vmem:[%s6468_s8 + $0x258] sm:$0xff] }
 0x27d   :  { %1335 = vmatpush1.msra.mxu1 %v958_v31  ;;  %v982_v31 = vld [vmem:[%s6468_s8 + $0x250] sm:$0xff] }
 0x27e   :  { %1336 = vmatprep.subr.mxu1 %v955_v33 }
 0x27f   :  { %1337 = vmatpush1.msra.mxu1 %v954_v35 }
 0x280   :  { %1338 = vmatprep.subr.mxu1 %v951_v37 }
 0x281   :  { %1339 = vmatpush1.msra.mxu1 %v950_v38  ;;  %v978_v38 = vld [vmem:[%s6468_s8 + $0x230] sm:$0xff] }
 0x282   :  { %1340 = vmatprep.subr.mxu1 %v947_v39 }
 0x283   :  { %1341 = vmatpush1.msra.mxu1 %v946_v40 }
 0x284   :  { %1342 = vmatprep.subr.mxu1 %v943_v41  ;;  %v975_v41 = vld [vmem:[%s6468_s8 + $0x218] sm:$0xff] }
 0x285   :  { %1343 = vmatpush1.msra.mxu1 %v942_v42 }
 0x286   :  { %1344 = vmatprep.subr.mxu1 %v939_v45  ;;  %v974_v45 = vld [vmem:[%s6468_s8 + $0x210] sm:$0xff] }
 0x287   :  { %1345 = vmatpush1.msra.mxu1 %v938_v46 }
 0x288   :  { %1346 = vmatprep.subr.mxu1 %v935_v47 }
 0x289   :  { %1347 = vmatpush1.msra.mxu1 %v934_v48  ;;  %v1098_v48 = vld [vmem:[%s6468_s8 + $0x5f0] sm:$0xff] }
 0x28a   :  { %1348 = vmatprep.subr.mxu1 %v931_v49  ;;  %v1095_v49 = vld [vmem:[%s6468_s8 + $0x5d8] sm:$0xff] }
 0x28b   :  { %1349 = vmatpush1.msra.mxu1 %v930_v50  ;;  %v1094_v50 = vld [vmem:[%s6468_s8 + $0x5d0] sm:$0xff] }
 0x28c   :  { %1350 = vmatprep.subr.mxu1 %v927_v51  ;;  %v1091_v51 = vld [vmem:[%s6468_s8 + $0x5b8] sm:$0xff] }
 0x28d   :  { %1351 = vmatpush1.msra.mxu1 %v926_v53  ;;  %v1504_v53 = vld [vmem:[%s6470_s10 + $0xf0] sm:$0xff] }
 0x28e   :  { %1352 = vmatprep.subr.mxu1 %v923_v54  ;;  %v1503_v54 = vld [vmem:[%s6470_s10 + $0xe8] sm:$0xff] }
 0x28f   :  { %1353 = vmatpush1.msra.mxu1 %v922_v55  ;;  %v1087_v55 = vld [vmem:[%s6468_s8 + $0x598] sm:$0xff] }
 0x290   :  { %1354 = vmatprep.subr.mxu1 %v919_v56  ;;  %v1502_v56 = vld [vmem:[%s6470_s10 + $0xe0] sm:$0xff] }
 0x291   :  { %1355 = vmatpush1.msra.mxu1 %v918_v57  ;;  %v1086_v57 = vld [vmem:[%s6468_s8 + $0x590] sm:$0xff] }
 0x292   :  { %1356 = vmatprep.subr.mxu1 %v915_v58  ;;  %v1501_v58 = vld [vmem:[%s6470_s10 + $0xd8] sm:$0xff] }
 0x293   :  { %1357 = vmatpush1.msra.mxu1 %v914_v59  ;;  %v1083_v59 = vld [vmem:[%s6468_s8 + $0x578] sm:$0xff] }
 0x294   :  { %1358 = vmatprep.subr.mxu1 %v911_v60  ;;  %v1500_v60 = vld [vmem:[%s6470_s10 + $0xd0] sm:$0xff] }
 0x295   :  { %1359 = vmatpush1.msra.mxu1 %v910_v61  ;;  %v1082_v61 = vld [vmem:[%s6468_s8 + $0x570] sm:$0xff] }
 0x296   :  { %1360 = vmatprep.subr.mxu1 %v1035_v62  ;;  %v1499_v62 = vld [vmem:[%s6470_s10 + $0xc8] sm:$0xff] }
 0x297   :  { %1361 = vmatpush2.msra.mxu1 %v1034_v63  ;;  %v1079_v63 = vld [vmem:[%s6468_s8 + $0x558] sm:$0xff] }
 0x298   :  { %1362 = vmatprep.subr.mxu1 %v1031_v0  ;;  %v1498_v0 = vld [vmem:[%s6470_s10 + $0xc0] sm:$0xff] }
 0x299   :  { %1363 = vmatpush2.msra.mxu1 %v1030_v2  ;;  %v1078_v2 = vld [vmem:[%s6468_s8 + $0x550] sm:$0xff] }
 0x29a   :  { %1364 = vmatprep.subr.mxu1 %v1027_v3  ;;  %v1497_v3 = vld [vmem:[%s6470_s10 + $0xb8] sm:$0xff] }
 0x29b   :  { %1365 = vmatpush2.msra.mxu1 %v1026_v4  ;;  %v1075_v4 = vld [vmem:[%s6468_s8 + $0x538] sm:$0xff] }
 0x29c   :  { %1366 = vmatprep.subr.mxu1 %v1023_v5  ;;  %v1496_v5 = vld [vmem:[%s6470_s10 + $0xb0] sm:$0xff] }
 0x29d   :  { %1367 = vmatpush2.msra.mxu1 %v1022_v36  ;;  %v1074_v36 = vld [vmem:[%s6468_s8 + $0x530] sm:$0xff] }
 0x29e   :  { %1368 = vmatprep.subr.mxu1 %v1019_v43  ;;  %v1495_v43 = vld [vmem:[%s6470_s10 + $0xa8] sm:$0xff] }
 0x29f   :  { %1369 = vmatpush2.msra.mxu1 %v1018_v6  ;;  %v1071_v6 = vld [vmem:[%s6468_s8 + $0x518] sm:$0xff] }
 0x2a0   :  { %1370 = vmatprep.subr.mxu1 %v1015_v7  ;;  %v1494_v7 = vld [vmem:[%s6470_s10 + $0xa0] sm:$0xff] }
 0x2a1   :  { %1371 = vmatpush2.msra.mxu1 %v1014_v8  ;;  %v1070_v8 = vld [vmem:[%s6468_s8 + $0x510] sm:$0xff] }
 0x2a2   :  { %1372 = vmatprep.subr.mxu1 %v1011_v9  ;;  %v1493_v9 = vld [vmem:[%s6470_s10 + $0x98] sm:$0xff] }
 0x2a3   :  { %1373 = vmatpush2.msra.mxu1 %v1010_v44  ;;  %v1067_v44 = vld [vmem:[%s6468_s8 + $0x4f8] sm:$0xff] }
 0x2a4   :  { %1374 = vmatprep.subr.mxu1 %v1007_v52  ;;  %v1492_v52 = vld [vmem:[%s6470_s10 + $0x90] sm:$0xff] }
 0x2a5   :  { %1375 = vmatpush2.msra.mxu1 %v1006_v11  ;;  %v1066_v11 = vld [vmem:[%s6468_s8 + $0x4f0] sm:$0xff] }
 0x2a6   :  { %1376 = vmatprep.subr.mxu1 %v1003_v12  ;;  %v1491_v12 = vld [vmem:[%s6470_s10 + $0x88] sm:$0xff] }
 0x2a7   :  { %1377 = vmatpush2.msra.mxu1 %v1002_v13  ;;  %v1063_v13 = vld [vmem:[%s6468_s8 + $0x4d8] sm:$0xff] }
 0x2a8   :  { %1378 = vmatprep.subr.mxu1 %v999_v14  ;;  %v1490_v14 = vld [vmem:[%s6470_s10 + $0x80] sm:$0xff] }
 0x2a9   :  { %1379 = vmatpush2.msra.mxu1 %v998_v15  ;;  %v1062_v15 = vld [vmem:[%s6468_s8 + $0x4d0] sm:$0xff] }
 0x2aa   :  { %v828_v20 = vpop.f32.mrf.mxu1  ;;  %1380 = vmatprep.subr.mxu1 %v995_v16  ;;  %v1489_v16 = vld [vmem:[%s6470_s10 + $0x78] sm:$0xff] }
 0x2ab   :  { %1381 = vmatpush2.msra.mxu1 %v994_v17  ;;  %v829_v33 = vadd.f32 %v828_v20, %v611_v23  ;;  %v1059_v17 = vld [vmem:[%s6468_s8 + $0x4b8] sm:$0xff]  ;;  %v1058_v20 = vld [vmem:[%s6468_s8 + $0x4b0] sm:$0xff] }
 0x2ac   :  { %1382 = vmatprep.subr.mxu1 %v991_v19  ;;  %v830_v27 = vpop.f32.mrf.mxu1  ;;  %v1488_v19 = vld [vmem:[%s6470_s10 + $0x70] sm:$0xff]  ;;  %v1055_v23 = vld [vmem:[%s6468_s8 + $0x498] sm:$0xff] }
 0x2ad   :  { %1383 = vmatpush2.msra.mxu1 %v990_v21  ;;  %v831_v37 = vadd.f32 %v830_v27, %v615_v25  ;;  %v1487_v21 = vld [vmem:[%s6470_s10 + $0x68] sm:$0xff]  ;;  %v1054_v25 = vld [vmem:[%s6468_s8 + $0x490] sm:$0xff]  ;;  %v1051_v27 = vld [vmem:[%s6468_s8 + $0x478] sm:$0xff] }
 0x2ae   :  { %1384 = vmatprep.subr.mxu1 %v987_v24  ;;  %v1486_v24 = vld [vmem:[%s6470_s10 + $0x60] sm:$0xff] }
 0x2af   :  { %v899_v35 = vpop.f32.mrf.mxu0  ;;  %1385 = vmatpush2.msra.mxu1 %v986_v26  ;;  %v1485_v26 = vld [vmem:[%s6470_s10 + $0x58] sm:$0xff] }
 0x2b0   :  { %1386 = vmatprep.subr.mxu1 %v983_v29  ;;  %v4648_v39 = vadd.f32 %v899_v35, %v829_v33  ;;  %v1484_v29 = vld [vmem:[%s6470_s10 + $0x50] sm:$0xff]  ;;  %v1483_v33 = vld [vmem:[%s6470_s10 + $0x48] sm:$0xff]  ;;  %v1047_v35 = vld [vmem:[%s6468_s8 + $0x458] sm:$0xff] }
 0x2b1   :  { %v901_v40 = vpop.f32.mrf.mxu0  ;;  %1387 = vmatpush2.msra.mxu1 %v982_v31  ;;  %v1050_v31 = vld [vmem:[%s6468_s8 + $0x470] sm:$0xff] }
 0x2b2   :  { %v902_v42 = vadd.f32 %v901_v40, %v831_v37  ;;  %1388 = vmatprep.subr.mxu1 %v979_v10  ;;  %v906_v47 = vmax.f32 %v4648_v39, 0.0  ;;  %v1482_v10 = vld [vmem:[%s6470_s10 + $0x40] sm:$0xff]  ;;  %v1046_v37 = vld [vmem:[%s6468_s8 + $0x450] sm:$0xff]  ;;  %v1043_v40 = vld [vmem:[%s6468_s8 + $0x438] sm:$0xff] }
 0x2b3   :  { %1389 = vmatpush2.msra.mxu1 %v978_v38  ;;  %v1481_v38 = vld [vmem:[%s6470_s10 + $0x38] sm:$0xff]  ;;  %v1510_v39 = vld [vmem:[%s6470_s10 + $0x120] sm:$0xff] }
 0x2b4   :  { %v907_v46 = vmax.f32 %v902_v42, 0.0  ;;  %1390 = vmatprep.subr.mxu1 %v975_v41  ;;  %v1480_v41 = vld [vmem:[%s6470_s10 + $0x30] sm:$0xff] }
 0x2b5   :  { %1391 = vmatpush2.msra.mxu1 %v974_v45  ;;  %v1042_v42 = vld [vmem:[%s6468_s8 + $0x430] sm:$0xff]  ;;  %v1479_v45 = vld [vmem:[%s6470_s10 + $0x28] sm:$0xff] }
 0x2b6   :  { %1321 = vmatprep.mubr.f32.mxu0 %v907_v46  ;;  %1393 = vmatmul.mubr.f32.vlgmr.msra.gmra.mxu1 %v904_v22  ;;  %v1505_v22 = vld [vmem:[%s6470_s10 + $0xf8] sm:$0xff] }
 0x2b7   :  { %1322 = vmatmul.mubr.f32.vlgmr.msra.gmra.mxu0 %v906_v47  ;;  %1614 = vmatprep.subr.mxu1 %v1505_v22  ;;  %v1162_v22 = vld [vmem:[%s6468_s8 + $0x7f0] sm:$0xff] }
 0x2b8   :  { %1400 = vmatpush1.msra.mxu0 %v1098_v48  ;;  %1463 = vmatprep.mubr.f32.mxu0 %v907_v46  ;;  %v1039_v46 = vld [vmem:[%s6468_s8 + $0x418] sm:$0xff]  ;;  %v1478_v48 = vld [vmem:[%s6470_s10 + $0x20] sm:$0xff] }
 0x2b9   :  { %1401 = vmatprep.subr.mxu0 %v1095_v49  ;;  %1615 = vmatpush1.msra.mxu1 %v1504_v53  ;;  %v1038_v49 = vld [vmem:[%s6468_s8 + $0x410] sm:$0xff]  ;;  %v1475_v53 = vld [vmem:[%s6470_s10 + $0x8] sm:$0xff] }
 0x2ba   :  { %1402 = vmatpush1.msra.mxu0 %v1094_v50  ;;  %1616 = vmatprep.subr.mxu1 %v1503_v54  ;;  %v1477_v50 = vld [vmem:[%s6470_s10 + $0x18] sm:$0xff] }
 0x2bb   :  { %1403 = vmatprep.subr.mxu0 %v1091_v51  ;;  %1617 = vmatpush1.msra.mxu1 %v1502_v56  ;;  %v1163_v51 = vld [vmem:[%s6468_s8 + $0x7f8] sm:$0xff]  ;;  %v1158_v56 = vld [vmem:[%s6468_s8 + $0x7d0] sm:$0xff] }
 0x2bc   :  { %1404 = vmatpush1.msra.mxu0 %v1090_v18  ;;  %1618 = vmatprep.subr.mxu1 %v1501_v58  ;;  %v1476_v18 = vld [vmem:[%s6470_s10 + $0x10] sm:$0xff]  ;;  %v1159_v54 = vld [vmem:[%s6468_s8 + $0x7d8] sm:$0xff] }
 0x2bd   :  { %1405 = vmatprep.subr.mxu0 %v1087_v55  ;;  %1619 = vmatpush1.msra.mxu1 %v1500_v60  ;;  %v1474_v55 = vld [vmem:[%s6470_s10] sm:$0xff]  ;;  %v1155_v58 = vld [vmem:[%s6468_s8 + $0x7b8] sm:$0xff]  ;;  %v1154_v60 = vld [vmem:[%s6468_s8 + $0x7b0] sm:$0xff] }
 0x2be   :  { %1406 = vmatpush1.msra.mxu0 %v1086_v57  ;;  %1620 = vmatprep.subr.mxu1 %v1499_v62  ;;  %v1537_v57 = vld [vmem:[%s6470_s10 + $0x1f8] sm:$0xff] }
 0x2bf   :  { %1407 = vmatprep.subr.mxu0 %v1083_v59  ;;  %1621 = vmatpush1.msra.mxu1 %v1498_v0  ;;  %v1536_v59 = vld [vmem:[%s6470_s10 + $0x1f0] sm:$0xff]  ;;  %v1151_v62 = vld [vmem:[%s6468_s8 + $0x798] sm:$0xff] }
 0x2c0   :  { %1408 = vmatpush1.msra.mxu0 %v1082_v61  ;;  %1622 = vmatprep.subr.mxu1 %v1497_v3  ;;  %v1535_v61 = vld [vmem:[%s6470_s10 + $0x1e8] sm:$0xff]  ;;  %v1150_v0 = vld [vmem:[%s6468_s8 + $0x790] sm:$0xff]  ;;  %v1147_v3 = vld [vmem:[%s6468_s8 + $0x778] sm:$0xff] }
 0x2c1   :  { %1409 = vmatprep.subr.mxu0 %v1079_v63  ;;  %1623 = vmatpush1.msra.mxu1 %v1496_v5  ;;  %v1534_v63 = vld [vmem:[%s6470_s10 + $0x1e0] sm:$0xff]  ;;  %v1146_v5 = vld [vmem:[%s6468_s8 + $0x770] sm:$0xff] }
 0x2c2   :  { %1410 = vmatpush1.msra.mxu0 %v1078_v2  ;;  %1624 = vmatprep.subr.mxu1 %v1495_v43  ;;  %v1533_v2 = vld [vmem:[%s6470_s10 + $0x1d8] sm:$0xff] }
 0x2c3   :  { %1411 = vmatprep.subr.mxu0 %v1075_v4  ;;  %1625 = vmatpush1.msra.mxu1 %v1494_v7  ;;  %v1532_v4 = vld [vmem:[%s6470_s10 + $0x1d0] sm:$0xff]  ;;  %v1143_v43 = vld [vmem:[%s6468_s8 + $0x758] sm:$0xff] }
 0x2c4   :  { %1412 = vmatpush1.msra.mxu0 %v1074_v36  ;;  %1626 = vmatprep.subr.mxu1 %v1493_v9  ;;  %v1531_v36 = vld [vmem:[%s6470_s10 + $0x1c8] sm:$0xff]  ;;  %v1142_v7 = vld [vmem:[%s6468_s8 + $0x750] sm:$0xff]  ;;  %v1139_v9 = vld [vmem:[%s6468_s8 + $0x738] sm:$0xff] }
 0x2c5   :  { %1413 = vmatprep.subr.mxu0 %v1071_v6  ;;  %1627 = vmatpush1.msra.mxu1 %v1492_v52  ;;  %v1530_v6 = vld [vmem:[%s6470_s10 + $0x1c0] sm:$0xff]  ;;  %v1138_v52 = vld [vmem:[%s6468_s8 + $0x730] sm:$0xff] }
 0x2c6   :  { %1414 = vmatpush1.msra.mxu0 %v1070_v8  ;;  %1628 = vmatprep.subr.mxu1 %v1491_v12  ;;  %v1529_v8 = vld [vmem:[%s6470_s10 + $0x1b8] sm:$0xff] }
 0x2c7   :  { %1415 = vmatprep.subr.mxu0 %v1067_v44  ;;  %1629 = vmatpush1.msra.mxu1 %v1490_v14  ;;  %v1528_v44 = vld [vmem:[%s6470_s10 + $0x1b0] sm:$0xff]  ;;  %v1135_v12 = vld [vmem:[%s6468_s8 + $0x718] sm:$0xff] }
 0x2c8   :  { %1416 = vmatpush1.msra.mxu0 %v1066_v11  ;;  %1630 = vmatprep.subr.mxu1 %v1489_v16  ;;  %v1527_v11 = vld [vmem:[%s6470_s10 + $0x1a8] sm:$0xff]  ;;  %v1134_v14 = vld [vmem:[%s6468_s8 + $0x710] sm:$0xff]  ;;  %v1131_v16 = vld [vmem:[%s6468_s8 + $0x6f8] sm:$0xff] }
 0x2c9   :  { %1417 = vmatprep.subr.mxu0 %v1063_v13  ;;  %1631 = vmatpush1.msra.mxu1 %v1488_v19  ;;  %v1526_v13 = vld [vmem:[%s6470_s10 + $0x1a0] sm:$0xff]  ;;  %v1130_v19 = vld [vmem:[%s6468_s8 + $0x6f0] sm:$0xff] }
 0x2ca   :  { %1418 = vmatpush1.msra.mxu0 %v1062_v15  ;;  %1632 = vmatprep.subr.mxu1 %v1487_v21  ;;  %v1525_v15 = vld [vmem:[%s6470_s10 + $0x198] sm:$0xff] }
 0x2cb   :  { %1419 = vmatprep.subr.mxu0 %v1059_v17  ;;  %1633 = vmatpush1.msra.mxu1 %v1486_v24  ;;  %v1524_v17 = vld [vmem:[%s6470_s10 + $0x190] sm:$0xff]  ;;  %v1127_v21 = vld [vmem:[%s6468_s8 + $0x6d8] sm:$0xff] }
 0x2cc   :  { %1420 = vmatpush1.msra.mxu0 %v1058_v20  ;;  %1634 = vmatprep.subr.mxu1 %v1485_v26  ;;  %v1523_v20 = vld [vmem:[%s6470_s10 + $0x188] sm:$0xff]  ;;  %v1126_v24 = vld [vmem:[%s6468_s8 + $0x6d0] sm:$0xff]  ;;  %v1123_v26 = vld [vmem:[%s6468_s8 + $0x6b8] sm:$0xff] }
 0x2cd   :  { %1421 = vmatprep.subr.mxu0 %v1055_v23  ;;  %1635 = vmatpush1.msra.mxu1 %v1484_v29  ;;  %v1522_v23 = vld [vmem:[%s6470_s10 + $0x180] sm:$0xff]  ;;  %v1122_v29 = vld [vmem:[%s6468_s8 + $0x6b0] sm:$0xff] }
 0x2ce   :  { %1422 = vmatpush1.msra.mxu0 %v1054_v25  ;;  %1636 = vmatprep.subr.mxu1 %v1483_v33  ;;  %v1521_v25 = vld [vmem:[%s6470_s10 + $0x178] sm:$0xff] }
 0x2cf   :  { %1423 = vmatprep.subr.mxu0 %v1051_v27  ;;  %1637 = vmatpush1.msra.mxu1 %v1482_v10  ;;  %v1520_v27 = vld [vmem:[%s6470_s10 + $0x170] sm:$0xff]  ;;  %v1119_v33 = vld [vmem:[%s6468_s8 + $0x698] sm:$0xff] }
 0x2d0   :  { %1424 = vmatpush1.msra.mxu0 %v1050_v31  ;;  %1638 = vmatprep.subr.mxu1 %v1481_v38  ;;  %v1519_v31 = vld [vmem:[%s6470_s10 + $0x168] sm:$0xff]  ;;  %v1118_v10 = vld [vmem:[%s6468_s8 + $0x690] sm:$0xff]  ;;  %v1115_v38 = vld [vmem:[%s6468_s8 + $0x678] sm:$0xff] }
 0x2d1   :  { %1425 = vmatprep.subr.mxu0 %v1047_v35  ;;  %1639 = vmatpush1.msra.mxu1 %v1480_v41  ;;  %v1518_v35 = vld [vmem:[%s6470_s10 + $0x160] sm:$0xff]  ;;  %v1114_v41 = vld [vmem:[%s6468_s8 + $0x670] sm:$0xff] }
 0x2d2   :  { %1426 = vmatpush1.msra.mxu0 %v1046_v37  ;;  %1640 = vmatprep.subr.mxu1 %v1479_v45  ;;  %v1517_v37 = vld [vmem:[%s6470_s10 + $0x158] sm:$0xff] }
 0x2d3   :  { %1427 = vmatprep.subr.mxu0 %v1043_v40  ;;  %1641 = vmatpush1.msra.mxu1 %v1478_v48  ;;  %v1516_v40 = vld [vmem:[%s6470_s10 + $0x150] sm:$0xff]  ;;  %v1111_v45 = vld [vmem:[%s6468_s8 + $0x658] sm:$0xff] }
 0x2d4   :  { %1428 = vmatpush1.msra.mxu0 %v1042_v42  ;;  %1642 = vmatprep.subr.mxu1 %v1477_v50  ;;  %v1515_v42 = vld [vmem:[%s6470_s10 + $0x148] sm:$0xff]  ;;  %v1110_v48 = vld [vmem:[%s6468_s8 + $0x650] sm:$0xff] }
 0x2d5   :  { %1429 = vmatprep.subr.mxu0 %v1039_v46  ;;  %1643 = vmatpush1.msra.mxu1 %v1476_v18  ;;  %v1514_v46 = vld [vmem:[%s6470_s10 + $0x140] sm:$0xff]  ;;  %v1106_v50 = vld [vmem:[%s6468_s8 + $0x630] sm:$0xff] }
 0x2d6   :  { %1430 = vmatpush1.msra.mxu0 %v1038_v49  ;;  %1644 = vmatprep.subr.mxu1 %v1475_v53  ;;  %v1107_v49 = vld [vmem:[%s6468_s8 + $0x638] sm:$0xff]  ;;  %v1102_v18 = vld [vmem:[%s6468_s8 + $0x610] sm:$0xff] }
 0x2d7   :  { %1431 = vmatprep.subr.mxu0 %v1163_v51  ;;  %1645 = vmatpush1.msra.mxu1 %v1474_v55  ;;  %v1103_v51 = vld [vmem:[%s6468_s8 + $0x618] sm:$0xff]  ;;  %v1512_v53 = vld [vmem:[%s6470_s10 + $0x130] sm:$0xff]  ;;  %s2878_s8 = sshll.u32 %s3066_s4, 4  ;;  %s2879_s8 = int_to_ptr.vmem [resolvable:$true] %s2878_s8 }
 0x2d8   :  { %1432 = vmatpush2.msra.mxu0 %v1162_v22  ;;  %1646 = vmatprep.subr.mxu1 %v1537_v57  ;;  %v1513_v22 = vld [vmem:[%s6470_s10 + $0x138] sm:$0xff]  ;;  %v1508_v55 = vld [vmem:[%s6470_s10 + $0x110] sm:$0xff]  ;;  %v1506_v57 = vld [vmem:[%s6470_s10 + $0x100] sm:$0xff] }
 0x2d9   :  { %1433 = vmatprep.subr.mxu0 %v1159_v54  ;;  %1647 = vmatpush2.msra.mxu1 %v1536_v59  ;;  %v1511_v54 = vld [vmem:[%s6470_s10 + $0x128] sm:$0xff]  ;;  %v1568_v59 = vld [vmem:[%s6470_s10 + $0x2f0] sm:$0xff] }
 0x2da   :  { %1434 = vmatpush2.msra.mxu0 %v1158_v56  ;;  %1648 = vmatprep.subr.mxu1 %v1535_v61  ;;  %v1507_v56 = vld [vmem:[%s6470_s10 + $0x108] sm:$0xff]  ;;  %v1566_v61 = vld [vmem:[%s6470_s10 + $0x2e0] sm:$0xff] }
 0x2db   :  { %1435 = vmatprep.subr.mxu0 %v1155_v58  ;;  %1649 = vmatpush2.msra.mxu1 %v1534_v63  ;;  %v1569_v58 = vld [vmem:[%s6470_s10 + $0x2f8] sm:$0xff]  ;;  %v1564_v63 = vld [vmem:[%s6470_s10 + $0x2d0] sm:$0xff] }
 0x2dc   :  { %1436 = vmatpush2.msra.mxu0 %v1154_v60  ;;  %1650 = vmatprep.subr.mxu1 %v1533_v2  ;;  %v1567_v60 = vld [vmem:[%s6470_s10 + $0x2e8] sm:$0xff]  ;;  %v1562_v2 = vld [vmem:[%s6470_s10 + $0x2c0] sm:$0xff] }
 0x2dd   :  { %1437 = vmatprep.subr.mxu0 %v1151_v62  ;;  %1651 = vmatpush2.msra.mxu1 %v1532_v4  ;;  %v1565_v62 = vld [vmem:[%s6470_s10 + $0x2d8] sm:$0xff]  ;;  %v1560_v4 = vld [vmem:[%s6470_s10 + $0x2b0] sm:$0xff] }
 0x2de   :  { %1438 = vmatpush2.msra.mxu0 %v1150_v0  ;;  %1652 = vmatprep.subr.mxu1 %v1531_v36  ;;  %v1563_v0 = vld [vmem:[%s6470_s10 + $0x2c8] sm:$0xff]  ;;  %v1558_v36 = vld [vmem:[%s6470_s10 + $0x2a0] sm:$0xff] }
 0x2df   :  { %1439 = vmatprep.subr.mxu0 %v1147_v3  ;;  %1653 = vmatpush2.msra.mxu1 %v1530_v6  ;;  %v1561_v3 = vld [vmem:[%s6470_s10 + $0x2b8] sm:$0xff]  ;;  %v1556_v6 = vld [vmem:[%s6470_s10 + $0x290] sm:$0xff] }
 0x2e0   :  { %1440 = vmatpush2.msra.mxu0 %v1146_v5  ;;  %1654 = vmatprep.subr.mxu1 %v1529_v8  ;;  %v1559_v5 = vld [vmem:[%s6470_s10 + $0x2a8] sm:$0xff]  ;;  %v1554_v8 = vld [vmem:[%s6470_s10 + $0x280] sm:$0xff] }
 0x2e1   :  { %1441 = vmatprep.subr.mxu0 %v1143_v43  ;;  %1655 = vmatpush2.msra.mxu1 %v1528_v44  ;;  %v1557_v43 = vld [vmem:[%s6470_s10 + $0x298] sm:$0xff]  ;;  %v1552_v44 = vld [vmem:[%s6470_s10 + $0x270] sm:$0xff] }
 0x2e2   :  { %1442 = vmatpush2.msra.mxu0 %v1142_v7  ;;  %1656 = vmatprep.subr.mxu1 %v1527_v11  ;;  %v1555_v7 = vld [vmem:[%s6470_s10 + $0x288] sm:$0xff]  ;;  %v1550_v11 = vld [vmem:[%s6470_s10 + $0x260] sm:$0xff] }
 0x2e3   :  { %1443 = vmatprep.subr.mxu0 %v1139_v9  ;;  %1657 = vmatpush2.msra.mxu1 %v1526_v13  ;;  %v1553_v9 = vld [vmem:[%s6470_s10 + $0x278] sm:$0xff]  ;;  %v1548_v13 = vld [vmem:[%s6470_s10 + $0x250] sm:$0xff] }
 0x2e4   :  { %1444 = vmatpush2.msra.mxu0 %v1138_v52  ;;  %1658 = vmatprep.subr.mxu1 %v1525_v15  ;;  %v1551_v52 = vld [vmem:[%s6470_s10 + $0x268] sm:$0xff]  ;;  %v1546_v15 = vld [vmem:[%s6470_s10 + $0x240] sm:$0xff] }
 0x2e5   :  { %1445 = vmatprep.subr.mxu0 %v1135_v12  ;;  %1659 = vmatpush2.msra.mxu1 %v1524_v17  ;;  %v1549_v12 = vld [vmem:[%s6470_s10 + $0x258] sm:$0xff]  ;;  %v1544_v17 = vld [vmem:[%s6470_s10 + $0x230] sm:$0xff] }
 0x2e6   :  { %1446 = vmatpush2.msra.mxu0 %v1134_v14  ;;  %1660 = vmatprep.subr.mxu1 %v1523_v20  ;;  %v1547_v14 = vld [vmem:[%s6470_s10 + $0x248] sm:$0xff]  ;;  %v1542_v20 = vld [vmem:[%s6470_s10 + $0x220] sm:$0xff] }
 0x2e7   :  { %1447 = vmatprep.subr.mxu0 %v1131_v16  ;;  %1661 = vmatpush2.msra.mxu1 %v1522_v23  ;;  %v1545_v16 = vld [vmem:[%s6470_s10 + $0x238] sm:$0xff]  ;;  %v1540_v23 = vld [vmem:[%s6470_s10 + $0x210] sm:$0xff] }
 0x2e8   :  { %1448 = vmatpush2.msra.mxu0 %v1130_v19  ;;  %1662 = vmatprep.subr.mxu1 %v1521_v25  ;;  %v1543_v19 = vld [vmem:[%s6470_s10 + $0x228] sm:$0xff]  ;;  %v1538_v25 = vld [vmem:[%s6470_s10 + $0x200] sm:$0xff] }
 0x2e9   :  { %1449 = vmatprep.subr.mxu0 %v1127_v21  ;;  %1663 = vmatpush2.msra.mxu1 %v1520_v27  ;;  %v1541_v21 = vld [vmem:[%s6470_s10 + $0x218] sm:$0xff]  ;;  %v1600_v27 = vld [vmem:[%s6470_s10 + $0x3f0] sm:$0xff] }
 0x2ea   :  { %1450 = vmatpush2.msra.mxu0 %v1126_v24  ;;  %1664 = vmatprep.subr.mxu1 %v1519_v31  ;;  %v1539_v24 = vld [vmem:[%s6470_s10 + $0x208] sm:$0xff]  ;;  %v1598_v31 = vld [vmem:[%s6470_s10 + $0x3e0] sm:$0xff] }
 0x2eb   :  { %1451 = vmatprep.subr.mxu0 %v1123_v26  ;;  %1665 = vmatpush2.msra.mxu1 %v1518_v35  ;;  %v1601_v26 = vld [vmem:[%s6470_s10 + $0x3f8] sm:$0xff]  ;;  %v1596_v35 = vld [vmem:[%s6470_s10 + $0x3d0] sm:$0xff] }
 0x2ec   :  { %1452 = vmatpush2.msra.mxu0 %v1122_v29  ;;  %1666 = vmatprep.subr.mxu1 %v1517_v37  ;;  %v1599_v29 = vld [vmem:[%s6470_s10 + $0x3e8] sm:$0xff]  ;;  %v1594_v37 = vld [vmem:[%s6470_s10 + $0x3c0] sm:$0xff] }
 0x2ed   :  { %1453 = vmatprep.subr.mxu0 %v1119_v33  ;;  %1667 = vmatpush2.msra.mxu1 %v1516_v40  ;;  %v1597_v33 = vld [vmem:[%s6470_s10 + $0x3d8] sm:$0xff]  ;;  %v1592_v40 = vld [vmem:[%s6470_s10 + $0x3b0] sm:$0xff] }
 0x2ee   :  { %1454 = vmatpush2.msra.mxu0 %v1118_v10  ;;  %1668 = vmatprep.subr.mxu1 %v1515_v42  ;;  %v1595_v10 = vld [vmem:[%s6470_s10 + $0x3c8] sm:$0xff]  ;;  %v1590_v42 = vld [vmem:[%s6470_s10 + $0x3a0] sm:$0xff] }
 0x2ef   :  { %1455 = vmatprep.subr.mxu0 %v1115_v38  ;;  %1669 = vmatpush2.msra.mxu1 %v1514_v46  ;;  %v1593_v38 = vld [vmem:[%s6470_s10 + $0x3b8] sm:$0xff]  ;;  %v1588_v46 = vld [vmem:[%s6470_s10 + $0x390] sm:$0xff] }
 0x2f0   :  { %1456 = vmatpush2.msra.mxu0 %v1114_v41  ;;  %1670 = vmatprep.subr.mxu1 %v1513_v22  ;;  %v1591_v41 = vld [vmem:[%s6470_s10 + $0x3a8] sm:$0xff]  ;;  %v1582_v22 = vld [vmem:[%s6470_s10 + $0x360] sm:$0xff] }
 0x2f1   :  { %1457 = vmatprep.subr.mxu0 %v1111_v45  ;;  %1671 = vmatpush2.msra.mxu1 %v1512_v53  ;;  %v1589_v45 = vld [vmem:[%s6470_s10 + $0x398] sm:$0xff] }
 0x2f2   :  { %1458 = vmatpush2.msra.mxu0 %v1110_v48  ;;  %1672 = vmatprep.subr.mxu1 %v1511_v54  ;;  %v1587_v48 = vld [vmem:[%s6470_s10 + $0x388] sm:$0xff]  ;;  %v1581_v53 = vld [vmem:[%s6470_s10 + $0x358] sm:$0xff]  ;;  %v1580_v54 = vld [vmem:[%s6470_s10 + $0x350] sm:$0xff] }
 0x2f3   :  { %1459 = vmatprep.subr.mxu0 %v1107_v49  ;;  %1673 = vmatpush2.msra.mxu1 %v1510_v39  ;;  %v1586_v49 = vld [vmem:[%s6470_s10 + $0x380] sm:$0xff]  ;;  %v1579_v39 = vld [vmem:[%s6470_s10 + $0x348] sm:$0xff] }
 0x2f4   :  { %1460 = vmatpush2.msra.mxu0 %v1106_v50  ;;  %v1585_v50 = vld [vmem:[%s6470_s10 + $0x378] sm:$0xff] }
 0x2f5   :  { %1461 = vmatprep.subr.mxu0 %v1103_v51  ;;  %v1584_v51 = vld [vmem:[%s6470_s10 + $0x370] sm:$0xff] }
 0x2f6   :  { %1462 = vmatpush2.msra.mxu0 %v1102_v18  ;;  %v1583_v18 = vld [vmem:[%s6470_s10 + $0x368] sm:$0xff] }
 0x2f7   :  { %1464 = vmatmul.mubr.f32.vlgmr.msra.gmra.mxu0 %v906_v47  ;;  %v1509_v47 = vld [vmem:[%s6470_s10 + $0x118] sm:$0xff]  ;;  %1685 = vmatprep.subr.mxu0 %v1569_v58  ;;  %v1574_v58 = vld [vmem:[%s6470_s10 + $0x320] sm:$0xff] }
 0x2f8   :  { %1674 = vmatprep.subr.mxu1 %v1509_v47  ;;  %1686 = vmatpush1.msra.mxu0 %v1568_v59  ;;  %v1578_v47 = vld [vmem:[%s6470_s10 + $0x340] sm:$0xff]  ;;  %v1573_v59 = vld [vmem:[%s6470_s10 + $0x318] sm:$0xff] }
 0x2f9   :  { %1675 = vmatpush2.msra.mxu1 %v1508_v55  ;;  %1687 = vmatprep.subr.mxu0 %v1567_v60  ;;  %v1577_v55 = vld [vmem:[%s6470_s10 + $0x338] sm:$0xff]  ;;  %v1572_v60 = vld [vmem:[%s6470_s10 + $0x310] sm:$0xff] }
 0x2fa   :  { %1676 = vmatprep.subr.mxu1 %v1507_v56  ;;  %1688 = vmatpush1.msra.mxu0 %v1566_v61  ;;  %v1576_v56 = vld [vmem:[%s6470_s10 + $0x330] sm:$0xff]  ;;  %v1571_v61 = vld [vmem:[%s6470_s10 + $0x308] sm:$0xff] }
 0x2fb   :  { %1677 = vmatpush2.msra.mxu1 %v1506_v57  ;;  %1689 = vmatprep.subr.mxu0 %v1565_v62  ;;  %v1575_v57 = vld [vmem:[%s6470_s10 + $0x328] sm:$0xff]  ;;  %v1570_v62 = vld [vmem:[%s6470_s10 + $0x300] sm:$0xff] }
 0x2fc   :  { %1690 = vmatpush1.msra.mxu0 %v1564_v63  ;;  %v1164_v63 = vld [vmem:[%s6469_s9] sm:$0xf] }
 0x2fd   :  { %1691 = vmatprep.subr.mxu0 %v1563_v0 }
 0x2fe   :  { %1692 = vmatpush1.msra.mxu0 %v1562_v2  ;;  %v1169_v2 = vrot.slane %v1164_v63, %v3650_v28 }
 0x2ff   :  { %1693 = vmatprep.subr.mxu0 %v1561_v3  ;;  %v1173_v3 = vrot.slane %v1164_v63, %v3655_v30 }
 0x300   :  { %1694 = vmatpush1.msra.mxu0 %v1560_v4 }
 0x301   :  { %1695 = vmatprep.subr.mxu0 %v1559_v5 }
 0x302   :  { %1696 = vmatpush1.msra.mxu0 %v1558_v36 }
 0x303   :  { %1697 = vmatprep.subr.mxu0 %v1557_v43 }
 0x304   :  { %1698 = vmatpush1.msra.mxu0 %v1556_v6 }
 0x305   :  { %1699 = vmatprep.subr.mxu0 %v1555_v7 }
 0x306   :  { %1700 = vmatpush1.msra.mxu0 %v1554_v8 }
 0x307   :  { %1701 = vmatprep.subr.mxu0 %v1553_v9 }
 0x308   :  { %1702 = vmatpush1.msra.mxu0 %v1552_v44 }
 0x309   :  { %1703 = vmatprep.subr.mxu0 %v1551_v52 }
 0x30a   :  { %1704 = vmatpush1.msra.mxu0 %v1550_v11  ;;  %v1177_v11 = vrot.slane %v1164_v63, %v3658_v32 }
 0x30b   :  { %1705 = vmatprep.subr.mxu0 %v1549_v12  ;;  %v1181_v12 = vrot.slane %v1164_v63, %v3661_v34  ;;  %v1792_v63 = vld [vmem:[%s6472_s12 + $0xe0] sm:$0xff] }
 0x30c   :  { %1706 = vmatpush1.msra.mxu0 %v1548_v13 }
 0x30d   :  { %1707 = vmatprep.subr.mxu0 %v1547_v14 }
 0x30e   :  { %1708 = vmatpush1.msra.mxu0 %v1546_v15 }
 0x30f   :  { %1709 = vmatprep.subr.mxu0 %v1545_v16 }
 0x310   :  { %1710 = vmatpush1.msra.mxu0 %v1544_v17 }
 0x311   :  { %1711 = vmatprep.subr.mxu0 %v1543_v19 }
 0x312   :  { %1712 = vmatpush1.msra.mxu0 %v1542_v20 }
 0x313   :  { %1713 = vmatprep.subr.mxu0 %v1541_v21 }
 0x314   :  { %1714 = vmatpush1.msra.mxu0 %v1540_v23 }
 0x315   :  { %1715 = vmatprep.subr.mxu0 %v1539_v24  ;;  %v1825_v24 = vld [vmem:[%s6472_s12 + $0x1e8] sm:$0xff] }
 0x316   :  { %1716 = vmatpush1.msra.mxu0 %v1538_v25  ;;  %v1827_v25 = vld [vmem:[%s6472_s12 + $0x1f8] sm:$0xff]  ;;  %1850 = vmatprep.subr.mxu1 %v1825_v24  ;;  %v1770_v24 = vld [vmem:[%s6472_s12 + $0x30] sm:$0xff] }
 0x317   :  { %1717 = vmatprep.subr.mxu0 %v1601_v26  ;;  %v1824_v26 = vld [vmem:[%s6472_s12 + $0x1e0] sm:$0xff] }
 0x318   :  { %1718 = vmatpush2.msra.mxu0 %v1600_v27  ;;  %v1826_v27 = vld [vmem:[%s6472_s12 + $0x1f0] sm:$0xff] }
 0x319   :  { %1719 = vmatprep.subr.mxu0 %v1599_v29  ;;  %v1821_v29 = vld [vmem:[%s6472_s12 + $0x1c8] sm:$0xff] }
 0x31a   :  { %1720 = vmatpush2.msra.mxu0 %v1598_v31  ;;  %v1823_v31 = vld [vmem:[%s6472_s12 + $0x1d8] sm:$0xff] }
 0x31b   :  { %1721 = vmatprep.subr.mxu0 %v1597_v33  ;;  %v1820_v33 = vld [vmem:[%s6472_s12 + $0x1c0] sm:$0xff] }
 0x31c   :  { %1722 = vmatpush2.msra.mxu0 %v1596_v35  ;;  %v1822_v35 = vld [vmem:[%s6472_s12 + $0x1d0] sm:$0xff] }
 0x31d   :  { %1723 = vmatprep.subr.mxu0 %v1595_v10  ;;  %v1817_v10 = vld [vmem:[%s6472_s12 + $0x1a8] sm:$0xff] }
 0x31e   :  { %1724 = vmatpush2.msra.mxu0 %v1594_v37  ;;  %v1819_v37 = vld [vmem:[%s6472_s12 + $0x1b8] sm:$0xff] }
 0x31f   :  { %1725 = vmatprep.subr.mxu0 %v1593_v38  ;;  %v1816_v38 = vld [vmem:[%s6472_s12 + $0x1a0] sm:$0xff] }
 0x320   :  { %1726 = vmatpush2.msra.mxu0 %v1592_v40  ;;  %v1818_v40 = vld [vmem:[%s6472_s12 + $0x1b0] sm:$0xff] }
 0x321   :  { %1727 = vmatprep.subr.mxu0 %v1591_v41  ;;  %v1813_v41 = vld [vmem:[%s6472_s12 + $0x188] sm:$0xff] }
 0x322   :  { %1728 = vmatpush2.msra.mxu0 %v1590_v42  ;;  %v1815_v42 = vld [vmem:[%s6472_s12 + $0x198] sm:$0xff] }
 0x323   :  { %1729 = vmatprep.subr.mxu0 %v1589_v45  ;;  %v1812_v45 = vld [vmem:[%s6472_s12 + $0x180] sm:$0xff] }
 0x324   :  { %1730 = vmatpush2.msra.mxu0 %v1588_v46  ;;  %v1814_v46 = vld [vmem:[%s6472_s12 + $0x190] sm:$0xff] }
 0x325   :  { %1731 = vmatprep.subr.mxu0 %v1587_v48  ;;  %v1809_v48 = vld [vmem:[%s6472_s12 + $0x168] sm:$0xff] }
 0x326   :  { %1732 = vmatpush2.msra.mxu0 %v1586_v49  ;;  %v1811_v49 = vld [vmem:[%s6472_s12 + $0x178] sm:$0xff] }
 0x327   :  { %1733 = vmatprep.subr.mxu0 %v1585_v50  ;;  %v1808_v50 = vld [vmem:[%s6472_s12 + $0x160] sm:$0xff] }
 0x328   :  { %1734 = vmatpush2.msra.mxu0 %v1584_v51  ;;  %v1810_v51 = vld [vmem:[%s6472_s12 + $0x170] sm:$0xff] }
 0x329   :  { %1735 = vmatprep.subr.mxu0 %v1583_v18  ;;  %v1805_v18 = vld [vmem:[%s6472_s12 + $0x148] sm:$0xff] }
 0x32a   :  { %1736 = vmatpush2.msra.mxu0 %v1582_v22  ;;  %v1807_v22 = vld [vmem:[%s6472_s12 + $0x158] sm:$0xff] }
 0x32b   :  { %1737 = vmatprep.subr.mxu0 %v1581_v53  ;;  %v1804_v53 = vld [vmem:[%s6472_s12 + $0x140] sm:$0xff] }
 0x32c   :  { %1738 = vmatpush2.msra.mxu0 %v1580_v54  ;;  %v1806_v54 = vld [vmem:[%s6472_s12 + $0x150] sm:$0xff] }
 0x32d   :  { %1739 = vmatprep.subr.mxu0 %v1579_v39  ;;  %v1801_v39 = vld [vmem:[%s6472_s12 + $0x128] sm:$0xff] }
 0x32e   :  { %1740 = vmatpush2.msra.mxu0 %v1578_v47  ;;  %v1803_v47 = vld [vmem:[%s6472_s12 + $0x138] sm:$0xff] }
 0x32f   :  { %1741 = vmatprep.subr.mxu0 %v1577_v55  ;;  %v1800_v55 = vld [vmem:[%s6472_s12 + $0x120] sm:$0xff] }
 0x330   :  { %1742 = vmatpush2.msra.mxu0 %v1576_v56  ;;  %v1802_v56 = vld [vmem:[%s6472_s12 + $0x130] sm:$0xff] }
 0x331   :  { %1743 = vmatprep.subr.mxu0 %v1575_v57  ;;  %v1797_v57 = vld [vmem:[%s6472_s12 + $0x108] sm:$0xff] }
 0x332   :  { %1744 = vmatpush2.msra.mxu0 %v1574_v58  ;;  %v1799_v58 = vld [vmem:[%s6472_s12 + $0x118] sm:$0xff] }
 0x333   :  { %1745 = vmatprep.subr.mxu0 %v1573_v59  ;;  %v1796_v59 = vld [vmem:[%s6472_s12 + $0x100] sm:$0xff] }
 0x334   :  { %1746 = vmatpush2.msra.mxu0 %v1572_v60  ;;  %v1798_v60 = vld [vmem:[%s6472_s12 + $0x110] sm:$0xff] }
 0x335   :  { %1747 = vmatprep.subr.mxu0 %v1571_v61  ;;  %v1793_v61 = vld [vmem:[%s6472_s12 + $0xe8] sm:$0xff] }
 0x336   :  { %1748 = vmatpush2.msra.mxu0 %v1570_v62  ;;  %v1252_v0 = vpop.f32.mrf.mxu1  ;;  %v1795_v62 = vld [vmem:[%s6472_s12 + $0xf8] sm:$0xff] }
 0x337   :  { %v1253_v5 = vadd.f32 %v1252_v0, %v1169_v2  ;;  %1921 = vmatprep.subr.mxu0 %v1827_v25  ;;  %v1794_v0 = vld [vmem:[%s6472_s12 + $0xf0] sm:$0xff]  ;;  %v1789_v2 = vld [vmem:[%s6472_s12 + $0xc8] sm:$0xff] }
 0x338   :  { %v1254_v4 = vpop.f32.mrf.mxu1  ;;  %v1765_v25 = vld [vmem:[%s6472_s12 + $0x8] sm:$0xff] }
 0x339   :  { %v1255_v43 = vadd.f32 %v1254_v4, %v1173_v3  ;;  %v1791_v3 = vld [vmem:[%s6472_s12 + $0xd8] sm:$0xff]  ;;  %v1788_v4 = vld [vmem:[%s6472_s12 + $0xc0] sm:$0xff] }
 0x376   :  { %v1394_v52 = vpop.f32.mrf.mxu1 }
 0x377   :  { %v1323_v36 = vpop.f32.mrf.mxu0  ;;  %v1395_v14 = vadd.f32 %v1394_v52, %v1177_v11  ;;  %v1782_v52 = vld [vmem:[%s6472_s12 + $0x90] sm:$0xff]  ;;  %v1777_v11 = vld [vmem:[%s6472_s12 + $0x68] sm:$0xff] }
 0x378   :  { %v1324_v6 = vadd.f32 %v1323_v36, %v1253_v5  ;;  %v1396_v13 = vpop.f32.mrf.mxu1  ;;  %v1790_v5 = vld [vmem:[%s6472_s12 + $0xd0] sm:$0xff]  ;;  %v1785_v36 = vld [vmem:[%s6472_s12 + $0xa8] sm:$0xff] }
 0x379   :  { %v1325_v7 = vpop.f32.mrf.mxu0  ;;  %v1397_v16 = vadd.f32 %v1396_v13, %v1181_v12  ;;  %v1779_v12 = vld [vmem:[%s6472_s12 + $0x78] sm:$0xff]  ;;  %v1776_v13 = vld [vmem:[%s6472_s12 + $0x60] sm:$0xff] }
 0x37a   :  { %v1326_v8 = vadd.f32 %v1325_v7, %v1255_v43  ;;  %v1470_v44 = vmax.f32 %v1324_v6, 0.0  ;;  %v1787_v43 = vld [vmem:[%s6472_s12 + $0xb8] sm:$0xff]  ;;  %v1784_v6 = vld [vmem:[%s6472_s12 + $0xa0] sm:$0xff]  ;;  %v1786_v7 = vld [vmem:[%s6472_s12 + $0xb0] sm:$0xff] }
 0x37c   :  { %v1471_v9 = vmax.f32 %v1326_v8, 0.0  ;;  %v1781_v8 = vld [vmem:[%s6472_s12 + $0x88] sm:$0xff] }
 0x37e   :  { %1678 = vmatprep.mubr.f32.mxu1 %v1471_v9  ;;  %v1783_v9 = vld [vmem:[%s6472_s12 + $0x98] sm:$0xff] }
 0x37f   :  { %1679 = vmatmul.mubr.f32.vlgmr.msra.gmra.mxu1 %v1470_v44  ;;  %v1780_v44 = vld [vmem:[%s6472_s12 + $0x80] sm:$0xff] }
 0x380   :  { %1914 = vmatprep.mubr.f32.mxu1 %v3063_v1  ;;  %1851 = vmatpush1.msra.mxu1 %v1824_v26  ;;  %v1767_v26 = vld [vmem:[%s6472_s12 + $0x18] sm:$0xff] }
 0x381   :  { %1852 = vmatprep.subr.mxu1 %v1821_v29  ;;  %v1766_v29 = vld [vmem:[%s6472_s12 + $0x10] sm:$0xff] }
 0x382   :  { %1853 = vmatpush1.msra.mxu1 %v1820_v33  ;;  %v2185_v33 = vld [vmem:[%s6474_s14 + $0x5e8] sm:$0xff] }
 0x383   :  { %1854 = vmatprep.subr.mxu1 %v1817_v10 }
 0x384   :  { %1855 = vmatpush1.msra.mxu1 %v1816_v38 }
 0x385   :  { %1856 = vmatprep.subr.mxu1 %v1813_v41 }
 0x386   :  { %1857 = vmatpush1.msra.mxu1 %v1812_v45 }
 0x387   :  { %1858 = vmatprep.subr.mxu1 %v1809_v48 }
 0x388   :  { %1859 = vmatpush1.msra.mxu1 %v1808_v50 }
 0x389   :  { %1860 = vmatprep.subr.mxu1 %v1805_v18 }
 0x38a   :  { %1861 = vmatpush1.msra.mxu1 %v1804_v53 }
 0x38b   :  { %1862 = vmatprep.subr.mxu1 %v1801_v39  ;;  %v2056_v39 = vld [vmem:[%s6474_s14 + $0x1e0] sm:$0xff] }
 0x38c   :  { %1863 = vmatpush1.msra.mxu1 %v1800_v55  ;;  %v2053_v55 = vld [vmem:[%s6474_s14 + $0x1c8] sm:$0xff] }
 0x38d   :  { %1864 = vmatprep.subr.mxu1 %v1797_v57  ;;  %v2052_v57 = vld [vmem:[%s6474_s14 + $0x1c0] sm:$0xff] }
 0x38e   :  { %1865 = vmatpush1.msra.mxu1 %v1796_v59  ;;  %v2049_v59 = vld [vmem:[%s6474_s14 + $0x1a8] sm:$0xff] }
 0x38f   :  { %1866 = vmatprep.subr.mxu1 %v1793_v61  ;;  %v2048_v61 = vld [vmem:[%s6474_s14 + $0x1a0] sm:$0xff] }
 0x390   :  { %1867 = vmatpush1.msra.mxu1 %v1792_v63  ;;  %v2045_v63 = vld [vmem:[%s6474_s14 + $0x188] sm:$0xff] }
 0x391   :  { %1868 = vmatprep.subr.mxu1 %v1789_v2  ;;  %v2044_v2 = vld [vmem:[%s6474_s14 + $0x180] sm:$0xff] }
 0x392   :  { %1869 = vmatpush1.msra.mxu1 %v1788_v4  ;;  %v2041_v4 = vld [vmem:[%s6474_s14 + $0x168] sm:$0xff] }
 0x393   :  { %1870 = vmatprep.subr.mxu1 %v1785_v36  ;;  %v2040_v36 = vld [vmem:[%s6474_s14 + $0x160] sm:$0xff] }
 0x394   :  { %1871 = vmatpush1.msra.mxu1 %v1784_v6  ;;  %v2037_v6 = vld [vmem:[%s6474_s14 + $0x148] sm:$0xff] }
 0x395   :  { %1872 = vmatprep.subr.mxu1 %v1781_v8  ;;  %v2036_v8 = vld [vmem:[%s6474_s14 + $0x140] sm:$0xff] }
 0x396   :  { %1873 = vmatpush1.msra.mxu1 %v1780_v44  ;;  %v2033_v44 = vld [vmem:[%s6474_s14 + $0x128] sm:$0xff] }
 0x397   :  { %1874 = vmatprep.subr.mxu1 %v1777_v11  ;;  %v2032_v11 = vld [vmem:[%s6474_s14 + $0x120] sm:$0xff] }
 0x398   :  { %1875 = vmatpush1.msra.mxu1 %v1776_v13  ;;  %v2029_v13 = vld [vmem:[%s6474_s14 + $0x108] sm:$0xff] }
 0x3b7   :  { %v1465_v15 = vpop.f32.mrf.mxu0 }
 0x3b8   :  { %v1466_v17 = vadd.f32 %v1465_v15, %v1395_v14  ;;  %v1778_v14 = vld [vmem:[%s6472_s12 + $0x70] sm:$0xff]  ;;  %v1773_v15 = vld [vmem:[%s6472_s12 + $0x48] sm:$0xff] }
 0x3b9   :  { %v1467_v19 = vpop.f32.mrf.mxu0  ;;  %1876 = vmatprep.subr.mxu1 %v1773_v15  ;;  %v2028_v15 = vld [vmem:[%s6474_s14 + $0x100] sm:$0xff] }
 0x3ba   :  { %v1468_v20 = vadd.f32 %v1467_v19, %v1397_v16  ;;  %v1472_v23 = vmax.f32 %v1466_v17, 0.0  ;;  %v1775_v16 = vld [vmem:[%s6472_s12 + $0x58] sm:$0xff]  ;;  %v1772_v17 = vld [vmem:[%s6472_s12 + $0x40] sm:$0xff]  ;;  %v1774_v19 = vld [vmem:[%s6472_s12 + $0x50] sm:$0xff] }
 0x3bb   :  { %1877 = vmatpush1.msra.mxu1 %v1772_v17  ;;  %v2025_v17 = vld [vmem:[%s6474_s14 + $0xe8] sm:$0xff] }
 0x3bc   :  { %v1473_v21 = vmax.f32 %v1468_v20, 0.0  ;;  %v1769_v20 = vld [vmem:[%s6472_s12 + $0x28] sm:$0xff] }
 0x3bd   :  { %1878 = vmatprep.subr.mxu1 %v1769_v20  ;;  %v2024_v20 = vld [vmem:[%s6474_s14 + $0xe0] sm:$0xff] }
 0x3be   :  { %1749 = vmatprep.mubr.f32.mxu0 %v1473_v21  ;;  %v1771_v21 = vld [vmem:[%s6472_s12 + $0x38] sm:$0xff] }
 0x3bf   :  { %1750 = vmatmul.mubr.f32.vlgmr.msra.gmra.mxu0 %v1472_v23  ;;  %v1768_v23 = vld [vmem:[%s6472_s12 + $0x20] sm:$0xff] }
 0x3c0   :  { %1985 = vmatprep.mubr.f32.mxu0 %v3063_v1  ;;  %1922 = vmatpush1.msra.mxu0 %v1826_v27  ;;  %v1764_v27 = vld [vmem:[%s6472_s12] sm:$0xff] }
 0x3c1   :  { %1923 = vmatprep.subr.mxu0 %v1823_v31  ;;  %1879 = vmatpush1.msra.mxu1 %v1768_v23  ;;  %v2057_v31 = vld [vmem:[%s6474_s14 + $0x1e8] sm:$0xff] }
 0x3c2   :  { %1924 = vmatpush1.msra.mxu0 %v1822_v35  ;;  %1880 = vmatprep.subr.mxu1 %v1765_v25  ;;  %v1602_v35 = vld [vmem:[%s6471_s11] sm:$0x3]  ;;  %s6502_s11 = sld [smem:[#allocation9_spill]]  ;;  %v2021_v23 = vld [vmem:[%s6474_s14 + $0xc8] sm:$0xff] }
 0x3c3   :  { %1925 = vmatprep.subr.mxu0 %v1819_v37  ;;  %1881 = vmatpush1.msra.mxu1 %v1764_v27  ;;  %v1607_v37 = vrot.slane %v1602_v35, %v3650_v28  ;;  %v1611_v38 = vrot.slane %v1602_v35, %v3655_v30  ;;  %v2020_v25 = vld [vmem:[%s6474_s14 + $0xc0] sm:$0xff]  ;;  %v2017_v27 = vld [vmem:[%s6474_s14 + $0xa8] sm:$0xff] }
 0x3c4   :  { %1926 = vmatpush1.msra.mxu0 %v1818_v40  ;;  %2274 = vmatprep.subr.mxu1 %v2057_v31  ;;  %v2016_v31 = vld [vmem:[%s6474_s14 + $0xa0] sm:$0xff]  ;;  %v2013_v35 = vld [vmem:[%s6474_s14 + $0x88] sm:$0xff] }
 0x3c5   :  { %1927 = vmatprep.subr.mxu0 %v1815_v42 }
 0x3c6   :  { %1928 = vmatpush1.msra.mxu0 %v1814_v46 }
 0x3c7   :  { %1929 = vmatprep.subr.mxu0 %v1811_v49 }
 0x3c8   :  { %1930 = vmatpush1.msra.mxu0 %v1810_v51  ;;  %v1758_v18 = vld [vmem:[%s6502_s11] sm:$0xff] }
 0x3c9   :  { %1931 = vmatprep.subr.mxu0 %v1807_v22 }
 0x3ca   :  { %1932 = vmatpush1.msra.mxu0 %v1806_v54 }
 0x3cb   :  { %1933 = vmatprep.subr.mxu0 %v1803_v47  ;;  %v2184_v47 = vld [vmem:[%s6474_s14 + $0x5e0] sm:$0xff] }
 0x3cc   :  { %1934 = vmatpush1.msra.mxu0 %v1802_v56  ;;  %v2181_v56 = vld [vmem:[%s6474_s14 + $0x5c8] sm:$0xff] }
 0x3cd   :  { %1935 = vmatprep.subr.mxu0 %v1799_v58  ;;  %v2180_v58 = vld [vmem:[%s6474_s14 + $0x5c0] sm:$0xff] }
 0x3ce   :  { %1936 = vmatpush1.msra.mxu0 %v1798_v60  ;;  %v2177_v60 = vld [vmem:[%s6474_s14 + $0x5a8] sm:$0xff] }
 0x3cf   :  { %1937 = vmatprep.subr.mxu0 %v1795_v62  ;;  %v2176_v62 = vld [vmem:[%s6474_s14 + $0x5a0] sm:$0xff] }
 0x3d0   :  { %1938 = vmatpush1.msra.mxu0 %v1794_v0  ;;  %v2173_v0 = vld [vmem:[%s6474_s14 + $0x588] sm:$0xff] }
 0x3d1   :  { %1939 = vmatprep.subr.mxu0 %v1791_v3  ;;  %v2172_v3 = vld [vmem:[%s6474_s14 + $0x580] sm:$0xff] }
 0x3d2   :  { %1940 = vmatpush1.msra.mxu0 %v1790_v5  ;;  %v2169_v5 = vld [vmem:[%s6474_s14 + $0x568] sm:$0xff] }
 0x3d3   :  { %1941 = vmatprep.subr.mxu0 %v1787_v43  ;;  %v2168_v43 = vld [vmem:[%s6474_s14 + $0x560] sm:$0xff] }
 0x3d4   :  { %1942 = vmatpush1.msra.mxu0 %v1786_v7  ;;  %v2165_v7 = vld [vmem:[%s6474_s14 + $0x548] sm:$0xff] }
 0x3d5   :  { %1943 = vmatprep.subr.mxu0 %v1783_v9  ;;  %v2164_v9 = vld [vmem:[%s6474_s14 + $0x540] sm:$0xff] }
 0x3d6   :  { %1944 = vmatpush1.msra.mxu0 %v1782_v52  ;;  %v2161_v52 = vld [vmem:[%s6474_s14 + $0x528] sm:$0xff] }
 0x3d7   :  { %1945 = vmatprep.subr.mxu0 %v1779_v12  ;;  %v2160_v12 = vld [vmem:[%s6474_s14 + $0x520] sm:$0xff] }
 0x3d8   :  { %1946 = vmatpush1.msra.mxu0 %v1778_v14  ;;  %v2157_v14 = vld [vmem:[%s6474_s14 + $0x508] sm:$0xff] }
 0x3d9   :  { %1947 = vmatprep.subr.mxu0 %v1775_v16  ;;  %v2156_v16 = vld [vmem:[%s6474_s14 + $0x500] sm:$0xff] }
 0x3da   :  { %1948 = vmatpush1.msra.mxu0 %v1774_v19  ;;  %v2153_v19 = vld [vmem:[%s6474_s14 + $0x4e8] sm:$0xff] }
 0x3db   :  { %1949 = vmatprep.subr.mxu0 %v1771_v21  ;;  %v2152_v21 = vld [vmem:[%s6474_s14 + $0x4e0] sm:$0xff] }
 0x3dc   :  { %1950 = vmatpush1.msra.mxu0 %v1770_v24  ;;  %v2149_v24 = vld [vmem:[%s6474_s14 + $0x4c8] sm:$0xff] }
 0x3dd   :  { %1951 = vmatprep.subr.mxu0 %v1767_v26  ;;  %v2148_v26 = vld [vmem:[%s6474_s14 + $0x4c0] sm:$0xff] }
 0x3de   :  { %1952 = vmatpush1.msra.mxu0 %v1766_v29  ;;  %v2145_v29 = vld [vmem:[%s6474_s14 + $0x4a8] sm:$0xff] }
 0x3df   :  { %2345 = vmatprep.subr.mxu0 %v2185_v33  ;;  %v2144_v33 = vld [vmem:[%s6474_s14 + $0x4a0] sm:$0xff] }
 0x43f   :  { %v1680_v10 = vpop.f32.mrf.mxu1 }
 0x440   :  { %v1681_v41 = vadd.f32 %v1680_v10, %v1607_v37  ;;  %v2141_v10 = vld [vmem:[%s6474_s14 + $0x488] sm:$0xff]  ;;  %v2012_v37 = vld [vmem:[%s6474_s14 + $0x80] sm:$0xff] }
 0x441   :  { %v1682_v40 = vpop.f32.mrf.mxu1 }
 0x442   :  { %v1683_v45 = vadd.f32 %v1682_v40, %v1611_v38  ;;  %v2140_v38 = vld [vmem:[%s6474_s14 + $0x480] sm:$0xff]  ;;  %v2009_v40 = vld [vmem:[%s6474_s14 + $0x68] sm:$0xff] }
 0x47f   :  { %v1751_v42 = vpop.f32.mrf.mxu0 }
 0x480   :  { %v1752_v46 = vadd.f32 %v1751_v42, %v1681_v41  ;;  %v2137_v41 = vld [vmem:[%s6474_s14 + $0x468] sm:$0xff]  ;;  %v2008_v42 = vld [vmem:[%s6474_s14 + $0x60] sm:$0xff] }
 0x481   :  { %v1753_v48 = vpop.f32.mrf.mxu0 }
 0x482   :  { %1756 = vst [vmem:[#allocation2] sm:$0xff] %v1752_v46  ;;  %v1754_v49 = vadd.f32 %v1753_v48, %v1683_v45  ;;  %v2136_v45 = vld [vmem:[%s6474_s14 + $0x460] sm:$0xff]  ;;  %v2133_v48 = vld [vmem:[%s6474_s14 + $0x448] sm:$0xff] }
 0x484   :  { %v1759_v50 = vmul.f32 0.5, %v1754_v49  ;;  %1757 = vst [vmem:[#allocation4] sm:$0xff] %v1754_v49  ;;  %v2004_v49 = vld [vmem:[%s6474_s14 + $0x40] sm:$0xff] }
 0x486   :  { %v1760_v51 = vmul.f32 1.442695, %v1759_v50  ;;  %v2132_v50 = vld [vmem:[%s6474_s14 + $0x440] sm:$0xff] }
 0x488   :  { %3015 = vpow2.f32 %v1760_v51  ;;  %v2001_v51 = vld [vmem:[%s6474_s14 + $0x28] sm:$0xff] }
 0x495   :  { %v3016_v22 = vpop.eup %3015 }
 0x496   :  { %v1762_v53 = vmul.f32 %v3016_v22, %v1758_v18  ;;  %v2129_v18 = vld [vmem:[%s6474_s14 + $0x428] sm:$0xff]  ;;  %v2000_v22 = vld [vmem:[%s6474_s14 + $0x20] sm:$0xff] }
 0x498   :  { %v1763_v54 = vadd.f32 %v1762_v53, %v1752_v46  ;;  %v2005_v46 = vld [vmem:[%s6474_s14 + $0x48] sm:$0xff]  ;;  %v2128_v53 = vld [vmem:[%s6474_s14 + $0x420] sm:$0xff] }
 0x49a   :  { %1915 = vmatmul.mubr.f32.vlgmr.msra.gmra.mxu1 %v1763_v54  ;;  %1986 = vmatmul.mubr.f32.vlgmr.msra.gmra.mxu0 %v1763_v54  ;;  %v1997_v54 = vld [vmem:[%s6474_s14 + $0x8] sm:$0xff] }
 0x49b   :  { %2275 = vmatpush1.msra.mxu1 %v2056_v39  ;;  %2346 = vmatpush1.msra.mxu0 %v2184_v47  ;;  %v2125_v39 = vld [vmem:[%s6474_s14 + $0x408] sm:$0xff]  ;;  %v1996_v47 = vld [vmem:[%s6474_s14] sm:$0xff] }
 0x49c   :  { %2276 = vmatprep.subr.mxu1 %v2053_v55  ;;  %2347 = vmatprep.subr.mxu0 %v2181_v56  ;;  %v2124_v55 = vld [vmem:[%s6474_s14 + $0x400] sm:$0xff]  ;;  %v2121_v56 = vld [vmem:[%s6474_s14 + $0x3e8] sm:$0xff] }
 0x49d   :  { %2277 = vmatpush1.msra.mxu1 %v2052_v57  ;;  %2348 = vmatpush1.msra.mxu0 %v2180_v58  ;;  %v2249_v57 = vld [vmem:[%s6474_s14 + $0x7e8] sm:$0xff]  ;;  %v2120_v58 = vld [vmem:[%s6474_s14 + $0x3e0] sm:$0xff] }
 0x49e   :  { %2278 = vmatprep.subr.mxu1 %v2049_v59  ;;  %2349 = vmatprep.subr.mxu0 %v2177_v60  ;;  %v2248_v59 = vld [vmem:[%s6474_s14 + $0x7e0] sm:$0xff]  ;;  %v2117_v60 = vld [vmem:[%s6474_s14 + $0x3c8] sm:$0xff] }
 0x49f   :  { %2279 = vmatpush1.msra.mxu1 %v2048_v61  ;;  %2350 = vmatpush1.msra.mxu0 %v2176_v62  ;;  %v2245_v61 = vld [vmem:[%s6474_s14 + $0x7c8] sm:$0xff]  ;;  %v2116_v62 = vld [vmem:[%s6474_s14 + $0x3c0] sm:$0xff] }
 0x4a0   :  { %2280 = vmatprep.subr.mxu1 %v2045_v63  ;;  %2351 = vmatprep.subr.mxu0 %v2173_v0  ;;  %v2244_v63 = vld [vmem:[%s6474_s14 + $0x7c0] sm:$0xff]  ;;  %v2113_v0 = vld [vmem:[%s6474_s14 + $0x3a8] sm:$0xff] }
 0x4a1   :  { %2281 = vmatpush1.msra.mxu1 %v2044_v2  ;;  %2352 = vmatpush1.msra.mxu0 %v2172_v3  ;;  %v2241_v2 = vld [vmem:[%s6474_s14 + $0x7a8] sm:$0xff]  ;;  %v2112_v3 = vld [vmem:[%s6474_s14 + $0x3a0] sm:$0xff] }
 0x4a2   :  { %2282 = vmatprep.subr.mxu1 %v2041_v4  ;;  %2353 = vmatprep.subr.mxu0 %v2169_v5  ;;  %v2240_v4 = vld [vmem:[%s6474_s14 + $0x7a0] sm:$0xff]  ;;  %v2109_v5 = vld [vmem:[%s6474_s14 + $0x388] sm:$0xff] }
 0x4a3   :  { %2283 = vmatpush1.msra.mxu1 %v2040_v36  ;;  %2354 = vmatpush1.msra.mxu0 %v2168_v43  ;;  %v2237_v36 = vld [vmem:[%s6474_s14 + $0x788] sm:$0xff]  ;;  %v2108_v43 = vld [vmem:[%s6474_s14 + $0x380] sm:$0xff] }
 0x4a4   :  { %2284 = vmatprep.subr.mxu1 %v2037_v6  ;;  %2355 = vmatprep.subr.mxu0 %v2165_v7  ;;  %v2236_v6 = vld [vmem:[%s6474_s14 + $0x780] sm:$0xff]  ;;  %v2105_v7 = vld [vmem:[%s6474_s14 + $0x368] sm:$0xff] }
 0x4a5   :  { %2285 = vmatpush1.msra.mxu1 %v2036_v8  ;;  %2356 = vmatpush1.msra.mxu0 %v2164_v9  ;;  %v2233_v8 = vld [vmem:[%s6474_s14 + $0x768] sm:$0xff]  ;;  %v2104_v9 = vld [vmem:[%s6474_s14 + $0x360] sm:$0xff] }
 0x4a6   :  { %2286 = vmatprep.subr.mxu1 %v2033_v44  ;;  %2357 = vmatprep.subr.mxu0 %v2161_v52  ;;  %v2232_v44 = vld [vmem:[%s6474_s14 + $0x760] sm:$0xff]  ;;  %v2101_v52 = vld [vmem:[%s6474_s14 + $0x348] sm:$0xff] }
 0x4a7   :  { %2287 = vmatpush1.msra.mxu1 %v2032_v11  ;;  %2358 = vmatpush1.msra.mxu0 %v2160_v12  ;;  %v2229_v11 = vld [vmem:[%s6474_s14 + $0x748] sm:$0xff]  ;;  %v2100_v12 = vld [vmem:[%s6474_s14 + $0x340] sm:$0xff] }
 0x4a8   :  { %2288 = vmatprep.subr.mxu1 %v2029_v13  ;;  %2359 = vmatprep.subr.mxu0 %v2157_v14  ;;  %v2228_v13 = vld [vmem:[%s6474_s14 + $0x740] sm:$0xff]  ;;  %v2097_v14 = vld [vmem:[%s6474_s14 + $0x328] sm:$0xff] }
 0x4a9   :  { %2289 = vmatpush1.msra.mxu1 %v2028_v15  ;;  %2360 = vmatpush1.msra.mxu0 %v2156_v16  ;;  %v2225_v15 = vld [vmem:[%s6474_s14 + $0x728] sm:$0xff]  ;;  %v2096_v16 = vld [vmem:[%s6474_s14 + $0x320] sm:$0xff] }
 0x4aa   :  { %2290 = vmatprep.subr.mxu1 %v2025_v17  ;;  %2361 = vmatprep.subr.mxu0 %v2153_v19  ;;  %v2224_v17 = vld [vmem:[%s6474_s14 + $0x720] sm:$0xff]  ;;  %v2093_v19 = vld [vmem:[%s6474_s14 + $0x308] sm:$0xff] }
 0x4ab   :  { %2291 = vmatpush1.msra.mxu1 %v2024_v20  ;;  %2362 = vmatpush1.msra.mxu0 %v2152_v21  ;;  %v2221_v20 = vld [vmem:[%s6474_s14 + $0x708] sm:$0xff]  ;;  %v2092_v21 = vld [vmem:[%s6474_s14 + $0x300] sm:$0xff] }
 0x4ac   :  { %2292 = vmatprep.subr.mxu1 %v2021_v23  ;;  %2363 = vmatprep.subr.mxu0 %v2149_v24  ;;  %v2220_v23 = vld [vmem:[%s6474_s14 + $0x700] sm:$0xff]  ;;  %v2089_v24 = vld [vmem:[%s6474_s14 + $0x2e8] sm:$0xff] }
 0x4ad   :  { %2293 = vmatpush1.msra.mxu1 %v2020_v25  ;;  %2364 = vmatpush1.msra.mxu0 %v2148_v26  ;;  %v2217_v25 = vld [vmem:[%s6474_s14 + $0x6e8] sm:$0xff]  ;;  %v2088_v26 = vld [vmem:[%s6474_s14 + $0x2e0] sm:$0xff] }
 0x4ae   :  { %2294 = vmatprep.subr.mxu1 %v2017_v27  ;;  %2365 = vmatprep.subr.mxu0 %v2145_v29  ;;  %v2216_v27 = vld [vmem:[%s6474_s14 + $0x6e0] sm:$0xff]  ;;  %v2085_v29 = vld [vmem:[%s6474_s14 + $0x2c8] sm:$0xff] }
 0x4af   :  { %2295 = vmatpush1.msra.mxu1 %v2016_v31  ;;  %2366 = vmatpush1.msra.mxu0 %v2144_v33  ;;  %v2213_v31 = vld [vmem:[%s6474_s14 + $0x6c8] sm:$0xff]  ;;  %v2084_v33 = vld [vmem:[%s6474_s14 + $0x2c0] sm:$0xff] }
 0x4b0   :  { %2296 = vmatprep.subr.mxu1 %v2013_v35  ;;  %2367 = vmatprep.subr.mxu0 %v2141_v10  ;;  %v2212_v35 = vld [vmem:[%s6474_s14 + $0x6c0] sm:$0xff]  ;;  %v2081_v10 = vld [vmem:[%s6474_s14 + $0x2a8] sm:$0xff] }
 0x4b1   :  { %2297 = vmatpush1.msra.mxu1 %v2012_v37  ;;  %2368 = vmatpush1.msra.mxu0 %v2140_v38  ;;  %v2209_v37 = vld [vmem:[%s6474_s14 + $0x6a8] sm:$0xff]  ;;  %v2080_v38 = vld [vmem:[%s6474_s14 + $0x2a0] sm:$0xff] }
 0x4b2   :  { %2298 = vmatprep.subr.mxu1 %v2009_v40  ;;  %2369 = vmatprep.subr.mxu0 %v2137_v41  ;;  %v2208_v40 = vld [vmem:[%s6474_s14 + $0x6a0] sm:$0xff]  ;;  %v2077_v41 = vld [vmem:[%s6474_s14 + $0x288] sm:$0xff] }
 0x4b3   :  { %2299 = vmatpush1.msra.mxu1 %v2008_v42  ;;  %2370 = vmatpush1.msra.mxu0 %v2136_v45  ;;  %v2205_v42 = vld [vmem:[%s6474_s14 + $0x688] sm:$0xff]  ;;  %v2076_v45 = vld [vmem:[%s6474_s14 + $0x280] sm:$0xff] }
 0x4b4   :  { %2300 = vmatprep.subr.mxu1 %v2005_v46  ;;  %2371 = vmatprep.subr.mxu0 %v2133_v48  ;;  %v2204_v46 = vld [vmem:[%s6474_s14 + $0x680] sm:$0xff]  ;;  %v2073_v48 = vld [vmem:[%s6474_s14 + $0x268] sm:$0xff] }
 0x4b5   :  { %2301 = vmatpush1.msra.mxu1 %v2004_v49  ;;  %2372 = vmatpush1.msra.mxu0 %v2132_v50  ;;  %v2201_v49 = vld [vmem:[%s6474_s14 + $0x668] sm:$0xff]  ;;  %v2072_v50 = vld [vmem:[%s6474_s14 + $0x260] sm:$0xff] }
 0x4b6   :  { %2302 = vmatprep.subr.mxu1 %v2001_v51  ;;  %2373 = vmatprep.subr.mxu0 %v2129_v18  ;;  %v2200_v51 = vld [vmem:[%s6474_s14 + $0x660] sm:$0xff]  ;;  %v2069_v18 = vld [vmem:[%s6474_s14 + $0x248] sm:$0xff] }
 0x4b7   :  { %2303 = vmatpush1.msra.mxu1 %v2000_v22  ;;  %2374 = vmatpush1.msra.mxu0 %v2128_v53  ;;  %v2197_v22 = vld [vmem:[%s6474_s14 + $0x648] sm:$0xff]  ;;  %v2068_v53 = vld [vmem:[%s6474_s14 + $0x240] sm:$0xff] }
 0x4b8   :  { %2304 = vmatprep.subr.mxu1 %v1997_v54  ;;  %2375 = vmatprep.subr.mxu0 %v2125_v39  ;;  %v2196_v54 = vld [vmem:[%s6474_s14 + $0x640] sm:$0xff]  ;;  %v2065_v39 = vld [vmem:[%s6474_s14 + $0x228] sm:$0xff] }
 0x4b9   :  { %2305 = vmatpush1.msra.mxu1 %v1996_v47  ;;  %2376 = vmatpush1.msra.mxu0 %v2124_v55  ;;  %v2193_v47 = vld [vmem:[%s6474_s14 + $0x628] sm:$0xff]  ;;  %v2064_v55 = vld [vmem:[%s6474_s14 + $0x220] sm:$0xff] }
 0x4ba   :  { %2306 = vmatprep.subr.mxu1 %v2121_v56  ;;  %2377 = vmatprep.subr.mxu0 %v2249_v57  ;;  %v2192_v56 = vld [vmem:[%s6474_s14 + $0x620] sm:$0xff]  ;;  %v2061_v57 = vld [vmem:[%s6474_s14 + $0x208] sm:$0xff] }
 0x4bb   :  { %2307 = vmatpush2.msra.mxu1 %v2120_v58  ;;  %2378 = vmatpush2.msra.mxu0 %v2248_v59  ;;  %v2189_v58 = vld [vmem:[%s6474_s14 + $0x608] sm:$0xff]  ;;  %v2060_v59 = vld [vmem:[%s6474_s14 + $0x200] sm:$0xff] }
 0x4bc   :  { %2308 = vmatprep.subr.mxu1 %v2117_v60  ;;  %2379 = vmatprep.subr.mxu0 %v2245_v61  ;;  %v2188_v60 = vld [vmem:[%s6474_s14 + $0x600] sm:$0xff]  ;;  %v2059_v61 = vld [vmem:[%s6474_s14 + $0x1f8] sm:$0xff] }
 0x4bd   :  { %2309 = vmatpush2.msra.mxu1 %v2116_v62  ;;  %2380 = vmatpush2.msra.mxu0 %v2244_v63  ;;  %v2187_v62 = vld [vmem:[%s6474_s14 + $0x5f8] sm:$0xff]  ;;  %v1828_v63 = vld [vmem:[%s6473_s13] sm:$0xf] }
 0x4be   :  { %2310 = vmatprep.subr.mxu1 %v2113_v0  ;;  %2381 = vmatprep.subr.mxu0 %v2241_v2  ;;  %v1833_v0 = vrot.slane %v1828_v63, %v3650_v28  ;;  %v1841_v2 = vrot.slane %v1828_v63, %v3658_v32 }
 0x4bf   :  { %2311 = vmatpush2.msra.mxu1 %v2112_v3  ;;  %2382 = vmatpush2.msra.mxu0 %v2240_v4  ;;  %v1837_v3 = vrot.slane %v1828_v63, %v3655_v30  ;;  %v1845_v4 = vrot.slane %v1828_v63, %v3661_v34  ;;  %v2015_v63 = vld [vmem:[%s6474_s14 + $0x98] sm:$0xff] }
 0x4c0   :  { %2312 = vmatprep.subr.mxu1 %v2109_v5  ;;  %2383 = vmatprep.subr.mxu0 %v2237_v36 }
 0x4c1   :  { %2313 = vmatpush2.msra.mxu1 %v2108_v43  ;;  %2384 = vmatpush2.msra.mxu0 %v2236_v6 }
 0x4c2   :  { %2314 = vmatprep.subr.mxu1 %v2105_v7  ;;  %2385 = vmatprep.subr.mxu0 %v2233_v8 }
 0x4c3   :  { %2315 = vmatpush2.msra.mxu1 %v2104_v9  ;;  %2386 = vmatpush2.msra.mxu0 %v2232_v44 }
 0x4c4   :  { %2316 = vmatprep.subr.mxu1 %v2101_v52  ;;  %2387 = vmatprep.subr.mxu0 %v2229_v11 }
 0x4c5   :  { %2317 = vmatpush2.msra.mxu1 %v2100_v12  ;;  %2388 = vmatpush2.msra.mxu0 %v2228_v13 }
 0x4c6   :  { %2318 = vmatprep.subr.mxu1 %v2097_v14  ;;  %2389 = vmatprep.subr.mxu0 %v2225_v15  ;;  %v2058_v14 = vld [vmem:[%s6474_s14 + $0x1f0] sm:$0xff] }
 0x4c7   :  { %2319 = vmatpush2.msra.mxu1 %v2096_v16  ;;  %2390 = vmatpush2.msra.mxu0 %v2224_v17  ;;  %v2186_v15 = vld [vmem:[%s6474_s14 + $0x5f0] sm:$0xff]  ;;  %v2055_v16 = vld [vmem:[%s6474_s14 + $0x1d8] sm:$0xff] }
 0x4c8   :  { %2320 = vmatprep.subr.mxu1 %v2093_v19  ;;  %2391 = vmatprep.subr.mxu0 %v2221_v20  ;;  %v2183_v17 = vld [vmem:[%s6474_s14 + $0x5d8] sm:$0xff]  ;;  %v2054_v19 = vld [vmem:[%s6474_s14 + $0x1d0] sm:$0xff] }
 0x4c9   :  { %2321 = vmatpush2.msra.mxu1 %v2092_v21  ;;  %2392 = vmatpush2.msra.mxu0 %v2220_v23  ;;  %v2182_v20 = vld [vmem:[%s6474_s14 + $0x5d0] sm:$0xff]  ;;  %v2051_v21 = vld [vmem:[%s6474_s14 + $0x1b8] sm:$0xff] }
 0x4ca   :  { %2322 = vmatprep.subr.mxu1 %v2089_v24  ;;  %2393 = vmatprep.subr.mxu0 %v2217_v25  ;;  %v2179_v23 = vld [vmem:[%s6474_s14 + $0x5b8] sm:$0xff]  ;;  %v2050_v24 = vld [vmem:[%s6474_s14 + $0x1b0] sm:$0xff] }
 0x4cb   :  { %2323 = vmatpush2.msra.mxu1 %v2088_v26  ;;  %2394 = vmatpush2.msra.mxu0 %v2216_v27  ;;  %v2178_v25 = vld [vmem:[%s6474_s14 + $0x5b0] sm:$0xff]  ;;  %v2047_v26 = vld [vmem:[%s6474_s14 + $0x198] sm:$0xff] }
 0x4cc   :  { %2324 = vmatprep.subr.mxu1 %v2085_v29  ;;  %2395 = vmatprep.subr.mxu0 %v2213_v31  ;;  %v2175_v27 = vld [vmem:[%s6474_s14 + $0x598] sm:$0xff]  ;;  %v2046_v29 = vld [vmem:[%s6474_s14 + $0x190] sm:$0xff] }
 0x4cd   :  { %2325 = vmatpush2.msra.mxu1 %v2084_v33  ;;  %2396 = vmatpush2.msra.mxu0 %v2212_v35  ;;  %v2174_v31 = vld [vmem:[%s6474_s14 + $0x590] sm:$0xff]  ;;  %v2043_v33 = vld [vmem:[%s6474_s14 + $0x178] sm:$0xff] }
 0x4ce   :  { %2326 = vmatprep.subr.mxu1 %v2081_v10  ;;  %2397 = vmatprep.subr.mxu0 %v2209_v37  ;;  %v2171_v35 = vld [vmem:[%s6474_s14 + $0x578] sm:$0xff]  ;;  %v2042_v10 = vld [vmem:[%s6474_s14 + $0x170] sm:$0xff] }
 0x4cf   :  { %2327 = vmatpush2.msra.mxu1 %v2080_v38  ;;  %2398 = vmatpush2.msra.mxu0 %v2208_v40  ;;  %v2170_v37 = vld [vmem:[%s6474_s14 + $0x570] sm:$0xff]  ;;  %v2039_v38 = vld [vmem:[%s6474_s14 + $0x158] sm:$0xff] }
 0x4d0   :  { %2328 = vmatprep.subr.mxu1 %v2077_v41  ;;  %2399 = vmatprep.subr.mxu0 %v2205_v42  ;;  %v2167_v40 = vld [vmem:[%s6474_s14 + $0x558] sm:$0xff]  ;;  %v2038_v41 = vld [vmem:[%s6474_s14 + $0x150] sm:$0xff] }
 0x4d1   :  { %2329 = vmatpush2.msra.mxu1 %v2076_v45  ;;  %2400 = vmatpush2.msra.mxu0 %v2204_v46  ;;  %v2166_v42 = vld [vmem:[%s6474_s14 + $0x550] sm:$0xff]  ;;  %v2035_v45 = vld [vmem:[%s6474_s14 + $0x138] sm:$0xff] }
 0x4d2   :  { %2330 = vmatprep.subr.mxu1 %v2073_v48  ;;  %2401 = vmatprep.subr.mxu0 %v2201_v49  ;;  %v2163_v46 = vld [vmem:[%s6474_s14 + $0x538] sm:$0xff]  ;;  %v2034_v48 = vld [vmem:[%s6474_s14 + $0x130] sm:$0xff] }
 0x4d3   :  { %2331 = vmatpush2.msra.mxu1 %v2072_v50  ;;  %2402 = vmatpush2.msra.mxu0 %v2200_v51  ;;  %v2162_v49 = vld [vmem:[%s6474_s14 + $0x530] sm:$0xff]  ;;  %v2031_v50 = vld [vmem:[%s6474_s14 + $0x118] sm:$0xff] }
 0x4d4   :  { %2332 = vmatprep.subr.mxu1 %v2069_v18  ;;  %2403 = vmatprep.subr.mxu0 %v2197_v22  ;;  %v2159_v51 = vld [vmem:[%s6474_s14 + $0x518] sm:$0xff]  ;;  %v2030_v18 = vld [vmem:[%s6474_s14 + $0x110] sm:$0xff] }
 0x4d5   :  { %2333 = vmatpush2.msra.mxu1 %v2068_v53  ;;  %2404 = vmatpush2.msra.mxu0 %v2196_v54  ;;  %v2158_v22 = vld [vmem:[%s6474_s14 + $0x510] sm:$0xff]  ;;  %v2027_v53 = vld [vmem:[%s6474_s14 + $0xf8] sm:$0xff] }
 0x4d6   :  { %2334 = vmatprep.subr.mxu1 %v2065_v39  ;;  %2405 = vmatprep.subr.mxu0 %v2193_v47  ;;  %v2155_v54 = vld [vmem:[%s6474_s14 + $0x4f8] sm:$0xff]  ;;  %v2026_v39 = vld [vmem:[%s6474_s14 + $0xf0] sm:$0xff] }
 0x4d7   :  { %2335 = vmatpush2.msra.mxu1 %v2064_v55  ;;  %2406 = vmatpush2.msra.mxu0 %v2192_v56  ;;  %v2154_v47 = vld [vmem:[%s6474_s14 + $0x4f0] sm:$0xff]  ;;  %v2023_v55 = vld [vmem:[%s6474_s14 + $0xd8] sm:$0xff] }
 0x4d8   :  { %2336 = vmatprep.subr.mxu1 %v2061_v57  ;;  %2407 = vmatprep.subr.mxu0 %v2189_v58  ;;  %v2151_v56 = vld [vmem:[%s6474_s14 + $0x4d8] sm:$0xff]  ;;  %v2022_v57 = vld [vmem:[%s6474_s14 + $0xd0] sm:$0xff] }
 0x4d9   :  { %2337 = vmatpush2.msra.mxu1 %v2060_v59  ;;  %2408 = vmatpush2.msra.mxu0 %v2188_v60  ;;  %v2150_v58 = vld [vmem:[%s6474_s14 + $0x4d0] sm:$0xff]  ;;  %v2019_v59 = vld [vmem:[%s6474_s14 + $0xb8] sm:$0xff] }
 0x4da   :  { %2416 = vmatprep.subr.mxu1 %v2059_v61  ;;  %2487 = vmatprep.subr.mxu0 %v2187_v62  ;;  %v2147_v60 = vld [vmem:[%s6474_s14 + $0x4b8] sm:$0xff]  ;;  %v2018_v61 = vld [vmem:[%s6474_s14 + $0xb0] sm:$0xff] }
 0x4db   :  { %v2146_v62 = vld [vmem:[%s6474_s14 + $0x4b0] sm:$0xff] }
 0x55a   :  { %v1916_v5 = vpop.f32.mrf.mxu1  ;;  %v1987_v36 = vpop.f32.mrf.mxu0 }
 0x55b   :  { %v5842_v43 = vadd.f32 %v1916_v5, %v1833_v0  ;;  %v5844_v6 = vadd.f32 %v1987_v36, %v1841_v2  ;;  %v2143_v0 = vld [vmem:[%s6474_s14 + $0x498] sm:$0xff]  ;;  %v2014_v2 = vld [vmem:[%s6474_s14 + $0x90] sm:$0xff] }
 0x55c   :  { %v1918_v7 = vpop.f32.mrf.mxu1  ;;  %v1989_v8 = vpop.f32.mrf.mxu0  ;;  %v2139_v5 = vld [vmem:[%s6474_s14 + $0x478] sm:$0xff]  ;;  %v2010_v36 = vld [vmem:[%s6474_s14 + $0x70] sm:$0xff] }
 0x55d   :  { %v1919_v9 = vadd.f32 %v1918_v7, %v1837_v3  ;;  %v1990_v44 = vadd.f32 %v1989_v8, %v1845_v4  ;;  %v1992_v12 = vmax.f32 %v5842_v43, 0.0  ;;  %v1994_v13 = vmax.f32 %v5844_v6, 0.0  ;;  %v2142_v3 = vld [vmem:[%s6474_s14 + $0x490] sm:$0xff]  ;;  %v2011_v4 = vld [vmem:[%s6474_s14 + $0x78] sm:$0xff]  ;;  %v2575_v43 = vld [vmem:[%s6476_s16 + $0x68] sm:$0xff] }
 0x55e   :  { %v2138_v7 = vld [vmem:[%s6474_s14 + $0x470] sm:$0xff]  ;;  %v2007_v8 = vld [vmem:[%s6474_s14 + $0x58] sm:$0xff]  ;;  %v2590_v6 = vld [vmem:[%s6476_s16 + $0xe0] sm:$0xff] }
 0x55f   :  { %v1993_v52 = vmax.f32 %v1919_v9, 0.0  ;;  %v1995_v11 = vmax.f32 %v1990_v44, 0.0  ;;  %v2135_v9 = vld [vmem:[%s6474_s14 + $0x458] sm:$0xff]  ;;  %v2006_v44 = vld [vmem:[%s6474_s14 + $0x50] sm:$0xff] }
 0x561   :  { %2338 = vmatprep.mubr.f32.mxu1 %v1993_v52  ;;  %2409 = vmatprep.mubr.f32.mxu0 %v1995_v11 }
 0x562   :  { %2339 = vmatmul.mubr.f32.vlgmr.msra.gmra.mxu1 %v1992_v12  ;;  %2410 = vmatmul.mubr.f32.vlgmr.msra.gmra.mxu0 %v1994_v13 }
 0x563   :  { %2417 = vmatpush1.msra.mxu1 %v2058_v14  ;;  %2488 = vmatpush1.msra.mxu0 %v2186_v15  ;;  %v2131_v14 = vld [vmem:[%s6474_s14 + $0x438] sm:$0xff]  ;;  %v2002_v15 = vld [vmem:[%s6474_s14 + $0x30] sm:$0xff] }
 0x564   :  { %2418 = vmatprep.subr.mxu1 %v2055_v16  ;;  %2480 = vmatprep.mubr.f32.mxu1 %v1993_v52  ;;  %v2134_v52 = vld [vmem:[%s6474_s14 + $0x450] sm:$0xff] }
 0x565   :  { %2489 = vmatprep.subr.mxu0 %v2183_v17  ;;  %2551 = vmatprep.mubr.f32.mxu0 %v1995_v11  ;;  %v2003_v11 = vld [vmem:[%s6474_s14 + $0x38] sm:$0xff]  ;;  %v2130_v16 = vld [vmem:[%s6474_s14 + $0x430] sm:$0xff] }
 0x566   :  { %2419 = vmatpush1.msra.mxu1 %v2054_v19  ;;  %2490 = vmatpush1.msra.mxu0 %v2182_v20  ;;  %v1999_v17 = vld [vmem:[%s6474_s14 + $0x18] sm:$0xff]  ;;  %v1998_v20 = vld [vmem:[%s6474_s14 + $0x10] sm:$0xff] }
 0x567   :  { %2420 = vmatprep.subr.mxu1 %v2051_v21  ;;  %2491 = vmatprep.subr.mxu0 %v2179_v23  ;;  %v2127_v19 = vld [vmem:[%s6474_s14 + $0x418] sm:$0xff]  ;;  %v2126_v21 = vld [vmem:[%s6474_s14 + $0x410] sm:$0xff] }
 0x568   :  { %2421 = vmatpush1.msra.mxu1 %v2050_v24  ;;  %2492 = vmatpush1.msra.mxu0 %v2178_v25  ;;  %v2123_v23 = vld [vmem:[%s6474_s14 + $0x3f8] sm:$0xff]  ;;  %v2122_v25 = vld [vmem:[%s6474_s14 + $0x3f0] sm:$0xff] }
 0x569   :  { %2422 = vmatprep.subr.mxu1 %v2047_v26  ;;  %2493 = vmatprep.subr.mxu0 %v2175_v27  ;;  %v2251_v24 = vld [vmem:[%s6474_s14 + $0x7f8] sm:$0xff]  ;;  %v2250_v26 = vld [vmem:[%s6474_s14 + $0x7f0] sm:$0xff] }
 0x56a   :  { %2423 = vmatpush1.msra.mxu1 %v2046_v29  ;;  %2494 = vmatpush1.msra.mxu0 %v2174_v31  ;;  %v2119_v27 = vld [vmem:[%s6474_s14 + $0x3d8] sm:$0xff]  ;;  %v2118_v31 = vld [vmem:[%s6474_s14 + $0x3d0] sm:$0xff] }
 0x56b   :  { %2424 = vmatprep.subr.mxu1 %v2043_v33  ;;  %2495 = vmatprep.subr.mxu0 %v2171_v35  ;;  %v2247_v29 = vld [vmem:[%s6474_s14 + $0x7d8] sm:$0xff]  ;;  %v2246_v33 = vld [vmem:[%s6474_s14 + $0x7d0] sm:$0xff] }
 0x56c   :  { %2425 = vmatpush1.msra.mxu1 %v2042_v10  ;;  %2496 = vmatpush1.msra.mxu0 %v2170_v37  ;;  %v2115_v35 = vld [vmem:[%s6474_s14 + $0x3b8] sm:$0xff]  ;;  %v2114_v37 = vld [vmem:[%s6474_s14 + $0x3b0] sm:$0xff] }
 0x56d   :  { %2426 = vmatprep.subr.mxu1 %v2039_v38  ;;  %2497 = vmatprep.subr.mxu0 %v2167_v40  ;;  %v2243_v10 = vld [vmem:[%s6474_s14 + $0x7b8] sm:$0xff]  ;;  %v2242_v38 = vld [vmem:[%s6474_s14 + $0x7b0] sm:$0xff] }
 0x56e   :  { %2427 = vmatpush1.msra.mxu1 %v2038_v41  ;;  %2498 = vmatpush1.msra.mxu0 %v2166_v42  ;;  %v2111_v40 = vld [vmem:[%s6474_s14 + $0x398] sm:$0xff]  ;;  %v2110_v42 = vld [vmem:[%s6474_s14 + $0x390] sm:$0xff] }
 0x56f   :  { %2428 = vmatprep.subr.mxu1 %v2035_v45  ;;  %2499 = vmatprep.subr.mxu0 %v2163_v46  ;;  %v2239_v41 = vld [vmem:[%s6474_s14 + $0x798] sm:$0xff]  ;;  %v2238_v45 = vld [vmem:[%s6474_s14 + $0x790] sm:$0xff] }
 0x570   :  { %2429 = vmatpush1.msra.mxu1 %v2034_v48  ;;  %2500 = vmatpush1.msra.mxu0 %v2162_v49  ;;  %v2107_v46 = vld [vmem:[%s6474_s14 + $0x378] sm:$0xff]  ;;  %v2106_v49 = vld [vmem:[%s6474_s14 + $0x370] sm:$0xff] }
 0x571   :  { %2430 = vmatprep.subr.mxu1 %v2031_v50  ;;  %2501 = vmatprep.subr.mxu0 %v2159_v51  ;;  %v2235_v48 = vld [vmem:[%s6474_s14 + $0x778] sm:$0xff]  ;;  %v2234_v50 = vld [vmem:[%s6474_s14 + $0x770] sm:$0xff] }
 0x572   :  { %2431 = vmatpush1.msra.mxu1 %v2030_v18  ;;  %2502 = vmatpush1.msra.mxu0 %v2158_v22  ;;  %v2103_v51 = vld [vmem:[%s6474_s14 + $0x358] sm:$0xff]  ;;  %v2102_v22 = vld [vmem:[%s6474_s14 + $0x350] sm:$0xff] }
 0x573   :  { %2432 = vmatprep.subr.mxu1 %v2027_v53  ;;  %2503 = vmatprep.subr.mxu0 %v2155_v54  ;;  %v2231_v18 = vld [vmem:[%s6474_s14 + $0x758] sm:$0xff]  ;;  %v2230_v53 = vld [vmem:[%s6474_s14 + $0x750] sm:$0xff] }
 0x574   :  { %2433 = vmatpush1.msra.mxu1 %v2026_v39  ;;  %2504 = vmatpush1.msra.mxu0 %v2154_v47  ;;  %v2099_v54 = vld [vmem:[%s6474_s14 + $0x338] sm:$0xff]  ;;  %v2098_v47 = vld [vmem:[%s6474_s14 + $0x330] sm:$0xff] }
 0x575   :  { %2434 = vmatprep.subr.mxu1 %v2023_v55  ;;  %2505 = vmatprep.subr.mxu0 %v2151_v56  ;;  %v2227_v39 = vld [vmem:[%s6474_s14 + $0x738] sm:$0xff]  ;;  %v2226_v55 = vld [vmem:[%s6474_s14 + $0x730] sm:$0xff] }
 0x576   :  { %2435 = vmatpush1.msra.mxu1 %v2022_v57  ;;  %2506 = vmatpush1.msra.mxu0 %v2150_v58  ;;  %v2095_v56 = vld [vmem:[%s6474_s14 + $0x318] sm:$0xff]  ;;  %v2094_v58 = vld [vmem:[%s6474_s14 + $0x310] sm:$0xff] }
 0x577   :  { %2436 = vmatprep.subr.mxu1 %v2019_v59  ;;  %2507 = vmatprep.subr.mxu0 %v2147_v60  ;;  %v2223_v57 = vld [vmem:[%s6474_s14 + $0x718] sm:$0xff]  ;;  %v2222_v59 = vld [vmem:[%s6474_s14 + $0x710] sm:$0xff] }
 0x578   :  { %2437 = vmatpush1.msra.mxu1 %v2018_v61  ;;  %2508 = vmatpush1.msra.mxu0 %v2146_v62  ;;  %v2091_v60 = vld [vmem:[%s6474_s14 + $0x2f8] sm:$0xff]  ;;  %v2090_v62 = vld [vmem:[%s6474_s14 + $0x2f0] sm:$0xff] }
 0x579   :  { %2438 = vmatprep.subr.mxu1 %v2015_v63  ;;  %2509 = vmatprep.subr.mxu0 %v2143_v0  ;;  %v2219_v61 = vld [vmem:[%s6474_s14 + $0x6f8] sm:$0xff]  ;;  %v2218_v63 = vld [vmem:[%s6474_s14 + $0x6f0] sm:$0xff] }
 0x57a   :  { %2439 = vmatpush1.msra.mxu1 %v2014_v2  ;;  %2510 = vmatpush1.msra.mxu0 %v2142_v3  ;;  %v2087_v0 = vld [vmem:[%s6474_s14 + $0x2d8] sm:$0xff]  ;;  %v2086_v3 = vld [vmem:[%s6474_s14 + $0x2d0] sm:$0xff] }
 0x57b   :  { %2440 = vmatprep.subr.mxu1 %v2011_v4  ;;  %2511 = vmatprep.subr.mxu0 %v2139_v5  ;;  %v2215_v2 = vld [vmem:[%s6474_s14 + $0x6d8] sm:$0xff]  ;;  %v2214_v4 = vld [vmem:[%s6474_s14 + $0x6d0] sm:$0xff] }
 0x57c   :  { %2441 = vmatpush1.msra.mxu1 %v2010_v36  ;;  %2512 = vmatpush1.msra.mxu0 %v2138_v7  ;;  %v2083_v5 = vld [vmem:[%s6474_s14 + $0x2b8] sm:$0xff]  ;;  %v2082_v7 = vld [vmem:[%s6474_s14 + $0x2b0] sm:$0xff] }
 0x57d   :  { %2442 = vmatprep.subr.mxu1 %v2007_v8  ;;  %2513 = vmatprep.subr.mxu0 %v2135_v9  ;;  %v2211_v36 = vld [vmem:[%s6474_s14 + $0x6b8] sm:$0xff]  ;;  %v2210_v8 = vld [vmem:[%s6474_s14 + $0x6b0] sm:$0xff] }
 0x57e   :  { %2443 = vmatpush1.msra.mxu1 %v2006_v44  ;;  %2514 = vmatpush1.msra.mxu0 %v2134_v52  ;;  %v2079_v9 = vld [vmem:[%s6474_s14 + $0x298] sm:$0xff]  ;;  %v2078_v52 = vld [vmem:[%s6474_s14 + $0x290] sm:$0xff] }
 0x57f   :  { %2444 = vmatprep.subr.mxu1 %v2003_v11  ;;  %2515 = vmatprep.subr.mxu0 %v2131_v14  ;;  %v2207_v44 = vld [vmem:[%s6474_s14 + $0x698] sm:$0xff]  ;;  %v2206_v11 = vld [vmem:[%s6474_s14 + $0x690] sm:$0xff] }
 0x580   :  { %2445 = vmatpush1.msra.mxu1 %v2002_v15  ;;  %2516 = vmatpush1.msra.mxu0 %v2130_v16  ;;  %v2075_v14 = vld [vmem:[%s6474_s14 + $0x278] sm:$0xff]  ;;  %v2074_v16 = vld [vmem:[%s6474_s14 + $0x270] sm:$0xff] }
 0x581   :  { %2446 = vmatprep.subr.mxu1 %v1999_v17  ;;  %2517 = vmatprep.subr.mxu0 %v2127_v19  ;;  %v2203_v15 = vld [vmem:[%s6474_s14 + $0x678] sm:$0xff]  ;;  %v2202_v17 = vld [vmem:[%s6474_s14 + $0x670] sm:$0xff] }
 0x582   :  { %2447 = vmatpush1.msra.mxu1 %v1998_v20  ;;  %2518 = vmatpush1.msra.mxu0 %v2126_v21  ;;  %v2071_v19 = vld [vmem:[%s6474_s14 + $0x258] sm:$0xff]  ;;  %v2070_v21 = vld [vmem:[%s6474_s14 + $0x250] sm:$0xff] }
 0x583   :  { %2448 = vmatprep.subr.mxu1 %v2123_v23  ;;  %2519 = vmatprep.subr.mxu0 %v2251_v24  ;;  %v2199_v20 = vld [vmem:[%s6474_s14 + $0x658] sm:$0xff]  ;;  %v2198_v23 = vld [vmem:[%s6474_s14 + $0x650] sm:$0xff] }
 0x584   :  { %2449 = vmatpush2.msra.mxu1 %v2122_v25  ;;  %2520 = vmatpush2.msra.mxu0 %v2250_v26  ;;  %v2067_v24 = vld [vmem:[%s6474_s14 + $0x238] sm:$0xff]  ;;  %v2066_v26 = vld [vmem:[%s6474_s14 + $0x230] sm:$0xff] }
 0x585   :  { %2450 = vmatprep.subr.mxu1 %v2119_v27  ;;  %2521 = vmatprep.subr.mxu0 %v2247_v29  ;;  %v2195_v25 = vld [vmem:[%s6474_s14 + $0x638] sm:$0xff]  ;;  %v2194_v27 = vld [vmem:[%s6474_s14 + $0x630] sm:$0xff] }
 0x586   :  { %2451 = vmatpush2.msra.mxu1 %v2118_v31  ;;  %2522 = vmatpush2.msra.mxu0 %v2246_v33  ;;  %v2063_v29 = vld [vmem:[%s6474_s14 + $0x218] sm:$0xff]  ;;  %v2062_v33 = vld [vmem:[%s6474_s14 + $0x210] sm:$0xff] }
 0x587   :  { %2452 = vmatprep.subr.mxu1 %v2115_v35  ;;  %2523 = vmatprep.subr.mxu0 %v2243_v10  ;;  %v2191_v31 = vld [vmem:[%s6474_s14 + $0x618] sm:$0xff]  ;;  %v2190_v35 = vld [vmem:[%s6474_s14 + $0x610] sm:$0xff] }
 0x588   :  { %2453 = vmatpush2.msra.mxu1 %v2114_v37  ;;  %2524 = vmatpush2.msra.mxu0 %v2242_v38  ;;  %v2593_v10 = vld [vmem:[%s6476_s16 + $0xf8] sm:$0xff]  ;;  %v2592_v38 = vld [vmem:[%s6476_s16 + $0xf0] sm:$0xff] }
 0x589   :  { %2454 = vmatprep.subr.mxu1 %v2111_v40  ;;  %2525 = vmatprep.subr.mxu0 %v2239_v41  ;;  %v2577_v37 = vld [vmem:[%s6476_s16 + $0x78] sm:$0xff]  ;;  %v2576_v40 = vld [vmem:[%s6476_s16 + $0x70] sm:$0xff]  ;;  %v2591_v41 = vld [vmem:[%s6476_s16 + $0xe8] sm:$0xff] }
 0x58a   :  { %2455 = vmatpush2.msra.mxu1 %v2110_v42  ;;  %2526 = vmatpush2.msra.mxu0 %v2238_v45  ;;  %v2573_v42 = vld [vmem:[%s6476_s16 + $0x58] sm:$0xff]  ;;  %v2588_v45 = vld [vmem:[%s6476_s16 + $0xd0] sm:$0xff] }
 0x58b   :  { %2456 = vmatprep.subr.mxu1 %v2107_v46  ;;  %2527 = vmatprep.subr.mxu0 %v2235_v48  ;;  %v2572_v46 = vld [vmem:[%s6476_s16 + $0x50] sm:$0xff]  ;;  %v2625_v48 = vld [vmem:[%s6476_s16 + $0x1f8] sm:$0xff] }
 0x58c   :  { %2457 = vmatpush2.msra.mxu1 %v2106_v49  ;;  %2528 = vmatpush2.msra.mxu0 %v2234_v50  ;;  %v2609_v49 = vld [vmem:[%s6476_s16 + $0x178] sm:$0xff]  ;;  %v2624_v50 = vld [vmem:[%s6476_s16 + $0x1f0] sm:$0xff] }
 0x58d   :  { %2458 = vmatprep.subr.mxu1 %v2103_v51  ;;  %2529 = vmatprep.subr.mxu0 %v2231_v18  ;;  %v2587_v51 = vld [vmem:[%s6476_s16 + $0xc8] sm:$0xff]  ;;  %v2608_v18 = vld [vmem:[%s6476_s16 + $0x170] sm:$0xff] }
 0x58e   :  { %2459 = vmatpush2.msra.mxu1 %v2102_v22  ;;  %2530 = vmatpush2.msra.mxu0 %v2230_v53  ;;  %v2571_v22 = vld [vmem:[%s6476_s16 + $0x48] sm:$0xff] }
 0x58f   :  { %2460 = vmatprep.subr.mxu1 %v2099_v54  ;;  %2531 = vmatprep.subr.mxu0 %v2227_v39  ;;  %v2623_v53 = vld [vmem:[%s6476_s16 + $0x1e8] sm:$0xff]  ;;  %v2586_v54 = vld [vmem:[%s6476_s16 + $0xc0] sm:$0xff] }
 0x590   :  { %2461 = vmatpush2.msra.mxu1 %v2098_v47  ;;  %2532 = vmatpush2.msra.mxu0 %v2226_v55  ;;  %v2607_v39 = vld [vmem:[%s6476_s16 + $0x168] sm:$0xff]  ;;  %v2570_v47 = vld [vmem:[%s6476_s16 + $0x40] sm:$0xff] }
 0x591   :  { %2462 = vmatprep.subr.mxu1 %v2095_v56  ;;  %2533 = vmatprep.subr.mxu0 %v2223_v57  ;;  %v2622_v55 = vld [vmem:[%s6476_s16 + $0x1e0] sm:$0xff]  ;;  %v2585_v56 = vld [vmem:[%s6476_s16 + $0xb8] sm:$0xff] }
 0x592   :  { %2463 = vmatpush2.msra.mxu1 %v2094_v58  ;;  %2534 = vmatpush2.msra.mxu0 %v2222_v59  ;;  %v2606_v57 = vld [vmem:[%s6476_s16 + $0x160] sm:$0xff]  ;;  %v2569_v58 = vld [vmem:[%s6476_s16 + $0x38] sm:$0xff] }
 0x593   :  { %2464 = vmatprep.subr.mxu1 %v2091_v60  ;;  %2535 = vmatprep.subr.mxu0 %v2219_v61  ;;  %v2621_v59 = vld [vmem:[%s6476_s16 + $0x1d8] sm:$0xff]  ;;  %v2584_v60 = vld [vmem:[%s6476_s16 + $0xb0] sm:$0xff] }
 0x594   :  { %2465 = vmatpush2.msra.mxu1 %v2090_v62  ;;  %2536 = vmatpush2.msra.mxu0 %v2218_v63  ;;  %v2605_v61 = vld [vmem:[%s6476_s16 + $0x158] sm:$0xff]  ;;  %v2568_v62 = vld [vmem:[%s6476_s16 + $0x30] sm:$0xff] }
 0x595   :  { %2466 = vmatprep.subr.mxu1 %v2087_v0  ;;  %2537 = vmatprep.subr.mxu0 %v2215_v2  ;;  %v2620_v63 = vld [vmem:[%s6476_s16 + $0x1d0] sm:$0xff]  ;;  %v2583_v0 = vld [vmem:[%s6476_s16 + $0xa8] sm:$0xff] }
 0x596   :  { %2467 = vmatpush2.msra.mxu1 %v2086_v3  ;;  %2538 = vmatpush2.msra.mxu0 %v2214_v4  ;;  %v2604_v2 = vld [vmem:[%s6476_s16 + $0x150] sm:$0xff]  ;;  %v2567_v3 = vld [vmem:[%s6476_s16 + $0x28] sm:$0xff] }
 0x597   :  { %2468 = vmatprep.subr.mxu1 %v2083_v5  ;;  %2539 = vmatprep.subr.mxu0 %v2211_v36  ;;  %v2619_v4 = vld [vmem:[%s6476_s16 + $0x1c8] sm:$0xff]  ;;  %v2582_v5 = vld [vmem:[%s6476_s16 + $0xa0] sm:$0xff] }
 0x598   :  { %2469 = vmatpush2.msra.mxu1 %v2082_v7  ;;  %2540 = vmatpush2.msra.mxu0 %v2210_v8  ;;  %v2603_v36 = vld [vmem:[%s6476_s16 + $0x148] sm:$0xff]  ;;  %v2566_v7 = vld [vmem:[%s6476_s16 + $0x20] sm:$0xff] }
 0x599   :  { %2470 = vmatprep.subr.mxu1 %v2079_v9  ;;  %2541 = vmatprep.subr.mxu0 %v2207_v44  ;;  %v2618_v8 = vld [vmem:[%s6476_s16 + $0x1c0] sm:$0xff]  ;;  %v2581_v9 = vld [vmem:[%s6476_s16 + $0x98] sm:$0xff] }
 0x59a   :  { %2471 = vmatpush2.msra.mxu1 %v2078_v52  ;;  %2542 = vmatpush2.msra.mxu0 %v2206_v11  ;;  %v2602_v44 = vld [vmem:[%s6476_s16 + $0x140] sm:$0xff]  ;;  %v2565_v52 = vld [vmem:[%s6476_s16 + $0x18] sm:$0xff] }
 0x59b   :  { %2472 = vmatprep.subr.mxu1 %v2075_v14  ;;  %2543 = vmatprep.subr.mxu0 %v2203_v15  ;;  %v2617_v11 = vld [vmem:[%s6476_s16 + $0x1b8] sm:$0xff]  ;;  %v2580_v14 = vld [vmem:[%s6476_s16 + $0x90] sm:$0xff] }
 0x59c   :  { %2473 = vmatpush2.msra.mxu1 %v2074_v16  ;;  %2544 = vmatpush2.msra.mxu0 %v2202_v17  ;;  %v2601_v15 = vld [vmem:[%s6476_s16 + $0x138] sm:$0xff]  ;;  %v2564_v16 = vld [vmem:[%s6476_s16 + $0x10] sm:$0xff] }
 0x59d   :  { %2474 = vmatprep.subr.mxu1 %v2071_v19  ;;  %2545 = vmatprep.subr.mxu0 %v2199_v20  ;;  %v2616_v17 = vld [vmem:[%s6476_s16 + $0x1b0] sm:$0xff]  ;;  %v2579_v19 = vld [vmem:[%s6476_s16 + $0x88] sm:$0xff] }
 0x59e   :  { %2475 = vmatpush2.msra.mxu1 %v2070_v21  ;;  %2546 = vmatpush2.msra.mxu0 %v2198_v23  ;;  %v2600_v20 = vld [vmem:[%s6476_s16 + $0x130] sm:$0xff]  ;;  %v2563_v21 = vld [vmem:[%s6476_s16 + $0x8] sm:$0xff] }
 0x59f   :  { %2476 = vmatprep.subr.mxu1 %v2067_v24  ;;  %2547 = vmatprep.subr.mxu0 %v2195_v25  ;;  %v2615_v23 = vld [vmem:[%s6476_s16 + $0x1a8] sm:$0xff]  ;;  %v2578_v24 = vld [vmem:[%s6476_s16 + $0x80] sm:$0xff] }
 0x5a0   :  { %2477 = vmatpush2.msra.mxu1 %v2066_v26  ;;  %2548 = vmatpush2.msra.mxu0 %v2194_v27  ;;  %v2599_v25 = vld [vmem:[%s6476_s16 + $0x128] sm:$0xff]  ;;  %v2562_v26 = vld [vmem:[%s6476_s16] sm:$0xff] }
 0x5a1   :  { %2478 = vmatprep.subr.mxu1 %v2063_v29  ;;  %2549 = vmatprep.subr.mxu0 %v2191_v31  ;;  %v2614_v27 = vld [vmem:[%s6476_s16 + $0x1a0] sm:$0xff]  ;;  %v2613_v31 = vld [vmem:[%s6476_s16 + $0x198] sm:$0xff] }
 0x5a2   :  { %2479 = vmatpush2.msra.mxu1 %v2062_v33  ;;  %2550 = vmatpush2.msra.mxu0 %v2190_v35  ;;  %v2598_v29 = vld [vmem:[%s6476_s16 + $0x120] sm:$0xff]  ;;  %v2597_v33 = vld [vmem:[%s6476_s16 + $0x118] sm:$0xff]  ;;  %v2612_v35 = vld [vmem:[%s6476_s16 + $0x190] sm:$0xff] }
 0x5a3   :  { %2481 = vmatmul.mubr.f32.vlgmr.msra.gmra.mxu1 %v1992_v12  ;;  %2552 = vmatmul.mubr.f32.vlgmr.msra.gmra.mxu0 %v1994_v13  ;;  %v2574_v12 = vld [vmem:[%s6476_s16 + $0x60] sm:$0xff]  ;;  %v2589_v13 = vld [vmem:[%s6476_s16 + $0xd8] sm:$0xff] }
 0x5a4   :  { %2912 = vmatprep.subr.mxu1 %v2593_v10  ;;  %2947 = vmatprep.subr.mxu0 %v2625_v48  ;;  %v2596_v10 = vld [vmem:[%s6476_s16 + $0x110] sm:$0xff] }
 0x5a5   :  { %2913 = vmatpush3.msra.mxu1 %v2577_v37  ;;  %2948 = vmatpush3.msra.mxu0 %v2609_v49  ;;  %v2611_v37 = vld [vmem:[%s6476_s16 + $0x188] sm:$0xff] }
 0x5a6   :  { %2914 = vmatprep.subr.mxu1 %v2592_v38  ;;  %2949 = vmatprep.subr.mxu0 %v2624_v50  ;;  %v2595_v38 = vld [vmem:[%s6476_s16 + $0x108] sm:$0xff] }
 0x5a7   :  { %2915 = vmatpush3.msra.mxu1 %v2576_v40  ;;  %2950 = vmatpush3.msra.mxu0 %v2608_v18  ;;  %v2610_v40 = vld [vmem:[%s6476_s16 + $0x180] sm:$0xff] }
 0x5a8   :  { %2916 = vmatprep.subr.mxu1 %v2591_v41  ;;  %2951 = vmatprep.subr.mxu0 %v2623_v53  ;;  %v2594_v41 = vld [vmem:[%s6476_s16 + $0x100] sm:$0xff] }
 0x5a9   :  { %2917 = vmatpush3.msra.mxu1 %v2575_v43  ;;  %2952 = vmatpush3.msra.mxu0 %v2607_v39  ;;  %v2252_v43 = vld [vmem:[%s6475_s15] sm:$0xf] }
 0x5aa   :  { %2918 = vmatprep.subr.mxu1 %v2590_v6  ;;  %2953 = vmatprep.subr.mxu0 %v2622_v55  ;;  %v2257_v6 = vrot.slane %v2252_v43, %v3650_v28  ;;  %v2265_v53 = vrot.slane %v2252_v43, %v3658_v32  ;;  %v2269_v28 = vrot.slane %v2252_v43, %v3661_v34  ;;  %v2777_v32 = vld [vmem:[%s6478_s18] sm:$0xff] }
 0x5ab   :  { %2919 = vmatpush3.msra.mxu1 %v2574_v12  ;;  %2954 = vmatpush3.msra.mxu0 %v2606_v57  ;;  %v2261_v12 = vrot.slane %v2252_v43, %v3655_v30 }
 0x5ac   :  { %2920 = vmatprep.subr.mxu1 %v2589_v13  ;;  %2955 = vmatprep.subr.mxu0 %v2621_v59 }
 0x5ad   :  { %2921 = vmatpush3.msra.mxu1 %v2573_v42  ;;  %2956 = vmatpush3.msra.mxu0 %v2605_v61  ;;  %v2778_v61 = vld [vmem:[%s6478_s18 + $0x8] sm:$0xff]  ;;  %s3065_s18 = smov [#allocation2]  }
 0x5ae   :  { %2922 = vmatprep.subr.mxu1 %v2588_v45  ;;  %2957 = vmatprep.subr.mxu0 %v2620_v63  ;;  %s2868_s0 = sshll.u32 %s3065_s18, 4  ;;  %s2869_s0 = int_to_ptr.vmem [resolvable:$true] %s2868_s0 }
 0x5af   :  { %2923 = vmatpush3.msra.mxu1 %v2572_v46  ;;  %2958 = vmatpush3.msra.mxu0 %v2604_v2  ;;  %s3019_s24 = scalar_lea.vmem %s2869_s0, 128  ;;  %p3024_p1 = scmp.lt.s32.totalorder %s2869_s0, %s2869_s0 }
 0x5b0   :  { %2924 = vmatprep.subr.mxu1 %v2587_v51  ;;  %2959 = vmatprep.subr.mxu0 %v2619_v4  ;;  %p3020_p0 = scmp.ne.s32.totalorder %s2869_s0, %s3019_s24  ;;  %p3025_p2 = scmp.lt.s32.totalorder %s3019_s24, %s3019_s24 }
 0x5b1   :  { %2925 = vmatpush3.msra.mxu1 %v2571_v22  ;;  %2960 = vmatpush3.msra.mxu0 %v2603_v36 }
 0x5b2   :  { %2926 = vmatprep.subr.mxu1 %v2586_v54  ;;  %2961 = vmatprep.subr.mxu0 %v2618_v8  ;;  %p3026_p3 = por %p3025_p2, %p3024_p1 }
 0x5b3   :  { %2927 = vmatpush3.msra.mxu1 %v2570_v47  ;;  %2962 = vmatpush3.msra.mxu0 %v2602_v44 }
 0x5b4   :  { %2928 = vmatprep.subr.mxu1 %v2585_v56  ;;  %2963 = vmatprep.subr.mxu0 %v2617_v11  ;;  %p3027_p4 = pnand %p3026_p3, %p3020_p0 }
 0x5b5   :  { %2929 = vmatpush3.msra.mxu1 %v2569_v58  ;;  %2964 = vmatpush3.msra.mxu0 %v2601_v15 }
 0x5b6   :  { %2930 = vmatprep.subr.mxu1 %v2584_v60  ;;  %2965 = vmatprep.subr.mxu0 %v2616_v17 }
 0x5b7   :  { %2931 = vmatpush3.msra.mxu1 %v2568_v62  ;;  %2966 = vmatpush3.msra.mxu0 %v2600_v20 }
 0x5b8   :  { %2932 = vmatprep.subr.mxu1 %v2583_v0  ;;  %2967 = vmatprep.subr.mxu0 %v2615_v23  ;;  %v2900_v0 = vld [vmem:[%s6477_s17] ss:$0 sm:$0xff] }
 0x5b9   :  { %2933 = vmatpush3.msra.mxu1 %v2567_v3  ;;  %2968 = vmatpush3.msra.mxu0 %v2599_v25 }
 0x5ba   :  { %2934 = vmatprep.subr.mxu1 %v2582_v5  ;;  %2969 = vmatprep.subr.mxu0 %v2614_v27 }
 0x5bb   :  { %2935 = vmatpush3.msra.mxu1 %v2566_v7  ;;  %2970 = vmatpush3.msra.mxu0 %v2598_v29 }
 0x5bc   :  { %2936 = vmatprep.subr.mxu1 %v2581_v9  ;;  %2971 = vmatprep.subr.mxu0 %v2613_v31 }
 0x5bd   :  { %2937 = vmatpush3.msra.mxu1 %v2565_v52  ;;  %2972 = vmatpush3.msra.mxu0 %v2597_v33 }
 0x5be   :  { %2938 = vmatprep.subr.mxu1 %v2580_v14  ;;  %2973 = vmatprep.subr.mxu0 %v2612_v35 }
 0x5bf   :  { %2939 = vmatpush3.msra.mxu1 %v2564_v16  ;;  %2974 = vmatpush3.msra.mxu0 %v2596_v10 }
 0x5c0   :  { %2940 = vmatprep.subr.mxu1 %v2579_v19  ;;  %2975 = vmatprep.subr.mxu0 %v2611_v37 }
 0x5c1   :  { %2941 = vmatpush3.msra.mxu1 %v2563_v21  ;;  %2976 = vmatpush3.msra.mxu0 %v2595_v38 }
 0x5c2   :  { %2942 = vmatprep.subr.mxu1 %v2578_v24  ;;  %2977 = vmatprep.subr.mxu0 %v2610_v40 }
 0x5c3   :  { %2943 = vmatpush3.msra.mxu1 %v2562_v26  ;;  %2978 = vmatpush3.msra.mxu0 %v2594_v41 }
 0x5c4   :  { %3004 = vmatprep.subr.mxu1 %v3063_v1 }
 0x622   :  { %v2340_v13 = vpop.f32.mrf.mxu1  ;;  %v2411_v42 = vpop.f32.mrf.mxu0 }
 0x623   :  { %v2341_v45 = vadd.f32 %v2340_v13, %v2257_v6 }
 0x624   :  { %v2342_v46 = vpop.f32.mrf.mxu1  ;;  %v2413_v50 = vpop.f32.mrf.mxu0 }
 0x625   :  { %v2343_v48 = vadd.f32 %v2342_v46, %v2261_v12  ;;  %v2412_v49 = vadd.f32 %v2411_v42, %v2341_v45 }
 0x627   :  { %v2414_v51 = vadd.f32 %v2413_v50, %v2343_v48  ;;  %v2558_v22 = vmax.f32 %v2412_v49, 0.0 }
 0x629   :  { %v2559_v18 = vmax.f32 %v2414_v51, 0.0 }
 0x62b   :  { %2697 = vmatprep.mubr.f32.mxu1 %v2559_v18 }
 0x62c   :  { %2698 = vmatmul.mubr.f32.vlgmr.msra.gmra.mxu1 %v2558_v22 }
 0x62d   :  { %3008 = vmatprep.mubr.msk.f32.mxu1 %vm3064_vm0, %v3063_v1  ;;  %3005 = vmatpush3.msra.mxu1 %v2778_v61 }
 0x62e   :  { %3006 = vmatprep.subr.mxu1 %v3063_v1 }
 0x62f   :  { %3007 = vmatpush3.msra.mxu1 %v2777_v32 }
 0x663   :  { %v2482_v30 = vpop.f32.mrf.mxu1  ;;  %v2553_v54 = vpop.f32.mrf.mxu0 }
 0x664   :  { %v2483_v39 = vadd.f32 %v2482_v30, %v2265_v53 }
 0x665   :  { %v2484_v47 = vpop.f32.mrf.mxu1  ;;  %v2555_v57 = vpop.f32.mrf.mxu0 }
 0x666   :  { %v2485_v55 = vadd.f32 %v2484_v47, %v2269_v28  ;;  %v2554_v56 = vadd.f32 %v2553_v54, %v2483_v39 }
 0x668   :  { %v2556_v58 = vadd.f32 %v2555_v57, %v2485_v55  ;;  %v2560_v60 = vmax.f32 %v2554_v56, 0.0 }
 0x66a   :  { %v2561_v59 = vmax.f32 %v2556_v58, 0.0 }
 0x66c   :  { %2767 = vmatprep.mubr.f32.mxu0 %v2561_v59 }
 0x66d   :  { %2768 = vmatmul.mubr.f32.vlgmr.msra.gmra.mxu0 %v2560_v60 }
 0x6ec   :  { %v2944_v34 = vpop.f32.mrf.mxu1 }
 0x6ee   :  { %v2945_v62 = vpop.f32.mrf.mxu1 }
 0x6ef   :  { %v2946_v63 = vadd.f32 %v2945_v62, %v2944_v34 }
 0x6f1   :  { %v2700_v4 = vadd.f32 %v2946_v63, %v2900_v0 }
 0x72d   :  { %v2979_v2 = vpop.f32.mrf.mxu0 }
 0x72f   :  { %v2980_v3 = vpop.f32.mrf.mxu0 }
 0x730   :  { %v2981_v5 = vadd.f32 %v2980_v3, %v2979_v2 }
 0x732   :  { %v2770_v36 = vadd.f32 %v2981_v5, %v2700_v4 }
 0x734   :  { %v2773_v7 = vmul.f32 0.5, %v2770_v36 }
 0x736   :  { %3017 = vtanh.f32 %v2773_v7 }
 0x743   :  { %v3018_v1 = vpop.eup %3017 }
 0x744   :  { %v2775_v8 = vadd.f32 1.0, %v3018_v1 }
 0x746   :  { %v2776_v9 = vmul.f32 0.5, %v2775_v8 }
 0x748   :  { %3009 = vmatmul.mubr.msk.f32.vlgmr.msra.gmra.mxu1 %vm161_vm2, %v2776_v9 }
 0x749   :  { %3030 = shalt.err (!%p3027_p4)
}
 0x74a   :  { %2871 = dma.vmem_to_hbm [thread:$0]  %s2869_s0, 128, %s6481_s21, [#allocation3]  }
 0x74b   :  { %s3039_s25 = scalar_lea.vmem %s2879_s8, 128  ;;  %p3044_p6 = scmp.lt.s32.totalorder %s2879_s8, %s2879_s8 }
 0x74c   :  { %p3040_p5 = scmp.ne.s32.totalorder %s2879_s8, %s3039_s25  ;;  %p3045_p7 = scmp.lt.s32.totalorder %s3039_s25, %s3039_s25 }
 0x74e   :  { %p3046_p8 = por %p3045_p7, %p3044_p6 }
 0x750   :  { %p3047_p9 = pnand %p3046_p8, %p3040_p5 }
 0x752   :  { %3050 = shalt.err (!%p3047_p9)
}
 0x753   :  { %2881 = dma.vmem_to_hbm [thread:$0]  %s2879_s8, 128, %s6482_s22, [#allocation5]   ;;  %v2901_v44 = vld [vmem:[%s6479_s19] ss:$0 sm:$0xff] }
 0x808   :  { %v2855_v52 = vpop.f32.mrf.mxu1 }
 0x809   :  { %v2856_v11 = vadd.f32 %v2901_v44, %v2855_v52 }
 0x80a   :  { %v3010_v14 = vpop.f32.mrf.mxu1 }
 0x80b   :  { %2859 = vst.msk [vmem:[%s6483_s23] sm:$0xff] %vm87_vm1, %v2856_v11 }
 0x80c   :  { %3059 = dma.done.wait [#allocation3], 128  }
 0x80d   :  { %3060 = vsyncadd [#allocation3], 4294967168 }
 0x80e   :  { %3061 = dma.done.wait [#allocation5], 128  }
 0x80f   :  { %3062 = vsyncadd [#allocation5], 4294967168 }
 0x810   :  { %2894 = vsyncpa [#allocation3], 1 }
 0x811   :  { %2895 = vsyncpa [#allocation5], 1 }

</bundles_post_ra>
